<compile_context>
chip_gen: v7x
topology: tpu7x:2x2x1
jax: 0.10.0
libtpu: 0.0.40
codegen_flags: <defaults>
</compile_context>

<pallas_src>
import jax
import jax.numpy as jnp
from jax import lax
from jax.experimental import pallas as pl
from jax.experimental.pallas import tpu as pltpu

INPUT = 28
HIDDEN = 128
SEQ = 28
NUM_CLASSES = 10
OUT_PAD = 128  # lane-dense padded FC output width


def _make_kernel(b_tile, act_dtype):
    """Kernel closure over the static batch-tile size and transcendental dtype."""

    def kernel(x_ref, wih_ref, whh_ref, b_ref, wfc_ref, bfc_ref, out_ref, pre_ref):
        # x_ref:   (T*b_tile, D_in) bf16  rows ordered (t, b) within the tile
        # wih_ref: (D_in, 4H)       bf16
        # whh_ref: (H, 4H)          bf16
        # b_ref:   (1, 4H)          f32   (b_ih + b_hh)
        # wfc_ref: (H, OUT_PAD)     bf16  (zero-padded past NUM_CLASSES)
        # bfc_ref: (1, OUT_PAD)     f32
        # out_ref: (b_tile, OUT_PAD) f32
        # pre_ref: (T*b_tile, 4H)   f32 VMEM scratch (hoisted pre-activations)

        # ---- Hoisted input projection (one well-shaped matmul, bias folded in). ----
        pre_ref[...] = (
            jnp.dot(x_ref[...], wih_ref[...], preferred_element_type=jnp.float32)
            + b_ref[...]
        )

        whh = whh_ref[...]  # (H, 4H) bf16, VMEM-resident across the whole recurrence

        def tanh_act(z):
            # bf16 EUP path on v6e/v7x (~2x rate); plain f32 tanh on v5e.
            if act_dtype == jnp.float32:
                return jnp.tanh(z)
            return jnp.tanh(z.astype(act_dtype)).astype(jnp.float32)

        def sigmoid(z):  # single EUP op (tanh) instead of exp + reciprocal
            return 0.5 * tanh_act(0.5 * z) + 0.5

        def gate(g, k):  # lane-aligned 128-wide slice (PyTorch order i, f, g, o)
            return g[:, k * HIDDEN:(k + 1) * HIDDEN]

        def apply_gates(g, c_prev):
            i_g = sigmoid(gate(g, 0))
            g_g = tanh_act(gate(g, 2))
            o_g = sigmoid(gate(g, 3))
            if c_prev is None:            # peeled t=0: c0 == 0 -> skip f-gate & f*c
                c_new = i_g * g_g
            else:
                f_g = sigmoid(gate(g, 1))
                c_new = f_g * c_prev + i_g * g_g
            h_new = o_g * tanh_act(c_new)
            return h_new, c_new

        def pre_at(t):                    # contiguous rows [t*b_tile, (t+1)*b_tile)
            start = t * b_tile
            if not isinstance(start, int):
                start = pl.multiple_of(start, b_tile)
            return pre_ref[pl.ds(start, b_tile), :]

        # ---- Peeled step 0 (h0 = c0 = 0): no h@Whh matmul on the chain. ----
        h, c = apply_gates(pre_at(0), None)

        # ---- Steps 1..T-1: one bf16 matmul + activations per step. ----
        def step(t, carry):
            h, c = carry
            g = pre_at(t) + jnp.dot(
                h.astype(jnp.bfloat16), whh, preferred_element_type=jnp.float32
            )
            return apply_gates(g, c)

        h, c = lax.fori_loop(1, SEQ, step, (h, c), unroll=True)

        # ---- fc(out[:, -1, :]) with lane-dense padded output. ----
        out_ref[...] = (
            jnp.dot(h.astype(jnp.bfloat16), wfc_ref[...],
                    preferred_element_type=jnp.float32)
            + bfc_ref[...]
        )

    return kernel


def _bf16_transcendentals_ok():
    """bf16 EUP path exists on v6e / v7x only; default to f32 when unsure."""
    try:
        kind = jax.devices()[0].device_kind.lower()
    except Exception:
        return False
    return any(tag in kind for tag in ("v6", "v7", "tpu7"))


def _pick_b_tile(batch):
    """Multiple of 8; >=2 grid tiles for non-tiny batches so both v7x TCs get work;
    capped at 256 so the f32 pre-activation scratch stays ~<=15 MiB."""
    if batch <= 16:
        return max(8, ((batch + 7) // 8) * 8)
    half = (batch + 1) // 2
    return min(256, ((half + 7) // 8) * 8)


def init_params(key):
    """Deterministic init matching PyTorch shapes (uniform +-1/sqrt(H))."""
    ks = jax.random.split(key, 6)
    bound = 1.0 / jnp.sqrt(jnp.float32(HIDDEN))
    u = lambda k, s: jax.random.uniform(k, s, jnp.float32, -bound, bound)
    return {
        "w_ih": u(ks[0], (4 * HIDDEN, INPUT)),    # (512, 28)
        "w_hh": u(ks[1], (4 * HIDDEN, HIDDEN)),   # (512, 128)
        "b_ih": u(ks[2], (4 * HIDDEN,)),
        "b_hh": u(ks[3], (4 * HIDDEN,)),
        "w_fc": u(ks[4], (NUM_CLASSES, HIDDEN)),  # (10, 128)
        "b_fc": u(ks[5], (NUM_CLASSES,)),
    }


def simple_lstm_forward(x, params):
    # Plain-JAX glue: x.view(-1, 28, 28), batch padding, time-major interleave,
    # weight transposes / dtype casts / lane-dense FC padding.
    x = x.reshape(-1, SEQ, INPUT).astype(jnp.float32)         # (B, 28, 28)
    B = x.shape[0]

    b_tile = _pick_b_tile(B)
    n_tiles = (B + b_tile - 1) // b_tile
    b_pad = n_tiles * b_tile
    if b_pad != B:
        x = jnp.pad(x, ((0, b_pad - B), (0, 0), (0, 0)))

    # (B_pad, T, D) -> (n_tiles, T*b_tile, D); rows within a tile ordered (t, b).
    xt = jnp.transpose(x, (1, 0, 2))                          # (T, B_pad, D)
    xt = xt.reshape(SEQ, n_tiles, b_tile, INPUT)
    xt = jnp.transpose(xt, (1, 0, 2, 3))                      # (n_tiles, T, b_tile, D)
    x_flat = xt.reshape(n_tiles, SEQ * b_tile, INPUT).astype(jnp.bfloat16)

    wih_t = params["w_ih"].T.astype(jnp.bfloat16)             # (28, 512)  off critical path
    whh_t = params["w_hh"].T.astype(jnp.bfloat16)             # (128, 512) on critical path
    bias = (params["b_ih"] + params["b_hh"]).reshape(1, 4 * HIDDEN).astype(jnp.float32)
    wfc_t = jnp.pad(params["w_fc"].T,
                    ((0, 0), (0, OUT_PAD - NUM_CLASSES))).astype(jnp.bfloat16)  # (128, 128)
    bfc = jnp.pad(params["b_fc"],
                  (0, OUT_PAD - NUM_CLASSES)).reshape(1, OUT_PAD).astype(jnp.float32)

    act_dtype = jnp.bfloat16 if _bf16_transcendentals_ok() else jnp.float32
    kernel = _make_kernel(b_tile, act_dtype)

    out = pl.pallas_call(
        kernel,
        out_shape=jax.ShapeDtypeStruct((b_pad, OUT_PAD), jnp.float32),
        grid_spec=pltpu.PrefetchScalarGridSpec(
            num_scalar_prefetch=0,
            grid=(n_tiles,),
            in_specs=[
                # x: one batch tile per grid step (leading tile dim squeezed away)
                pl.BlockSpec((None, SEQ * b_tile, INPUT), lambda i: (i, 0, 0)),
                # weights/biases: same block every step -> stay VMEM-resident
                pl.BlockSpec((INPUT, 4 * HIDDEN), lambda i: (0, 0)),
                pl.BlockSpec((HIDDEN, 4 * HIDDEN), lambda i: (0, 0)),
                pl.BlockSpec((1, 4 * HIDDEN), lambda i: (0, 0)),
                pl.BlockSpec((HIDDEN, OUT_PAD), lambda i: (0, 0)),
                pl.BlockSpec((1, OUT_PAD), lambda i: (0, 0)),
            ],
            out_specs=pl.BlockSpec((b_tile, OUT_PAD), lambda i: (i, 0)),
            scratch_shapes=[
                pltpu.VMEM((SEQ * b_tile, 4 * HIDDEN), jnp.float32),  # hoisted pre-acts
            ],
        ),
        compiler_params=pltpu.CompilerParams(
            dimension_semantics=("parallel",),
            # Explicit scoped-VMEM budget: ~19 MiB worst-case resident set at
            # b_tile=256 (pre f32 + 2x bf16 x blocks + weights + out). 32 MiB clears
            # v5e's 16 MiB default and stays well under v7x's 64 MiB physical VMEM.
            vmem_limit_bytes=32 * 1024 * 1024,
        ),
    )(x_flat, wih_t, whh_t, bias, wfc_t, bfc)

    return out[:B, :NUM_CLASSES]


def reference_forward(x, params):
    """Pure-JAX f32 reference (matches PyTorch LSTM semantics)."""
    x = x.reshape(-1, SEQ, INPUT).astype(jnp.float32)
    B = x.shape[0]
    h = jnp.zeros((B, HIDDEN), jnp.float32)
    c = jnp.zeros((B, HIDDEN), jnp.float32)
    wih_t = params["w_ih"].T
    whh_t = params["w_hh"].T
    b = params["b_ih"] + params["b_hh"]

    def step(carry, x_t):
        h, c = carry
        gates = x_t @ wih_t + h @ whh_t + b
        i = jax.nn.sigmoid(gates[:, 0 * HIDDEN:1 * HIDDEN])
        f = jax.nn.sigmoid(gates[:, 1 * HIDDEN:2 * HIDDEN])
        g = jnp.tanh(gates[:, 2 * HIDDEN:3 * HIDDEN])
        o = jax.nn.sigmoid(gates[:, 3 * HIDDEN:4 * HIDDEN])
        c = f * c + i * g
        h = o * jnp.tanh(c)
        return (h, c), None

    (h, c), _ = lax.scan(step, (h, c), jnp.transpose(x, (1, 0, 2)))
    return h @ params["w_fc"].T + params["b_fc"]


if __name__ == "__main__":
    key = jax.random.PRNGKey(0)
    k_param, k_x = jax.random.split(key)
    params = init_params(k_param)

    # MNIST-like input: (batch=2, 1, 28, 28); forward does x.view(-1, 28, 28).
    x = jax.random.normal(k_x, (2, 1, 28, 28), jnp.float32)

    out = simple_lstm_forward(x, params)
    out = jax.block_until_ready(out)
    assert out.shape == (2, NUM_CLASSES)

    # bf16 recurrent matmuls / transcendentals (f32 accumulation) -> looser tolerance.
    ref = reference_forward(x, params)
    assert jnp.allclose(out, ref, atol=5e-2, rtol=5e-2), (out, ref)

    print("KERNEL_OK")
</pallas_src>

<mosaic_0001>
module attributes {stable_mosaic.version = 11 : i64} {
  func.func @kernel(%arg0: i32, %arg1: memref<1x224x28xbf16, #tpu.memory_space<vmem>>, %arg2: memref<28x512xbf16, #tpu.memory_space<vmem>>, %arg3: memref<128x512xbf16, #tpu.memory_space<vmem>>, %arg4: memref<1x512xf32, #tpu.memory_space<vmem>>, %arg5: memref<128x128xbf16, #tpu.memory_space<vmem>>, %arg6: memref<1x128xf32, #tpu.memory_space<vmem>>, %arg7: memref<8x128xf32, #tpu.memory_space<vmem>>, %arg8: memref<224x512xf32, #tpu.memory_space<vmem>>) attributes {dimension_semantics = [#tpu.dimension_semantics<parallel>], iteration_bounds = array<i64: 1>, scalar_prefetch = 0 : i64, scratch_operands = 1 : i64, tpu.core_type = #tpu.core_type<tc>, window_params = [{transform_indices = @transform_0, window_bounds = array<i64: 1, 224, 28>}, {pipeline_mode = #tpu.pipeline_mode<synchronous>, transform_indices = @transform_1, window_bounds = array<i64: 28, 512>}, {pipeline_mode = #tpu.pipeline_mode<synchronous>, transform_indices = @transform_2, window_bounds = array<i64: 128, 512>}, {pipeline_mode = #tpu.pipeline_mode<synchronous>, transform_indices = @transform_3, window_bounds = array<i64: 1, 512>}, {pipeline_mode = #tpu.pipeline_mode<synchronous>, transform_indices = @transform_4, window_bounds = array<i64: 128, 128>}, {pipeline_mode = #tpu.pipeline_mode<synchronous>, transform_indices = @transform_5, window_bounds = array<i64: 1, 128>}, {transform_indices = @transform_6, window_bounds = array<i64: 8, 128>}]} {
    %c0 = arith.constant 0 : index
    %c0_0 = arith.constant 0 : index
    %c0_1 = arith.constant 0 : index
    %0 = vector.load %arg1[%c0, %c0_0, %c0_1] : memref<1x224x28xbf16, #tpu.memory_space<vmem>>, vector<1x224x28xbf16>
    %1 = vector.shape_cast %0 : vector<1x224x28xbf16> to vector<224x28xbf16>
    %c0_2 = arith.constant 0 : index
    %c0_3 = arith.constant 0 : index
    %2 = vector.load %arg2[%c0_2, %c0_3] : memref<28x512xbf16, #tpu.memory_space<vmem>>, vector<28x512xbf16>
    %cst = arith.constant dense<0.000000e+00> : vector<224x512xf32>
    %3 = tpu.matmul %1, %2, %cst {dimension_numbers = #tpu.dot_dimension_numbers<[1], [0], [0], [1], [0, 0, 1, 1], [], []>} : vector<224x28xbf16>, vector<28x512xbf16>, vector<224x512xf32> -> vector<224x512xf32>
    %c0_4 = arith.constant 0 : index
    %c0_5 = arith.constant 0 : index
    %4 = vector.load %arg4[%c0_4, %c0_5] : memref<1x512xf32, #tpu.memory_space<vmem>>, vector<1x512xf32>
    %5 = vector.broadcast %4 : vector<1x512xf32> to vector<224x512xf32>
    %6 = arith.addf %3, %5 : vector<224x512xf32>
    %c0_6 = arith.constant 0 : index
    %c0_7 = arith.constant 0 : index
    %7 = vector.load %arg8[%c0_6, %c0_7] : memref<224x512xf32, #tpu.memory_space<vmem>>, vector<224x512xf32>
    tpu.vector_store %arg8[%c0_6, %c0_7], %6 {strides = array<i32>} : memref<224x512xf32, #tpu.memory_space<vmem>>, vector<224x512xf32>,
    %c0_8 = arith.constant 0 : index
    %c0_9 = arith.constant 0 : index
    %8 = vector.load %arg3[%c0_8, %c0_9] : memref<128x512xbf16, #tpu.memory_space<vmem>>, vector<128x512xbf16>
    %c0_10 = arith.constant 0 : index
    %c0_11 = arith.constant 0 : index
    %9 = vector.load %arg8[%c0_10, %c0_11] : memref<224x512xf32, #tpu.memory_space<vmem>>, vector<8x512xf32>
    %10 = vector.extract_strided_slice %9 {offsets = [0, 0], sizes = [8, 128], strides = [1, 1]} : vector<8x512xf32> to vector<8x128xf32>
    %cst_12 = arith.constant 5.000000e-01 : f32
    %11 = vector.broadcast %cst_12 : f32 to vector<8x128xf32>
    %12 = arith.mulf %11, %10 : vector<8x128xf32>
    %13 = math.tanh %12 : vector<8x128xf32>
    %cst_13 = arith.constant 5.000000e-01 : f32
    %14 = vector.broadcast %cst_13 : f32 to vector<8x128xf32>
    %15 = arith.mulf %14, %13 : vector<8x128xf32>
    %cst_14 = arith.constant 5.000000e-01 : f32
    %16 = vector.broadcast %cst_14 : f32 to vector<8x128xf32>
    %17 = arith.addf %15, %16 : vector<8x128xf32>
    %18 = vector.extract_strided_slice %9 {offsets = [0, 256], sizes = [8, 128], strides = [1, 1]} : vector<8x512xf32> to vector<8x128xf32>
    %19 = math.tanh %18 : vector<8x128xf32>
    %20 = vector.extract_strided_slice %9 {offsets = [0, 384], sizes = [8, 128], strides = [1, 1]} : vector<8x512xf32> to vector<8x128xf32>
    %cst_15 = arith.constant 5.000000e-01 : f32
    %21 = vector.broadcast %cst_15 : f32 to vector<8x128xf32>
    %22 = arith.mulf %21, %20 : vector<8x128xf32>
    %23 = math.tanh %22 : vector<8x128xf32>
    %cst_16 = arith.constant 5.000000e-01 : f32
    %24 = vector.broadcast %cst_16 : f32 to vector<8x128xf32>
    %25 = arith.mulf %24, %23 : vector<8x128xf32>
    %cst_17 = arith.constant 5.000000e-01 : f32
    %26 = vector.broadcast %cst_17 : f32 to vector<8x128xf32>
    %27 = arith.addf %25, %26 : vector<8x128xf32>
    %28 = arith.mulf %17, %19 : vector<8x128xf32>
    %29 = math.tanh %28 : vector<8x128xf32>
    %30 = arith.mulf %27, %29 : vector<8x128xf32>
    %c1_i32 = arith.constant 1 : i32
    %c8_i32 = arith.constant 8 : i32
    %31 = arith.muli %c1_i32, %c8_i32 : i32
    %32 = tpu.assume_multiple %31, 8 : i32
    %33 = arith.index_cast %32 : i32 to index
    %c0_18 = arith.constant 0 : index
    %34 = vector.load %arg8[%33, %c0_18] : memref<224x512xf32, #tpu.memory_space<vmem>>, vector<8x512xf32>
    %35 = arith.truncf %30 : vector<8x128xf32> to vector<8x128xbf16>
    %cst_19 = arith.constant dense<0.000000e+00> : vector<8x512xf32>
    %36 = tpu.matmul %35, %8, %cst_19 {dimension_numbers = #tpu.dot_dimension_numbers<[1], [0], [0], [1], [0, 0, 1, 1], [], []>} : vector<8x128xbf16>, vector<128x512xbf16>, vector<8x512xf32> -> vector<8x512xf32>
    %37 = arith.addf %34, %36 : vector<8x512xf32>
    %38 = vector.extract_strided_slice %37 {offsets = [0, 0], sizes = [8, 128], strides = [1, 1]} : vector<8x512xf32> to vector<8x128xf32>
    %cst_20 = arith.constant 5.000000e-01 : f32
    %39 = vector.broadcast %cst_20 : f32 to vector<8x128xf32>
    %40 = arith.mulf %39, %38 : vector<8x128xf32>
    %41 = math.tanh %40 : vector<8x128xf32>
    %cst_21 = arith.constant 5.000000e-01 : f32
    %42 = vector.broadcast %cst_21 : f32 to vector<8x128xf32>
    %43 = arith.mulf %42, %41 : vector<8x128xf32>
    %cst_22 = arith.constant 5.000000e-01 : f32
    %44 = vector.broadcast %cst_22 : f32 to vector<8x128xf32>
    %45 = arith.addf %43, %44 : vector<8x128xf32>
    %46 = vector.extract_strided_slice %37 {offsets = [0, 256], sizes = [8, 128], strides = [1, 1]} : vector<8x512xf32> to vector<8x128xf32>
    %47 = math.tanh %46 : vector<8x128xf32>
    %48 = vector.extract_strided_slice %37 {offsets = [0, 384], sizes = [8, 128], strides = [1, 1]} : vector<8x512xf32> to vector<8x128xf32>
    %cst_23 = arith.constant 5.000000e-01 : f32
    %49 = vector.broadcast %cst_23 : f32 to vector<8x128xf32>
    %50 = arith.mulf %49, %48 : vector<8x128xf32>
    %51 = math.tanh %50 : vector<8x128xf32>
    %cst_24 = arith.constant 5.000000e-01 : f32
    %52 = vector.broadcast %cst_24 : f32 to vector<8x128xf32>
    %53 = arith.mulf %52, %51 : vector<8x128xf32>
    %cst_25 = arith.constant 5.000000e-01 : f32
    %54 = vector.broadcast %cst_25 : f32 to vector<8x128xf32>
    %55 = arith.addf %53, %54 : vector<8x128xf32>
    %56 = vector.extract_strided_slice %37 {offsets = [0, 128], sizes = [8, 128], strides = [1, 1]} : vector<8x512xf32> to vector<8x128xf32>
    %cst_26 = arith.constant 5.000000e-01 : f32
    %57 = vector.broadcast %cst_26 : f32 to vector<8x128xf32>
    %58 = arith.mulf %57, %56 : vector<8x128xf32>
    %59 = math.tanh %58 : vector<8x128xf32>
    %cst_27 = arith.constant 5.000000e-01 : f32
    %60 = vector.broadcast %cst_27 : f32 to vector<8x128xf32>
    %61 = arith.mulf %60, %59 : vector<8x128xf32>
    %cst_28 = arith.constant 5.000000e-01 : f32
    %62 = vector.broadcast %cst_28 : f32 to vector<8x128xf32>
    %63 = arith.addf %61, %62 : vector<8x128xf32>
    %64 = arith.mulf %63, %28 : vector<8x128xf32>
    %65 = arith.mulf %45, %47 : vector<8x128xf32>
    %66 = arith.addf %64, %65 : vector<8x128xf32>
    %67 = math.tanh %66 : vector<8x128xf32>
    %68 = arith.mulf %55, %67 : vector<8x128xf32>
    %c2_i32 = arith.constant 2 : i32
    %c8_i32_29 = arith.constant 8 : i32
    %69 = arith.muli %c2_i32, %c8_i32_29 : i32
    %70 = tpu.assume_multiple %69, 8 : i32
    %71 = arith.index_cast %70 : i32 to index
    %c0_30 = arith.constant 0 : index
    %72 = vector.load %arg8[%71, %c0_30] : memref<224x512xf32, #tpu.memory_space<vmem>>, vector<8x512xf32>
    %73 = arith.truncf %68 : vector<8x128xf32> to vector<8x128xbf16>
    %cst_31 = arith.constant dense<0.000000e+00> : vector<8x512xf32>
    %74 = tpu.matmul %73, %8, %cst_31 {dimension_numbers = #tpu.dot_dimension_numbers<[1], [0], [0], [1], [0, 0, 1, 1], [], []>} : vector<8x128xbf16>, vector<128x512xbf16>, vector<8x512xf32> -> vector<8x512xf32>
    %75 = arith.addf %72, %74 : vector<8x512xf32>
    %76 = vector.extract_strided_slice %75 {offsets = [0, 0], sizes = [8, 128], strides = [1, 1]} : vector<8x512xf32> to vector<8x128xf32>
    %cst_32 = arith.constant 5.000000e-01 : f32
    %77 = vector.broadcast %cst_32 : f32 to vector<8x128xf32>
    %78 = arith.mulf %77, %76 : vector<8x128xf32>
    %79 = math.tanh %78 : vector<8x128xf32>
    %cst_33 = arith.constant 5.000000e-01 : f32
    %80 = vector.broadcast %cst_33 : f32 to vector<8x128xf32>
    %81 = arith.mulf %80, %79 : vector<8x128xf32>
    %cst_34 = arith.constant 5.000000e-01 : f32
    %82 = vector.broadcast %cst_34 : f32 to vector<8x128xf32>
    %83 = arith.addf %81, %82 : vector<8x128xf32>
    %84 = vector.extract_strided_slice %75 {offsets = [0, 256], sizes = [8, 128], strides = [1, 1]} : vector<8x512xf32> to vector<8x128xf32>
    %85 = math.tanh %84 : vector<8x128xf32>
    %86 = vector.extract_strided_slice %75 {offsets = [0, 384], sizes = [8, 128], strides = [1, 1]} : vector<8x512xf32> to vector<8x128xf32>
    %cst_35 = arith.constant 5.000000e-01 : f32
    %87 = vector.broadcast %cst_35 : f32 to vector<8x128xf32>
    %88 = arith.mulf %87, %86 : vector<8x128xf32>
    %89 = math.tanh %88 : vector<8x128xf32>
    %cst_36 = arith.constant 5.000000e-01 : f32
    %90 = vector.broadcast %cst_36 : f32 to vector<8x128xf32>
    %91 = arith.mulf %90, %89 : vector<8x128xf32>
    %cst_37 = arith.constant 5.000000e-01 : f32
    %92 = vector.broadcast %cst_37 : f32 to vector<8x128xf32>
    %93 = arith.addf %91, %92 : vector<8x128xf32>
    %94 = vector.extract_strided_slice %75 {offsets = [0, 128], sizes = [8, 128], strides = [1, 1]} : vector<8x512xf32> to vector<8x128xf32>
    %cst_38 = arith.constant 5.000000e-01 : f32
    %95 = vector.broadcast %cst_38 : f32 to vector<8x128xf32>
    %96 = arith.mulf %95, %94 : vector<8x128xf32>
    %97 = math.tanh %96 : vector<8x128xf32>
    %cst_39 = arith.constant 5.000000e-01 : f32
    %98 = vector.broadcast %cst_39 : f32 to vector<8x128xf32>
    %99 = arith.mulf %98, %97 : vector<8x128xf32>
    %cst_40 = arith.constant 5.000000e-01 : f32
    %100 = vector.broadcast %cst_40 : f32 to vector<8x128xf32>
    %101 = arith.addf %99, %100 : vector<8x128xf32>
    %102 = arith.mulf %101, %66 : vector<8x128xf32>
    %103 = arith.mulf %83, %85 : vector<8x128xf32>
    %104 = arith.addf %102, %103 : vector<8x128xf32>
    %105 = math.tanh %104 : vector<8x128xf32>
    %106 = arith.mulf %93, %105 : vector<8x128xf32>
    %c3_i32 = arith.constant 3 : i32
    %c8_i32_41 = arith.constant 8 : i32
    %107 = arith.muli %c3_i32, %c8_i32_41 : i32
    %108 = tpu.assume_multiple %107, 8 : i32
    %109 = arith.index_cast %108 : i32 to index
    %c0_42 = arith.constant 0 : index
    %110 = vector.load %arg8[%109, %c0_42] : memref<224x512xf32, #tpu.memory_space<vmem>>, vector<8x512xf32>
    %111 = arith.truncf %106 : vector<8x128xf32> to vector<8x128xbf16>
    %cst_43 = arith.constant dense<0.000000e+00> : vector<8x512xf32>
    %112 = tpu.matmul %111, %8, %cst_43 {dimension_numbers = #tpu.dot_dimension_numbers<[1], [0], [0], [1], [0, 0, 1, 1], [], []>} : vector<8x128xbf16>, vector<128x512xbf16>, vector<8x512xf32> -> vector<8x512xf32>
    %113 = arith.addf %110, %112 : vector<8x512xf32>
    %114 = vector.extract_strided_slice %113 {offsets = [0, 0], sizes = [8, 128], strides = [1, 1]} : vector<8x512xf32> to vector<8x128xf32>
    %cst_44 = arith.constant 5.000000e-01 : f32
    %115 = vector.broadcast %cst_44 : f32 to vector<8x128xf32>
    %116 = arith.mulf %115, %114 : vector<8x128xf32>
    %117 = math.tanh %116 : vector<8x128xf32>
    %cst_45 = arith.constant 5.000000e-01 : f32
    %118 = vector.broadcast %cst_45 : f32 to vector<8x128xf32>
    %119 = arith.mulf %118, %117 : vector<8x128xf32>
    %cst_46 = arith.constant 5.000000e-01 : f32
    %120 = vector.broadcast %cst_46 : f32 to vector<8x128xf32>
    %121 = arith.addf %119, %120 : vector<8x128xf32>
    %122 = vector.extract_strided_slice %113 {offsets = [0, 256], sizes = [8, 128], strides = [1, 1]} : vector<8x512xf32> to vector<8x128xf32>
    %123 = math.tanh %122 : vector<8x128xf32>
    %124 = vector.extract_strided_slice %113 {offsets = [0, 384], sizes = [8, 128], strides = [1, 1]} : vector<8x512xf32> to vector<8x128xf32>
    %cst_47 = arith.constant 5.000000e-01 : f32
    %125 = vector.broadcast %cst_47 : f32 to vector<8x128xf32>
    %126 = arith.mulf %125, %124 : vector<8x128xf32>
    %127 = math.tanh %126 : vector<8x128xf32>
    %cst_48 = arith.constant 5.000000e-01 : f32
    %128 = vector.broadcast %cst_48 : f32 to vector<8x128xf32>
    %129 = arith.mulf %128, %127 : vector<8x128xf32>
    %cst_49 = arith.constant 5.000000e-01 : f32
    %130 = vector.broadcast %cst_49 : f32 to vector<8x128xf32>
    %131 = arith.addf %129, %130 : vector<8x128xf32>
    %132 = vector.extract_strided_slice %113 {offsets = [0, 128], sizes = [8, 128], strides = [1, 1]} : vector<8x512xf32> to vector<8x128xf32>
    %cst_50 = arith.constant 5.000000e-01 : f32
    %133 = vector.broadcast %cst_50 : f32 to vector<8x128xf32>
    %134 = arith.mulf %133, %132 : vector<8x128xf32>
    %135 = math.tanh %134 : vector<8x128xf32>
    %cst_51 = arith.constant 5.000000e-01 : f32
    %136 = vector.broadcast %cst_51 : f32 to vector<8x128xf32>
    %137 = arith.mulf %136, %135 : vector<8x128xf32>
    %cst_52 = arith.constant 5.000000e-01 : f32
    %138 = vector.broadcast %cst_52 : f32 to vector<8x128xf32>
    %139 = arith.addf %137, %138 : vector<8x128xf32>
    %140 = arith.mulf %139, %104 : vector<8x128xf32>
    %141 = arith.mulf %121, %123 : vector<8x128xf32>
    %142 = arith.addf %140, %141 : vector<8x128xf32>
    %143 = math.tanh %142 : vector<8x128xf32>
    %144 = arith.mulf %131, %143 : vector<8x128xf32>
    %c4_i32 = arith.constant 4 : i32
    %c8_i32_53 = arith.constant 8 : i32
    %145 = arith.muli %c4_i32, %c8_i32_53 : i32
    %146 = tpu.assume_multiple %145, 8 : i32
    %147 = arith.index_cast %146 : i32 to index
    %c0_54 = arith.constant 0 : index
    %148 = vector.load %arg8[%147, %c0_54] : memref<224x512xf32, #tpu.memory_space<vmem>>, vector<8x512xf32>
    %149 = arith.truncf %144 : vector<8x128xf32> to vector<8x128xbf16>
    %cst_55 = arith.constant dense<0.000000e+00> : vector<8x512xf32>
    %150 = tpu.matmul %149, %8, %cst_55 {dimension_numbers = #tpu.dot_dimension_numbers<[1], [0], [0], [1], [0, 0, 1, 1], [], []>} : vector<8x128xbf16>, vector<128x512xbf16>, vector<8x512xf32> -> vector<8x512xf32>
    %151 = arith.addf %148, %150 : vector<8x512xf32>
    %152 = vector.extract_strided_slice %151 {offsets = [0, 0], sizes = [8, 128], strides = [1, 1]} : vector<8x512xf32> to vector<8x128xf32>
    %cst_56 = arith.constant 5.000000e-01 : f32
    %153 = vector.broadcast %cst_56 : f32 to vector<8x128xf32>
    %154 = arith.mulf %153, %152 : vector<8x128xf32>
    %155 = math.tanh %154 : vector<8x128xf32>
    %cst_57 = arith.constant 5.000000e-01 : f32
    %156 = vector.broadcast %cst_57 : f32 to vector<8x128xf32>
    %157 = arith.mulf %156, %155 : vector<8x128xf32>
    %cst_58 = arith.constant 5.000000e-01 : f32
    %158 = vector.broadcast %cst_58 : f32 to vector<8x128xf32>
    %159 = arith.addf %157, %158 : vector<8x128xf32>
    %160 = vector.extract_strided_slice %151 {offsets = [0, 256], sizes = [8, 128], strides = [1, 1]} : vector<8x512xf32> to vector<8x128xf32>
    %161 = math.tanh %160 : vector<8x128xf32>
    %162 = vector.extract_strided_slice %151 {offsets = [0, 384], sizes = [8, 128], strides = [1, 1]} : vector<8x512xf32> to vector<8x128xf32>
    %cst_59 = arith.constant 5.000000e-01 : f32
    %163 = vector.broadcast %cst_59 : f32 to vector<8x128xf32>
    %164 = arith.mulf %163, %162 : vector<8x128xf32>
    %165 = math.tanh %164 : vector<8x128xf32>
    %cst_60 = arith.constant 5.000000e-01 : f32
    %166 = vector.broadcast %cst_60 : f32 to vector<8x128xf32>
    %167 = arith.mulf %166, %165 : vector<8x128xf32>
    %cst_61 = arith.constant 5.000000e-01 : f32
    %168 = vector.broadcast %cst_61 : f32 to vector<8x128xf32>
    %169 = arith.addf %167, %168 : vector<8x128xf32>
    %170 = vector.extract_strided_slice %151 {offsets = [0, 128], sizes = [8, 128], strides = [1, 1]} : vector<8x512xf32> to vector<8x128xf32>
    %cst_62 = arith.constant 5.000000e-01 : f32
    %171 = vector.broadcast %cst_62 : f32 to vector<8x128xf32>
    %172 = arith.mulf %171, %170 : vector<8x128xf32>
    %173 = math.tanh %172 : vector<8x128xf32>
    %cst_63 = arith.constant 5.000000e-01 : f32
    %174 = vector.broadcast %cst_63 : f32 to vector<8x128xf32>
    %175 = arith.mulf %174, %173 : vector<8x128xf32>
    %cst_64 = arith.constant 5.000000e-01 : f32
    %176 = vector.broadcast %cst_64 : f32 to vector<8x128xf32>
    %177 = arith.addf %175, %176 : vector<8x128xf32>
    %178 = arith.mulf %177, %142 : vector<8x128xf32>
    %179 = arith.mulf %159, %161 : vector<8x128xf32>
    %180 = arith.addf %178, %179 : vector<8x128xf32>
    %181 = math.tanh %180 : vector<8x128xf32>
    %182 = arith.mulf %169, %181 : vector<8x128xf32>
    %c5_i32 = arith.constant 5 : i32
    %c8_i32_65 = arith.constant 8 : i32
    %183 = arith.muli %c5_i32, %c8_i32_65 : i32
    %184 = tpu.assume_multiple %183, 8 : i32
    %185 = arith.index_cast %184 : i32 to index
    %c0_66 = arith.constant 0 : index
    %186 = vector.load %arg8[%185, %c0_66] : memref<224x512xf32, #tpu.memory_space<vmem>>, vector<8x512xf32>
    %187 = arith.truncf %182 : vector<8x128xf32> to vector<8x128xbf16>
    %cst_67 = arith.constant dense<0.000000e+00> : vector<8x512xf32>
    %188 = tpu.matmul %187, %8, %cst_67 {dimension_numbers = #tpu.dot_dimension_numbers<[1], [0], [0], [1], [0, 0, 1, 1], [], []>} : vector<8x128xbf16>, vector<128x512xbf16>, vector<8x512xf32> -> vector<8x512xf32>
    %189 = arith.addf %186, %188 : vector<8x512xf32>
    %190 = vector.extract_strided_slice %189 {offsets = [0, 0], sizes = [8, 128], strides = [1, 1]} : vector<8x512xf32> to vector<8x128xf32>
    %cst_68 = arith.constant 5.000000e-01 : f32
    %191 = vector.broadcast %cst_68 : f32 to vector<8x128xf32>
    %192 = arith.mulf %191, %190 : vector<8x128xf32>
    %193 = math.tanh %192 : vector<8x128xf32>
    %cst_69 = arith.constant 5.000000e-01 : f32
    %194 = vector.broadcast %cst_69 : f32 to vector<8x128xf32>
    %195 = arith.mulf %194, %193 : vector<8x128xf32>
    %cst_70 = arith.constant 5.000000e-01 : f32
    %196 = vector.broadcast %cst_70 : f32 to vector<8x128xf32>
    %197 = arith.addf %195, %196 : vector<8x128xf32>
    %198 = vector.extract_strided_slice %189 {offsets = [0, 256], sizes = [8, 128], strides = [1, 1]} : vector<8x512xf32> to vector<8x128xf32>
    %199 = math.tanh %198 : vector<8x128xf32>
    %200 = vector.extract_strided_slice %189 {offsets = [0, 384], sizes = [8, 128], strides = [1, 1]} : vector<8x512xf32> to vector<8x128xf32>
    %cst_71 = arith.constant 5.000000e-01 : f32
    %201 = vector.broadcast %cst_71 : f32 to vector<8x128xf32>
    %202 = arith.mulf %201, %200 : vector<8x128xf32>
    %203 = math.tanh %202 : vector<8x128xf32>
    %cst_72 = arith.constant 5.000000e-01 : f32
    %204 = vector.broadcast %cst_72 : f32 to vector<8x128xf32>
    %205 = arith.mulf %204, %203 : vector<8x128xf32>
    %cst_73 = arith.constant 5.000000e-01 : f32
    %206 = vector.broadcast %cst_73 : f32 to vector<8x128xf32>
    %207 = arith.addf %205, %206 : vector<8x128xf32>
    %208 = vector.extract_strided_slice %189 {offsets = [0, 128], sizes = [8, 128], strides = [1, 1]} : vector<8x512xf32> to vector<8x128xf32>
    %cst_74 = arith.constant 5.000000e-01 : f32
    %209 = vector.broadcast %cst_74 : f32 to vector<8x128xf32>
    %210 = arith.mulf %209, %208 : vector<8x128xf32>
    %211 = math.tanh %210 : vector<8x128xf32>
    %cst_75 = arith.constant 5.000000e-01 : f32
    %212 = vector.broadcast %cst_75 : f32 to vector<8x128xf32>
    %213 = arith.mulf %212, %211 : vector<8x128xf32>
    %cst_76 = arith.constant 5.000000e-01 : f32
    %214 = vector.broadcast %cst_76 : f32 to vector<8x128xf32>
    %215 = arith.addf %213, %214 : vector<8x128xf32>
    %216 = arith.mulf %215, %180 : vector<8x128xf32>
    %217 = arith.mulf %197, %199 : vector<8x128xf32>
    %218 = arith.addf %216, %217 : vector<8x128xf32>
    %219 = math.tanh %218 : vector<8x128xf32>
    %220 = arith.mulf %207, %219 : vector<8x128xf32>
    %c6_i32 = arith.constant 6 : i32
    %c8_i32_77 = arith.constant 8 : i32
    %221 = arith.muli %c6_i32, %c8_i32_77 : i32
    %222 = tpu.assume_multiple %221, 8 : i32
    %223 = arith.index_cast %222 : i32 to index
    %c0_78 = arith.constant 0 : index
    %224 = vector.load %arg8[%223, %c0_78] : memref<224x512xf32, #tpu.memory_space<vmem>>, vector<8x512xf32>
    %225 = arith.truncf %220 : vector<8x128xf32> to vector<8x128xbf16>
    %cst_79 = arith.constant dense<0.000000e+00> : vector<8x512xf32>
    %226 = tpu.matmul %225, %8, %cst_79 {dimension_numbers = #tpu.dot_dimension_numbers<[1], [0], [0], [1], [0, 0, 1, 1], [], []>} : vector<8x128xbf16>, vector<128x512xbf16>, vector<8x512xf32> -> vector<8x512xf32>
    %227 = arith.addf %224, %226 : vector<8x512xf32>
    %228 = vector.extract_strided_slice %227 {offsets = [0, 0], sizes = [8, 128], strides = [1, 1]} : vector<8x512xf32> to vector<8x128xf32>
    %cst_80 = arith.constant 5.000000e-01 : f32
    %229 = vector.broadcast %cst_80 : f32 to vector<8x128xf32>
    %230 = arith.mulf %229, %228 : vector<8x128xf32>
    %231 = math.tanh %230 : vector<8x128xf32>
    %cst_81 = arith.constant 5.000000e-01 : f32
    %232 = vector.broadcast %cst_81 : f32 to vector<8x128xf32>
    %233 = arith.mulf %232, %231 : vector<8x128xf32>
    %cst_82 = arith.constant 5.000000e-01 : f32
    %234 = vector.broadcast %cst_82 : f32 to vector<8x128xf32>
    %235 = arith.addf %233, %234 : vector<8x128xf32>
    %236 = vector.extract_strided_slice %227 {offsets = [0, 256], sizes = [8, 128], strides = [1, 1]} : vector<8x512xf32> to vector<8x128xf32>
    %237 = math.tanh %236 : vector<8x128xf32>
    %238 = vector.extract_strided_slice %227 {offsets = [0, 384], sizes = [8, 128], strides = [1, 1]} : vector<8x512xf32> to vector<8x128xf32>
    %cst_83 = arith.constant 5.000000e-01 : f32
    %239 = vector.broadcast %cst_83 : f32 to vector<8x128xf32>
    %240 = arith.mulf %239, %238 : vector<8x128xf32>
    %241 = math.tanh %240 : vector<8x128xf32>
    %cst_84 = arith.constant 5.000000e-01 : f32
    %242 = vector.broadcast %cst_84 : f32 to vector<8x128xf32>
    %243 = arith.mulf %242, %241 : vector<8x128xf32>
    %cst_85 = arith.constant 5.000000e-01 : f32
    %244 = vector.broadcast %cst_85 : f32 to vector<8x128xf32>
    %245 = arith.addf %243, %244 : vector<8x128xf32>
    %246 = vector.extract_strided_slice %227 {offsets = [0, 128], sizes = [8, 128], strides = [1, 1]} : vector<8x512xf32> to vector<8x128xf32>
    %cst_86 = arith.constant 5.000000e-01 : f32
    %247 = vector.broadcast %cst_86 : f32 to vector<8x128xf32>
    %248 = arith.mulf %247, %246 : vector<8x128xf32>
    %249 = math.tanh %248 : vector<8x128xf32>
    %cst_87 = arith.constant 5.000000e-01 : f32
    %250 = vector.broadcast %cst_87 : f32 to vector<8x128xf32>
    %251 = arith.mulf %250, %249 : vector<8x128xf32>
    %cst_88 = arith.constant 5.000000e-01 : f32
    %252 = vector.broadcast %cst_88 : f32 to vector<8x128xf32>
    %253 = arith.addf %251, %252 : vector<8x128xf32>
    %254 = arith.mulf %253, %218 : vector<8x128xf32>
    %255 = arith.mulf %235, %237 : vector<8x128xf32>
    %256 = arith.addf %254, %255 : vector<8x128xf32>
    %257 = math.tanh %256 : vector<8x128xf32>
    %258 = arith.mulf %245, %257 : vector<8x128xf32>
    %c7_i32 = arith.constant 7 : i32
    %c8_i32_89 = arith.constant 8 : i32
    %259 = arith.muli %c7_i32, %c8_i32_89 : i32
    %260 = tpu.assume_multiple %259, 8 : i32
    %261 = arith.index_cast %260 : i32 to index
    %c0_90 = arith.constant 0 : index
    %262 = vector.load %arg8[%261, %c0_90] : memref<224x512xf32, #tpu.memory_space<vmem>>, vector<8x512xf32>
    %263 = arith.truncf %258 : vector<8x128xf32> to vector<8x128xbf16>
    %cst_91 = arith.constant dense<0.000000e+00> : vector<8x512xf32>
    %264 = tpu.matmul %263, %8, %cst_91 {dimension_numbers = #tpu.dot_dimension_numbers<[1], [0], [0], [1], [0, 0, 1, 1], [], []>} : vector<8x128xbf16>, vector<128x512xbf16>, vector<8x512xf32> -> vector<8x512xf32>
    %265 = arith.addf %262, %264 : vector<8x512xf32>
    %266 = vector.extract_strided_slice %265 {offsets = [0, 0], sizes = [8, 128], strides = [1, 1]} : vector<8x512xf32> to vector<8x128xf32>
    %cst_92 = arith.constant 5.000000e-01 : f32
    %267 = vector.broadcast %cst_92 : f32 to vector<8x128xf32>
    %268 = arith.mulf %267, %266 : vector<8x128xf32>
    %269 = math.tanh %268 : vector<8x128xf32>
    %cst_93 = arith.constant 5.000000e-01 : f32
    %270 = vector.broadcast %cst_93 : f32 to vector<8x128xf32>
    %271 = arith.mulf %270, %269 : vector<8x128xf32>
    %cst_94 = arith.constant 5.000000e-01 : f32
    %272 = vector.broadcast %cst_94 : f32 to vector<8x128xf32>
    %273 = arith.addf %271, %272 : vector<8x128xf32>
    %274 = vector.extract_strided_slice %265 {offsets = [0, 256], sizes = [8, 128], strides = [1, 1]} : vector<8x512xf32> to vector<8x128xf32>
    %275 = math.tanh %274 : vector<8x128xf32>
    %276 = vector.extract_strided_slice %265 {offsets = [0, 384], sizes = [8, 128], strides = [1, 1]} : vector<8x512xf32> to vector<8x128xf32>
    %cst_95 = arith.constant 5.000000e-01 : f32
    %277 = vector.broadcast %cst_95 : f32 to vector<8x128xf32>
    %278 = arith.mulf %277, %276 : vector<8x128xf32>
    %279 = math.tanh %278 : vector<8x128xf32>
    %cst_96 = arith.constant 5.000000e-01 : f32
    %280 = vector.broadcast %cst_96 : f32 to vector<8x128xf32>
    %281 = arith.mulf %280, %279 : vector<8x128xf32>
    %cst_97 = arith.constant 5.000000e-01 : f32
    %282 = vector.broadcast %cst_97 : f32 to vector<8x128xf32>
    %283 = arith.addf %281, %282 : vector<8x128xf32>
    %284 = vector.extract_strided_slice %265 {offsets = [0, 128], sizes = [8, 128], strides = [1, 1]} : vector<8x512xf32> to vector<8x128xf32>
    %cst_98 = arith.constant 5.000000e-01 : f32
    %285 = vector.broadcast %cst_98 : f32 to vector<8x128xf32>
    %286 = arith.mulf %285, %284 : vector<8x128xf32>
    %287 = math.tanh %286 : vector<8x128xf32>
    %cst_99 = arith.constant 5.000000e-01 : f32
    %288 = vector.broadcast %cst_99 : f32 to vector<8x128xf32>
    %289 = arith.mulf %288, %287 : vector<8x128xf32>
    %cst_100 = arith.constant 5.000000e-01 : f32
    %290 = vector.broadcast %cst_100 : f32 to vector<8x128xf32>
    %291 = arith.addf %289, %290 : vector<8x128xf32>
    %292 = arith.mulf %291, %256 : vector<8x128xf32>
    %293 = arith.mulf %273, %275 : vector<8x128xf32>
    %294 = arith.addf %292, %293 : vector<8x128xf32>
    %295 = math.tanh %294 : vector<8x128xf32>
    %296 = arith.mulf %283, %295 : vector<8x128xf32>
    %c8_i32_101 = arith.constant 8 : i32
    %c8_i32_102 = arith.constant 8 : i32
    %297 = arith.muli %c8_i32_101, %c8_i32_102 : i32
    %298 = tpu.assume_multiple %297, 8 : i32
    %299 = arith.index_cast %298 : i32 to index
    %c0_103 = arith.constant 0 : index
    %300 = vector.load %arg8[%299, %c0_103] : memref<224x512xf32, #tpu.memory_space<vmem>>, vector<8x512xf32>
    %301 = arith.truncf %296 : vector<8x128xf32> to vector<8x128xbf16>
    %cst_104 = arith.constant dense<0.000000e+00> : vector<8x512xf32>
    %302 = tpu.matmul %301, %8, %cst_104 {dimension_numbers = #tpu.dot_dimension_numbers<[1], [0], [0], [1], [0, 0, 1, 1], [], []>} : vector<8x128xbf16>, vector<128x512xbf16>, vector<8x512xf32> -> vector<8x512xf32>
    %303 = arith.addf %300, %302 : vector<8x512xf32>
    %304 = vector.extract_strided_slice %303 {offsets = [0, 0], sizes = [8, 128], strides = [1, 1]} : vector<8x512xf32> to vector<8x128xf32>
    %cst_105 = arith.constant 5.000000e-01 : f32
    %305 = vector.broadcast %cst_105 : f32 to vector<8x128xf32>
    %306 = arith.mulf %305, %304 : vector<8x128xf32>
    %307 = math.tanh %306 : vector<8x128xf32>
    %cst_106 = arith.constant 5.000000e-01 : f32
    %308 = vector.broadcast %cst_106 : f32 to vector<8x128xf32>
    %309 = arith.mulf %308, %307 : vector<8x128xf32>
    %cst_107 = arith.constant 5.000000e-01 : f32
    %310 = vector.broadcast %cst_107 : f32 to vector<8x128xf32>
    %311 = arith.addf %309, %310 : vector<8x128xf32>
    %312 = vector.extract_strided_slice %303 {offsets = [0, 256], sizes = [8, 128], strides = [1, 1]} : vector<8x512xf32> to vector<8x128xf32>
    %313 = math.tanh %312 : vector<8x128xf32>
    %314 = vector.extract_strided_slice %303 {offsets = [0, 384], sizes = [8, 128], strides = [1, 1]} : vector<8x512xf32> to vector<8x128xf32>
    %cst_108 = arith.constant 5.000000e-01 : f32
    %315 = vector.broadcast %cst_108 : f32 to vector<8x128xf32>
    %316 = arith.mulf %315, %314 : vector<8x128xf32>
    %317 = math.tanh %316 : vector<8x128xf32>
    %cst_109 = arith.constant 5.000000e-01 : f32
    %318 = vector.broadcast %cst_109 : f32 to vector<8x128xf32>
    %319 = arith.mulf %318, %317 : vector<8x128xf32>
    %cst_110 = arith.constant 5.000000e-01 : f32
    %320 = vector.broadcast %cst_110 : f32 to vector<8x128xf32>
    %321 = arith.addf %319, %320 : vector<8x128xf32>
    %322 = vector.extract_strided_slice %303 {offsets = [0, 128], sizes = [8, 128], strides = [1, 1]} : vector<8x512xf32> to vector<8x128xf32>
    %cst_111 = arith.constant 5.000000e-01 : f32
    %323 = vector.broadcast %cst_111 : f32 to vector<8x128xf32>
    %324 = arith.mulf %323, %322 : vector<8x128xf32>
    %325 = math.tanh %324 : vector<8x128xf32>
    %cst_112 = arith.constant 5.000000e-01 : f32
    %326 = vector.broadcast %cst_112 : f32 to vector<8x128xf32>
    %327 = arith.mulf %326, %325 : vector<8x128xf32>
    %cst_113 = arith.constant 5.000000e-01 : f32
    %328 = vector.broadcast %cst_113 : f32 to vector<8x128xf32>
    %329 = arith.addf %327, %328 : vector<8x128xf32>
    %330 = arith.mulf %329, %294 : vector<8x128xf32>
    %331 = arith.mulf %311, %313 : vector<8x128xf32>
    %332 = arith.addf %330, %331 : vector<8x128xf32>
    %333 = math.tanh %332 : vector<8x128xf32>
    %334 = arith.mulf %321, %333 : vector<8x128xf32>
    %c9_i32 = arith.constant 9 : i32
    %c8_i32_114 = arith.constant 8 : i32
    %335 = arith.muli %c9_i32, %c8_i32_114 : i32
    %336 = tpu.assume_multiple %335, 8 : i32
    %337 = arith.index_cast %336 : i32 to index
    %c0_115 = arith.constant 0 : index
    %338 = vector.load %arg8[%337, %c0_115] : memref<224x512xf32, #tpu.memory_space<vmem>>, vector<8x512xf32>
    %339 = arith.truncf %334 : vector<8x128xf32> to vector<8x128xbf16>
    %cst_116 = arith.constant dense<0.000000e+00> : vector<8x512xf32>
    %340 = tpu.matmul %339, %8, %cst_116 {dimension_numbers = #tpu.dot_dimension_numbers<[1], [0], [0], [1], [0, 0, 1, 1], [], []>} : vector<8x128xbf16>, vector<128x512xbf16>, vector<8x512xf32> -> vector<8x512xf32>
    %341 = arith.addf %338, %340 : vector<8x512xf32>
    %342 = vector.extract_strided_slice %341 {offsets = [0, 0], sizes = [8, 128], strides = [1, 1]} : vector<8x512xf32> to vector<8x128xf32>
    %cst_117 = arith.constant 5.000000e-01 : f32
    %343 = vector.broadcast %cst_117 : f32 to vector<8x128xf32>
    %344 = arith.mulf %343, %342 : vector<8x128xf32>
    %345 = math.tanh %344 : vector<8x128xf32>
    %cst_118 = arith.constant 5.000000e-01 : f32
    %346 = vector.broadcast %cst_118 : f32 to vector<8x128xf32>
    %347 = arith.mulf %346, %345 : vector<8x128xf32>
    %cst_119 = arith.constant 5.000000e-01 : f32
    %348 = vector.broadcast %cst_119 : f32 to vector<8x128xf32>
    %349 = arith.addf %347, %348 : vector<8x128xf32>
    %350 = vector.extract_strided_slice %341 {offsets = [0, 256], sizes = [8, 128], strides = [1, 1]} : vector<8x512xf32> to vector<8x128xf32>
    %351 = math.tanh %350 : vector<8x128xf32>
    %352 = vector.extract_strided_slice %341 {offsets = [0, 384], sizes = [8, 128], strides = [1, 1]} : vector<8x512xf32> to vector<8x128xf32>
    %cst_120 = arith.constant 5.000000e-01 : f32
    %353 = vector.broadcast %cst_120 : f32 to vector<8x128xf32>
    %354 = arith.mulf %353, %352 : vector<8x128xf32>
    %355 = math.tanh %354 : vector<8x128xf32>
    %cst_121 = arith.constant 5.000000e-01 : f32
    %356 = vector.broadcast %cst_121 : f32 to vector<8x128xf32>
    %357 = arith.mulf %356, %355 : vector<8x128xf32>
    %cst_122 = arith.constant 5.000000e-01 : f32
    %358 = vector.broadcast %cst_122 : f32 to vector<8x128xf32>
    %359 = arith.addf %357, %358 : vector<8x128xf32>
    %360 = vector.extract_strided_slice %341 {offsets = [0, 128], sizes = [8, 128], strides = [1, 1]} : vector<8x512xf32> to vector<8x128xf32>
    %cst_123 = arith.constant 5.000000e-01 : f32
    %361 = vector.broadcast %cst_123 : f32 to vector<8x128xf32>
    %362 = arith.mulf %361, %360 : vector<8x128xf32>
    %363 = math.tanh %362 : vector<8x128xf32>
    %cst_124 = arith.constant 5.000000e-01 : f32
    %364 = vector.broadcast %cst_124 : f32 to vector<8x128xf32>
    %365 = arith.mulf %364, %363 : vector<8x128xf32>
    %cst_125 = arith.constant 5.000000e-01 : f32
    %366 = vector.broadcast %cst_125 : f32 to vector<8x128xf32>
    %367 = arith.addf %365, %366 : vector<8x128xf32>
    %368 = arith.mulf %367, %332 : vector<8x128xf32>
    %369 = arith.mulf %349, %351 : vector<8x128xf32>
    %370 = arith.addf %368, %369 : vector<8x128xf32>
    %371 = math.tanh %370 : vector<8x128xf32>
    %372 = arith.mulf %359, %371 : vector<8x128xf32>
    %c10_i32 = arith.constant 10 : i32
    %c8_i32_126 = arith.constant 8 : i32
    %373 = arith.muli %c10_i32, %c8_i32_126 : i32
    %374 = tpu.assume_multiple %373, 8 : i32
    %375 = arith.index_cast %374 : i32 to index
    %c0_127 = arith.constant 0 : index
    %376 = vector.load %arg8[%375, %c0_127] : memref<224x512xf32, #tpu.memory_space<vmem>>, vector<8x512xf32>
    %377 = arith.truncf %372 : vector<8x128xf32> to vector<8x128xbf16>
    %cst_128 = arith.constant dense<0.000000e+00> : vector<8x512xf32>
    %378 = tpu.matmul %377, %8, %cst_128 {dimension_numbers = #tpu.dot_dimension_numbers<[1], [0], [0], [1], [0, 0, 1, 1], [], []>} : vector<8x128xbf16>, vector<128x512xbf16>, vector<8x512xf32> -> vector<8x512xf32>
    %379 = arith.addf %376, %378 : vector<8x512xf32>
    %380 = vector.extract_strided_slice %379 {offsets = [0, 0], sizes = [8, 128], strides = [1, 1]} : vector<8x512xf32> to vector<8x128xf32>
    %cst_129 = arith.constant 5.000000e-01 : f32
    %381 = vector.broadcast %cst_129 : f32 to vector<8x128xf32>
    %382 = arith.mulf %381, %380 : vector<8x128xf32>
    %383 = math.tanh %382 : vector<8x128xf32>
    %cst_130 = arith.constant 5.000000e-01 : f32
    %384 = vector.broadcast %cst_130 : f32 to vector<8x128xf32>
    %385 = arith.mulf %384, %383 : vector<8x128xf32>
    %cst_131 = arith.constant 5.000000e-01 : f32
    %386 = vector.broadcast %cst_131 : f32 to vector<8x128xf32>
    %387 = arith.addf %385, %386 : vector<8x128xf32>
    %388 = vector.extract_strided_slice %379 {offsets = [0, 256], sizes = [8, 128], strides = [1, 1]} : vector<8x512xf32> to vector<8x128xf32>
    %389 = math.tanh %388 : vector<8x128xf32>
    %390 = vector.extract_strided_slice %379 {offsets = [0, 384], sizes = [8, 128], strides = [1, 1]} : vector<8x512xf32> to vector<8x128xf32>
    %cst_132 = arith.constant 5.000000e-01 : f32
    %391 = vector.broadcast %cst_132 : f32 to vector<8x128xf32>
    %392 = arith.mulf %391, %390 : vector<8x128xf32>
    %393 = math.tanh %392 : vector<8x128xf32>
    %cst_133 = arith.constant 5.000000e-01 : f32
    %394 = vector.broadcast %cst_133 : f32 to vector<8x128xf32>
    %395 = arith.mulf %394, %393 : vector<8x128xf32>
    %cst_134 = arith.constant 5.000000e-01 : f32
    %396 = vector.broadcast %cst_134 : f32 to vector<8x128xf32>
    %397 = arith.addf %395, %396 : vector<8x128xf32>
    %398 = vector.extract_strided_slice %379 {offsets = [0, 128], sizes = [8, 128], strides = [1, 1]} : vector<8x512xf32> to vector<8x128xf32>
    %cst_135 = arith.constant 5.000000e-01 : f32
    %399 = vector.broadcast %cst_135 : f32 to vector<8x128xf32>
    %400 = arith.mulf %399, %398 : vector<8x128xf32>
    %401 = math.tanh %400 : vector<8x128xf32>
    %cst_136 = arith.constant 5.000000e-01 : f32
    %402 = vector.broadcast %cst_136 : f32 to vector<8x128xf32>
    %403 = arith.mulf %402, %401 : vector<8x128xf32>
    %cst_137 = arith.constant 5.000000e-01 : f32
    %404 = vector.broadcast %cst_137 : f32 to vector<8x128xf32>
    %405 = arith.addf %403, %404 : vector<8x128xf32>
    %406 = arith.mulf %405, %370 : vector<8x128xf32>
    %407 = arith.mulf %387, %389 : vector<8x128xf32>
    %408 = arith.addf %406, %407 : vector<8x128xf32>
    %409 = math.tanh %408 : vector<8x128xf32>
    %410 = arith.mulf %397, %409 : vector<8x128xf32>
    %c11_i32 = arith.constant 11 : i32
    %c8_i32_138 = arith.constant 8 : i32
    %411 = arith.muli %c11_i32, %c8_i32_138 : i32
    %412 = tpu.assume_multiple %411, 8 : i32
    %413 = arith.index_cast %412 : i32 to index
    %c0_139 = arith.constant 0 : index
    %414 = vector.load %arg8[%413, %c0_139] : memref<224x512xf32, #tpu.memory_space<vmem>>, vector<8x512xf32>
    %415 = arith.truncf %410 : vector<8x128xf32> to vector<8x128xbf16>
    %cst_140 = arith.constant dense<0.000000e+00> : vector<8x512xf32>
    %416 = tpu.matmul %415, %8, %cst_140 {dimension_numbers = #tpu.dot_dimension_numbers<[1], [0], [0], [1], [0, 0, 1, 1], [], []>} : vector<8x128xbf16>, vector<128x512xbf16>, vector<8x512xf32> -> vector<8x512xf32>
    %417 = arith.addf %414, %416 : vector<8x512xf32>
    %418 = vector.extract_strided_slice %417 {offsets = [0, 0], sizes = [8, 128], strides = [1, 1]} : vector<8x512xf32> to vector<8x128xf32>
    %cst_141 = arith.constant 5.000000e-01 : f32
    %419 = vector.broadcast %cst_141 : f32 to vector<8x128xf32>
    %420 = arith.mulf %419, %418 : vector<8x128xf32>
    %421 = math.tanh %420 : vector<8x128xf32>
    %cst_142 = arith.constant 5.000000e-01 : f32
    %422 = vector.broadcast %cst_142 : f32 to vector<8x128xf32>
    %423 = arith.mulf %422, %421 : vector<8x128xf32>
    %cst_143 = arith.constant 5.000000e-01 : f32
    %424 = vector.broadcast %cst_143 : f32 to vector<8x128xf32>
    %425 = arith.addf %423, %424 : vector<8x128xf32>
    %426 = vector.extract_strided_slice %417 {offsets = [0, 256], sizes = [8, 128], strides = [1, 1]} : vector<8x512xf32> to vector<8x128xf32>
    %427 = math.tanh %426 : vector<8x128xf32>
    %428 = vector.extract_strided_slice %417 {offsets = [0, 384], sizes = [8, 128], strides = [1, 1]} : vector<8x512xf32> to vector<8x128xf32>
    %cst_144 = arith.constant 5.000000e-01 : f32
    %429 = vector.broadcast %cst_144 : f32 to vector<8x128xf32>
    %430 = arith.mulf %429, %428 : vector<8x128xf32>
    %431 = math.tanh %430 : vector<8x128xf32>
    %cst_145 = arith.constant 5.000000e-01 : f32
    %432 = vector.broadcast %cst_145 : f32 to vector<8x128xf32>
    %433 = arith.mulf %432, %431 : vector<8x128xf32>
    %cst_146 = arith.constant 5.000000e-01 : f32
    %434 = vector.broadcast %cst_146 : f32 to vector<8x128xf32>
    %435 = arith.addf %433, %434 : vector<8x128xf32>
    %436 = vector.extract_strided_slice %417 {offsets = [0, 128], sizes = [8, 128], strides = [1, 1]} : vector<8x512xf32> to vector<8x128xf32>
    %cst_147 = arith.constant 5.000000e-01 : f32
    %437 = vector.broadcast %cst_147 : f32 to vector<8x128xf32>
    %438 = arith.mulf %437, %436 : vector<8x128xf32>
    %439 = math.tanh %438 : vector<8x128xf32>
    %cst_148 = arith.constant 5.000000e-01 : f32
    %440 = vector.broadcast %cst_148 : f32 to vector<8x128xf32>
    %441 = arith.mulf %440, %439 : vector<8x128xf32>
    %cst_149 = arith.constant 5.000000e-01 : f32
    %442 = vector.broadcast %cst_149 : f32 to vector<8x128xf32>
    %443 = arith.addf %441, %442 : vector<8x128xf32>
    %444 = arith.mulf %443, %408 : vector<8x128xf32>
    %445 = arith.mulf %425, %427 : vector<8x128xf32>
    %446 = arith.addf %444, %445 : vector<8x128xf32>
    %447 = math.tanh %446 : vector<8x128xf32>
    %448 = arith.mulf %435, %447 : vector<8x128xf32>
    %c12_i32 = arith.constant 12 : i32
    %c8_i32_150 = arith.constant 8 : i32
    %449 = arith.muli %c12_i32, %c8_i32_150 : i32
    %450 = tpu.assume_multiple %449, 8 : i32
    %451 = arith.index_cast %450 : i32 to index
    %c0_151 = arith.constant 0 : index
    %452 = vector.load %arg8[%451, %c0_151] : memref<224x512xf32, #tpu.memory_space<vmem>>, vector<8x512xf32>
    %453 = arith.truncf %448 : vector<8x128xf32> to vector<8x128xbf16>
    %cst_152 = arith.constant dense<0.000000e+00> : vector<8x512xf32>
    %454 = tpu.matmul %453, %8, %cst_152 {dimension_numbers = #tpu.dot_dimension_numbers<[1], [0], [0], [1], [0, 0, 1, 1], [], []>} : vector<8x128xbf16>, vector<128x512xbf16>, vector<8x512xf32> -> vector<8x512xf32>
    %455 = arith.addf %452, %454 : vector<8x512xf32>
    %456 = vector.extract_strided_slice %455 {offsets = [0, 0], sizes = [8, 128], strides = [1, 1]} : vector<8x512xf32> to vector<8x128xf32>
    %cst_153 = arith.constant 5.000000e-01 : f32
    %457 = vector.broadcast %cst_153 : f32 to vector<8x128xf32>
    %458 = arith.mulf %457, %456 : vector<8x128xf32>
    %459 = math.tanh %458 : vector<8x128xf32>
    %cst_154 = arith.constant 5.000000e-01 : f32
    %460 = vector.broadcast %cst_154 : f32 to vector<8x128xf32>
    %461 = arith.mulf %460, %459 : vector<8x128xf32>
    %cst_155 = arith.constant 5.000000e-01 : f32
    %462 = vector.broadcast %cst_155 : f32 to vector<8x128xf32>
    %463 = arith.addf %461, %462 : vector<8x128xf32>
    %464 = vector.extract_strided_slice %455 {offsets = [0, 256], sizes = [8, 128], strides = [1, 1]} : vector<8x512xf32> to vector<8x128xf32>
    %465 = math.tanh %464 : vector<8x128xf32>
    %466 = vector.extract_strided_slice %455 {offsets = [0, 384], sizes = [8, 128], strides = [1, 1]} : vector<8x512xf32> to vector<8x128xf32>
    %cst_156 = arith.constant 5.000000e-01 : f32
    %467 = vector.broadcast %cst_156 : f32 to vector<8x128xf32>
    %468 = arith.mulf %467, %466 : vector<8x128xf32>
    %469 = math.tanh %468 : vector<8x128xf32>
    %cst_157 = arith.constant 5.000000e-01 : f32
    %470 = vector.broadcast %cst_157 : f32 to vector<8x128xf32>
    %471 = arith.mulf %470, %469 : vector<8x128xf32>
    %cst_158 = arith.constant 5.000000e-01 : f32
    %472 = vector.broadcast %cst_158 : f32 to vector<8x128xf32>
    %473 = arith.addf %471, %472 : vector<8x128xf32>
    %474 = vector.extract_strided_slice %455 {offsets = [0, 128], sizes = [8, 128], strides = [1, 1]} : vector<8x512xf32> to vector<8x128xf32>
    %cst_159 = arith.constant 5.000000e-01 : f32
    %475 = vector.broadcast %cst_159 : f32 to vector<8x128xf32>
    %476 = arith.mulf %475, %474 : vector<8x128xf32>
    %477 = math.tanh %476 : vector<8x128xf32>
    %cst_160 = arith.constant 5.000000e-01 : f32
    %478 = vector.broadcast %cst_160 : f32 to vector<8x128xf32>
    %479 = arith.mulf %478, %477 : vector<8x128xf32>
    %cst_161 = arith.constant 5.000000e-01 : f32
    %480 = vector.broadcast %cst_161 : f32 to vector<8x128xf32>
    %481 = arith.addf %479, %480 : vector<8x128xf32>
    %482 = arith.mulf %481, %446 : vector<8x128xf32>
    %483 = arith.mulf %463, %465 : vector<8x128xf32>
    %484 = arith.addf %482, %483 : vector<8x128xf32>
    %485 = math.tanh %484 : vector<8x128xf32>
    %486 = arith.mulf %473, %485 : vector<8x128xf32>
    %c13_i32 = arith.constant 13 : i32
    %c8_i32_162 = arith.constant 8 : i32
    %487 = arith.muli %c13_i32, %c8_i32_162 : i32
    %488 = tpu.assume_multiple %487, 8 : i32
    %489 = arith.index_cast %488 : i32 to index
    %c0_163 = arith.constant 0 : index
    %490 = vector.load %arg8[%489, %c0_163] : memref<224x512xf32, #tpu.memory_space<vmem>>, vector<8x512xf32>
    %491 = arith.truncf %486 : vector<8x128xf32> to vector<8x128xbf16>
    %cst_164 = arith.constant dense<0.000000e+00> : vector<8x512xf32>
    %492 = tpu.matmul %491, %8, %cst_164 {dimension_numbers = #tpu.dot_dimension_numbers<[1], [0], [0], [1], [0, 0, 1, 1], [], []>} : vector<8x128xbf16>, vector<128x512xbf16>, vector<8x512xf32> -> vector<8x512xf32>
    %493 = arith.addf %490, %492 : vector<8x512xf32>
    %494 = vector.extract_strided_slice %493 {offsets = [0, 0], sizes = [8, 128], strides = [1, 1]} : vector<8x512xf32> to vector<8x128xf32>
    %cst_165 = arith.constant 5.000000e-01 : f32
    %495 = vector.broadcast %cst_165 : f32 to vector<8x128xf32>
    %496 = arith.mulf %495, %494 : vector<8x128xf32>
    %497 = math.tanh %496 : vector<8x128xf32>
    %cst_166 = arith.constant 5.000000e-01 : f32
    %498 = vector.broadcast %cst_166 : f32 to vector<8x128xf32>
    %499 = arith.mulf %498, %497 : vector<8x128xf32>
    %cst_167 = arith.constant 5.000000e-01 : f32
    %500 = vector.broadcast %cst_167 : f32 to vector<8x128xf32>
    %501 = arith.addf %499, %500 : vector<8x128xf32>
    %502 = vector.extract_strided_slice %493 {offsets = [0, 256], sizes = [8, 128], strides = [1, 1]} : vector<8x512xf32> to vector<8x128xf32>
    %503 = math.tanh %502 : vector<8x128xf32>
    %504 = vector.extract_strided_slice %493 {offsets = [0, 384], sizes = [8, 128], strides = [1, 1]} : vector<8x512xf32> to vector<8x128xf32>
    %cst_168 = arith.constant 5.000000e-01 : f32
    %505 = vector.broadcast %cst_168 : f32 to vector<8x128xf32>
    %506 = arith.mulf %505, %504 : vector<8x128xf32>
    %507 = math.tanh %506 : vector<8x128xf32>
    %cst_169 = arith.constant 5.000000e-01 : f32
    %508 = vector.broadcast %cst_169 : f32 to vector<8x128xf32>
    %509 = arith.mulf %508, %507 : vector<8x128xf32>
    %cst_170 = arith.constant 5.000000e-01 : f32
    %510 = vector.broadcast %cst_170 : f32 to vector<8x128xf32>
    %511 = arith.addf %509, %510 : vector<8x128xf32>
    %512 = vector.extract_strided_slice %493 {offsets = [0, 128], sizes = [8, 128], strides = [1, 1]} : vector<8x512xf32> to vector<8x128xf32>
    %cst_171 = arith.constant 5.000000e-01 : f32
    %513 = vector.broadcast %cst_171 : f32 to vector<8x128xf32>
    %514 = arith.mulf %513, %512 : vector<8x128xf32>
    %515 = math.tanh %514 : vector<8x128xf32>
    %cst_172 = arith.constant 5.000000e-01 : f32
    %516 = vector.broadcast %cst_172 : f32 to vector<8x128xf32>
    %517 = arith.mulf %516, %515 : vector<8x128xf32>
    %cst_173 = arith.constant 5.000000e-01 : f32
    %518 = vector.broadcast %cst_173 : f32 to vector<8x128xf32>
    %519 = arith.addf %517, %518 : vector<8x128xf32>
    %520 = arith.mulf %519, %484 : vector<8x128xf32>
    %521 = arith.mulf %501, %503 : vector<8x128xf32>
    %522 = arith.addf %520, %521 : vector<8x128xf32>
    %523 = math.tanh %522 : vector<8x128xf32>
    %524 = arith.mulf %511, %523 : vector<8x128xf32>
    %c14_i32 = arith.constant 14 : i32
    %c8_i32_174 = arith.constant 8 : i32
    %525 = arith.muli %c14_i32, %c8_i32_174 : i32
    %526 = tpu.assume_multiple %525, 8 : i32
    %527 = arith.index_cast %526 : i32 to index
    %c0_175 = arith.constant 0 : index
    %528 = vector.load %arg8[%527, %c0_175] : memref<224x512xf32, #tpu.memory_space<vmem>>, vector<8x512xf32>
    %529 = arith.truncf %524 : vector<8x128xf32> to vector<8x128xbf16>
    %cst_176 = arith.constant dense<0.000000e+00> : vector<8x512xf32>
    %530 = tpu.matmul %529, %8, %cst_176 {dimension_numbers = #tpu.dot_dimension_numbers<[1], [0], [0], [1], [0, 0, 1, 1], [], []>} : vector<8x128xbf16>, vector<128x512xbf16>, vector<8x512xf32> -> vector<8x512xf32>
    %531 = arith.addf %528, %530 : vector<8x512xf32>
    %532 = vector.extract_strided_slice %531 {offsets = [0, 0], sizes = [8, 128], strides = [1, 1]} : vector<8x512xf32> to vector<8x128xf32>
    %cst_177 = arith.constant 5.000000e-01 : f32
    %533 = vector.broadcast %cst_177 : f32 to vector<8x128xf32>
    %534 = arith.mulf %533, %532 : vector<8x128xf32>
    %535 = math.tanh %534 : vector<8x128xf32>
    %cst_178 = arith.constant 5.000000e-01 : f32
    %536 = vector.broadcast %cst_178 : f32 to vector<8x128xf32>
    %537 = arith.mulf %536, %535 : vector<8x128xf32>
    %cst_179 = arith.constant 5.000000e-01 : f32
    %538 = vector.broadcast %cst_179 : f32 to vector<8x128xf32>
    %539 = arith.addf %537, %538 : vector<8x128xf32>
    %540 = vector.extract_strided_slice %531 {offsets = [0, 256], sizes = [8, 128], strides = [1, 1]} : vector<8x512xf32> to vector<8x128xf32>
    %541 = math.tanh %540 : vector<8x128xf32>
    %542 = vector.extract_strided_slice %531 {offsets = [0, 384], sizes = [8, 128], strides = [1, 1]} : vector<8x512xf32> to vector<8x128xf32>
    %cst_180 = arith.constant 5.000000e-01 : f32
    %543 = vector.broadcast %cst_180 : f32 to vector<8x128xf32>
    %544 = arith.mulf %543, %542 : vector<8x128xf32>
    %545 = math.tanh %544 : vector<8x128xf32>
    %cst_181 = arith.constant 5.000000e-01 : f32
    %546 = vector.broadcast %cst_181 : f32 to vector<8x128xf32>
    %547 = arith.mulf %546, %545 : vector<8x128xf32>
    %cst_182 = arith.constant 5.000000e-01 : f32
    %548 = vector.broadcast %cst_182 : f32 to vector<8x128xf32>
    %549 = arith.addf %547, %548 : vector<8x128xf32>
    %550 = vector.extract_strided_slice %531 {offsets = [0, 128], sizes = [8, 128], strides = [1, 1]} : vector<8x512xf32> to vector<8x128xf32>
    %cst_183 = arith.constant 5.000000e-01 : f32
    %551 = vector.broadcast %cst_183 : f32 to vector<8x128xf32>
    %552 = arith.mulf %551, %550 : vector<8x128xf32>
    %553 = math.tanh %552 : vector<8x128xf32>
    %cst_184 = arith.constant 5.000000e-01 : f32
    %554 = vector.broadcast %cst_184 : f32 to vector<8x128xf32>
    %555 = arith.mulf %554, %553 : vector<8x128xf32>
    %cst_185 = arith.constant 5.000000e-01 : f32
    %556 = vector.broadcast %cst_185 : f32 to vector<8x128xf32>
    %557 = arith.addf %555, %556 : vector<8x128xf32>
    %558 = arith.mulf %557, %522 : vector<8x128xf32>
    %559 = arith.mulf %539, %541 : vector<8x128xf32>
    %560 = arith.addf %558, %559 : vector<8x128xf32>
    %561 = math.tanh %560 : vector<8x128xf32>
    %562 = arith.mulf %549, %561 : vector<8x128xf32>
    %c15_i32 = arith.constant 15 : i32
    %c8_i32_186 = arith.constant 8 : i32
    %563 = arith.muli %c15_i32, %c8_i32_186 : i32
    %564 = tpu.assume_multiple %563, 8 : i32
    %565 = arith.index_cast %564 : i32 to index
    %c0_187 = arith.constant 0 : index
    %566 = vector.load %arg8[%565, %c0_187] : memref<224x512xf32, #tpu.memory_space<vmem>>, vector<8x512xf32>
    %567 = arith.truncf %562 : vector<8x128xf32> to vector<8x128xbf16>
    %cst_188 = arith.constant dense<0.000000e+00> : vector<8x512xf32>
    %568 = tpu.matmul %567, %8, %cst_188 {dimension_numbers = #tpu.dot_dimension_numbers<[1], [0], [0], [1], [0, 0, 1, 1], [], []>} : vector<8x128xbf16>, vector<128x512xbf16>, vector<8x512xf32> -> vector<8x512xf32>
    %569 = arith.addf %566, %568 : vector<8x512xf32>
    %570 = vector.extract_strided_slice %569 {offsets = [0, 0], sizes = [8, 128], strides = [1, 1]} : vector<8x512xf32> to vector<8x128xf32>
    %cst_189 = arith.constant 5.000000e-01 : f32
    %571 = vector.broadcast %cst_189 : f32 to vector<8x128xf32>
    %572 = arith.mulf %571, %570 : vector<8x128xf32>
    %573 = math.tanh %572 : vector<8x128xf32>
    %cst_190 = arith.constant 5.000000e-01 : f32
    %574 = vector.broadcast %cst_190 : f32 to vector<8x128xf32>
    %575 = arith.mulf %574, %573 : vector<8x128xf32>
    %cst_191 = arith.constant 5.000000e-01 : f32
    %576 = vector.broadcast %cst_191 : f32 to vector<8x128xf32>
    %577 = arith.addf %575, %576 : vector<8x128xf32>
    %578 = vector.extract_strided_slice %569 {offsets = [0, 256], sizes = [8, 128], strides = [1, 1]} : vector<8x512xf32> to vector<8x128xf32>
    %579 = math.tanh %578 : vector<8x128xf32>
    %580 = vector.extract_strided_slice %569 {offsets = [0, 384], sizes = [8, 128], strides = [1, 1]} : vector<8x512xf32> to vector<8x128xf32>
    %cst_192 = arith.constant 5.000000e-01 : f32
    %581 = vector.broadcast %cst_192 : f32 to vector<8x128xf32>
    %582 = arith.mulf %581, %580 : vector<8x128xf32>
    %583 = math.tanh %582 : vector<8x128xf32>
    %cst_193 = arith.constant 5.000000e-01 : f32
    %584 = vector.broadcast %cst_193 : f32 to vector<8x128xf32>
    %585 = arith.mulf %584, %583 : vector<8x128xf32>
    %cst_194 = arith.constant 5.000000e-01 : f32
    %586 = vector.broadcast %cst_194 : f32 to vector<8x128xf32>
    %587 = arith.addf %585, %586 : vector<8x128xf32>
    %588 = vector.extract_strided_slice %569 {offsets = [0, 128], sizes = [8, 128], strides = [1, 1]} : vector<8x512xf32> to vector<8x128xf32>
    %cst_195 = arith.constant 5.000000e-01 : f32
    %589 = vector.broadcast %cst_195 : f32 to vector<8x128xf32>
    %590 = arith.mulf %589, %588 : vector<8x128xf32>
    %591 = math.tanh %590 : vector<8x128xf32>
    %cst_196 = arith.constant 5.000000e-01 : f32
    %592 = vector.broadcast %cst_196 : f32 to vector<8x128xf32>
    %593 = arith.mulf %592, %591 : vector<8x128xf32>
    %cst_197 = arith.constant 5.000000e-01 : f32
    %594 = vector.broadcast %cst_197 : f32 to vector<8x128xf32>
    %595 = arith.addf %593, %594 : vector<8x128xf32>
    %596 = arith.mulf %595, %560 : vector<8x128xf32>
    %597 = arith.mulf %577, %579 : vector<8x128xf32>
    %598 = arith.addf %596, %597 : vector<8x128xf32>
    %599 = math.tanh %598 : vector<8x128xf32>
    %600 = arith.mulf %587, %599 : vector<8x128xf32>
    %c16_i32 = arith.constant 16 : i32
    %c8_i32_198 = arith.constant 8 : i32
    %601 = arith.muli %c16_i32, %c8_i32_198 : i32
    %602 = tpu.assume_multiple %601, 8 : i32
    %603 = arith.index_cast %602 : i32 to index
    %c0_199 = arith.constant 0 : index
    %604 = vector.load %arg8[%603, %c0_199] : memref<224x512xf32, #tpu.memory_space<vmem>>, vector<8x512xf32>
    %605 = arith.truncf %600 : vector<8x128xf32> to vector<8x128xbf16>
    %cst_200 = arith.constant dense<0.000000e+00> : vector<8x512xf32>
    %606 = tpu.matmul %605, %8, %cst_200 {dimension_numbers = #tpu.dot_dimension_numbers<[1], [0], [0], [1], [0, 0, 1, 1], [], []>} : vector<8x128xbf16>, vector<128x512xbf16>, vector<8x512xf32> -> vector<8x512xf32>
    %607 = arith.addf %604, %606 : vector<8x512xf32>
    %608 = vector.extract_strided_slice %607 {offsets = [0, 0], sizes = [8, 128], strides = [1, 1]} : vector<8x512xf32> to vector<8x128xf32>
    %cst_201 = arith.constant 5.000000e-01 : f32
    %609 = vector.broadcast %cst_201 : f32 to vector<8x128xf32>
    %610 = arith.mulf %609, %608 : vector<8x128xf32>
    %611 = math.tanh %610 : vector<8x128xf32>
    %cst_202 = arith.constant 5.000000e-01 : f32
    %612 = vector.broadcast %cst_202 : f32 to vector<8x128xf32>
    %613 = arith.mulf %612, %611 : vector<8x128xf32>
    %cst_203 = arith.constant 5.000000e-01 : f32
    %614 = vector.broadcast %cst_203 : f32 to vector<8x128xf32>
    %615 = arith.addf %613, %614 : vector<8x128xf32>
    %616 = vector.extract_strided_slice %607 {offsets = [0, 256], sizes = [8, 128], strides = [1, 1]} : vector<8x512xf32> to vector<8x128xf32>
    %617 = math.tanh %616 : vector<8x128xf32>
    %618 = vector.extract_strided_slice %607 {offsets = [0, 384], sizes = [8, 128], strides = [1, 1]} : vector<8x512xf32> to vector<8x128xf32>
    %cst_204 = arith.constant 5.000000e-01 : f32
    %619 = vector.broadcast %cst_204 : f32 to vector<8x128xf32>
    %620 = arith.mulf %619, %618 : vector<8x128xf32>
    %621 = math.tanh %620 : vector<8x128xf32>
    %cst_205 = arith.constant 5.000000e-01 : f32
    %622 = vector.broadcast %cst_205 : f32 to vector<8x128xf32>
    %623 = arith.mulf %622, %621 : vector<8x128xf32>
    %cst_206 = arith.constant 5.000000e-01 : f32
    %624 = vector.broadcast %cst_206 : f32 to vector<8x128xf32>
    %625 = arith.addf %623, %624 : vector<8x128xf32>
    %626 = vector.extract_strided_slice %607 {offsets = [0, 128], sizes = [8, 128], strides = [1, 1]} : vector<8x512xf32> to vector<8x128xf32>
    %cst_207 = arith.constant 5.000000e-01 : f32
    %627 = vector.broadcast %cst_207 : f32 to vector<8x128xf32>
    %628 = arith.mulf %627, %626 : vector<8x128xf32>
    %629 = math.tanh %628 : vector<8x128xf32>
    %cst_208 = arith.constant 5.000000e-01 : f32
    %630 = vector.broadcast %cst_208 : f32 to vector<8x128xf32>
    %631 = arith.mulf %630, %629 : vector<8x128xf32>
    %cst_209 = arith.constant 5.000000e-01 : f32
    %632 = vector.broadcast %cst_209 : f32 to vector<8x128xf32>
    %633 = arith.addf %631, %632 : vector<8x128xf32>
    %634 = arith.mulf %633, %598 : vector<8x128xf32>
    %635 = arith.mulf %615, %617 : vector<8x128xf32>
    %636 = arith.addf %634, %635 : vector<8x128xf32>
    %637 = math.tanh %636 : vector<8x128xf32>
    %638 = arith.mulf %625, %637 : vector<8x128xf32>
    %c17_i32 = arith.constant 17 : i32
    %c8_i32_210 = arith.constant 8 : i32
    %639 = arith.muli %c17_i32, %c8_i32_210 : i32
    %640 = tpu.assume_multiple %639, 8 : i32
    %641 = arith.index_cast %640 : i32 to index
    %c0_211 = arith.constant 0 : index
    %642 = vector.load %arg8[%641, %c0_211] : memref<224x512xf32, #tpu.memory_space<vmem>>, vector<8x512xf32>
    %643 = arith.truncf %638 : vector<8x128xf32> to vector<8x128xbf16>
    %cst_212 = arith.constant dense<0.000000e+00> : vector<8x512xf32>
    %644 = tpu.matmul %643, %8, %cst_212 {dimension_numbers = #tpu.dot_dimension_numbers<[1], [0], [0], [1], [0, 0, 1, 1], [], []>} : vector<8x128xbf16>, vector<128x512xbf16>, vector<8x512xf32> -> vector<8x512xf32>
    %645 = arith.addf %642, %644 : vector<8x512xf32>
    %646 = vector.extract_strided_slice %645 {offsets = [0, 0], sizes = [8, 128], strides = [1, 1]} : vector<8x512xf32> to vector<8x128xf32>
    %cst_213 = arith.constant 5.000000e-01 : f32
    %647 = vector.broadcast %cst_213 : f32 to vector<8x128xf32>
    %648 = arith.mulf %647, %646 : vector<8x128xf32>
    %649 = math.tanh %648 : vector<8x128xf32>
    %cst_214 = arith.constant 5.000000e-01 : f32
    %650 = vector.broadcast %cst_214 : f32 to vector<8x128xf32>
    %651 = arith.mulf %650, %649 : vector<8x128xf32>
    %cst_215 = arith.constant 5.000000e-01 : f32
    %652 = vector.broadcast %cst_215 : f32 to vector<8x128xf32>
    %653 = arith.addf %651, %652 : vector<8x128xf32>
    %654 = vector.extract_strided_slice %645 {offsets = [0, 256], sizes = [8, 128], strides = [1, 1]} : vector<8x512xf32> to vector<8x128xf32>
    %655 = math.tanh %654 : vector<8x128xf32>
    %656 = vector.extract_strided_slice %645 {offsets = [0, 384], sizes = [8, 128], strides = [1, 1]} : vector<8x512xf32> to vector<8x128xf32>
    %cst_216 = arith.constant 5.000000e-01 : f32
    %657 = vector.broadcast %cst_216 : f32 to vector<8x128xf32>
    %658 = arith.mulf %657, %656 : vector<8x128xf32>
    %659 = math.tanh %658 : vector<8x128xf32>
    %cst_217 = arith.constant 5.000000e-01 : f32
    %660 = vector.broadcast %cst_217 : f32 to vector<8x128xf32>
    %661 = arith.mulf %660, %659 : vector<8x128xf32>
    %cst_218 = arith.constant 5.000000e-01 : f32
    %662 = vector.broadcast %cst_218 : f32 to vector<8x128xf32>
    %663 = arith.addf %661, %662 : vector<8x128xf32>
    %664 = vector.extract_strided_slice %645 {offsets = [0, 128], sizes = [8, 128], strides = [1, 1]} : vector<8x512xf32> to vector<8x128xf32>
    %cst_219 = arith.constant 5.000000e-01 : f32
    %665 = vector.broadcast %cst_219 : f32 to vector<8x128xf32>
    %666 = arith.mulf %665, %664 : vector<8x128xf32>
    %667 = math.tanh %666 : vector<8x128xf32>
    %cst_220 = arith.constant 5.000000e-01 : f32
    %668 = vector.broadcast %cst_220 : f32 to vector<8x128xf32>
    %669 = arith.mulf %668, %667 : vector<8x128xf32>
    %cst_221 = arith.constant 5.000000e-01 : f32
    %670 = vector.broadcast %cst_221 : f32 to vector<8x128xf32>
    %671 = arith.addf %669, %670 : vector<8x128xf32>
    %672 = arith.mulf %671, %636 : vector<8x128xf32>
    %673 = arith.mulf %653, %655 : vector<8x128xf32>
    %674 = arith.addf %672, %673 : vector<8x128xf32>
    %675 = math.tanh %674 : vector<8x128xf32>
    %676 = arith.mulf %663, %675 : vector<8x128xf32>
    %c18_i32 = arith.constant 18 : i32
    %c8_i32_222 = arith.constant 8 : i32
    %677 = arith.muli %c18_i32, %c8_i32_222 : i32
    %678 = tpu.assume_multiple %677, 8 : i32
    %679 = arith.index_cast %678 : i32 to index
    %c0_223 = arith.constant 0 : index
    %680 = vector.load %arg8[%679, %c0_223] : memref<224x512xf32, #tpu.memory_space<vmem>>, vector<8x512xf32>
    %681 = arith.truncf %676 : vector<8x128xf32> to vector<8x128xbf16>
    %cst_224 = arith.constant dense<0.000000e+00> : vector<8x512xf32>
    %682 = tpu.matmul %681, %8, %cst_224 {dimension_numbers = #tpu.dot_dimension_numbers<[1], [0], [0], [1], [0, 0, 1, 1], [], []>} : vector<8x128xbf16>, vector<128x512xbf16>, vector<8x512xf32> -> vector<8x512xf32>
    %683 = arith.addf %680, %682 : vector<8x512xf32>
    %684 = vector.extract_strided_slice %683 {offsets = [0, 0], sizes = [8, 128], strides = [1, 1]} : vector<8x512xf32> to vector<8x128xf32>
    %cst_225 = arith.constant 5.000000e-01 : f32
    %685 = vector.broadcast %cst_225 : f32 to vector<8x128xf32>
    %686 = arith.mulf %685, %684 : vector<8x128xf32>
    %687 = math.tanh %686 : vector<8x128xf32>
    %cst_226 = arith.constant 5.000000e-01 : f32
    %688 = vector.broadcast %cst_226 : f32 to vector<8x128xf32>
    %689 = arith.mulf %688, %687 : vector<8x128xf32>
    %cst_227 = arith.constant 5.000000e-01 : f32
    %690 = vector.broadcast %cst_227 : f32 to vector<8x128xf32>
    %691 = arith.addf %689, %690 : vector<8x128xf32>
    %692 = vector.extract_strided_slice %683 {offsets = [0, 256], sizes = [8, 128], strides = [1, 1]} : vector<8x512xf32> to vector<8x128xf32>
    %693 = math.tanh %692 : vector<8x128xf32>
    %694 = vector.extract_strided_slice %683 {offsets = [0, 384], sizes = [8, 128], strides = [1, 1]} : vector<8x512xf32> to vector<8x128xf32>
    %cst_228 = arith.constant 5.000000e-01 : f32
    %695 = vector.broadcast %cst_228 : f32 to vector<8x128xf32>
    %696 = arith.mulf %695, %694 : vector<8x128xf32>
    %697 = math.tanh %696 : vector<8x128xf32>
    %cst_229 = arith.constant 5.000000e-01 : f32
    %698 = vector.broadcast %cst_229 : f32 to vector<8x128xf32>
    %699 = arith.mulf %698, %697 : vector<8x128xf32>
    %cst_230 = arith.constant 5.000000e-01 : f32
    %700 = vector.broadcast %cst_230 : f32 to vector<8x128xf32>
    %701 = arith.addf %699, %700 : vector<8x128xf32>
    %702 = vector.extract_strided_slice %683 {offsets = [0, 128], sizes = [8, 128], strides = [1, 1]} : vector<8x512xf32> to vector<8x128xf32>
    %cst_231 = arith.constant 5.000000e-01 : f32
    %703 = vector.broadcast %cst_231 : f32 to vector<8x128xf32>
    %704 = arith.mulf %703, %702 : vector<8x128xf32>
    %705 = math.tanh %704 : vector<8x128xf32>
    %cst_232 = arith.constant 5.000000e-01 : f32
    %706 = vector.broadcast %cst_232 : f32 to vector<8x128xf32>
    %707 = arith.mulf %706, %705 : vector<8x128xf32>
    %cst_233 = arith.constant 5.000000e-01 : f32
    %708 = vector.broadcast %cst_233 : f32 to vector<8x128xf32>
    %709 = arith.addf %707, %708 : vector<8x128xf32>
    %710 = arith.mulf %709, %674 : vector<8x128xf32>
    %711 = arith.mulf %691, %693 : vector<8x128xf32>
    %712 = arith.addf %710, %711 : vector<8x128xf32>
    %713 = math.tanh %712 : vector<8x128xf32>
    %714 = arith.mulf %701, %713 : vector<8x128xf32>
    %c19_i32 = arith.constant 19 : i32
    %c8_i32_234 = arith.constant 8 : i32
    %715 = arith.muli %c19_i32, %c8_i32_234 : i32
    %716 = tpu.assume_multiple %715, 8 : i32
    %717 = arith.index_cast %716 : i32 to index
    %c0_235 = arith.constant 0 : index
    %718 = vector.load %arg8[%717, %c0_235] : memref<224x512xf32, #tpu.memory_space<vmem>>, vector<8x512xf32>
    %719 = arith.truncf %714 : vector<8x128xf32> to vector<8x128xbf16>
    %cst_236 = arith.constant dense<0.000000e+00> : vector<8x512xf32>
    %720 = tpu.matmul %719, %8, %cst_236 {dimension_numbers = #tpu.dot_dimension_numbers<[1], [0], [0], [1], [0, 0, 1, 1], [], []>} : vector<8x128xbf16>, vector<128x512xbf16>, vector<8x512xf32> -> vector<8x512xf32>
    %721 = arith.addf %718, %720 : vector<8x512xf32>
    %722 = vector.extract_strided_slice %721 {offsets = [0, 0], sizes = [8, 128], strides = [1, 1]} : vector<8x512xf32> to vector<8x128xf32>
    %cst_237 = arith.constant 5.000000e-01 : f32
    %723 = vector.broadcast %cst_237 : f32 to vector<8x128xf32>
    %724 = arith.mulf %723, %722 : vector<8x128xf32>
    %725 = math.tanh %724 : vector<8x128xf32>
    %cst_238 = arith.constant 5.000000e-01 : f32
    %726 = vector.broadcast %cst_238 : f32 to vector<8x128xf32>
    %727 = arith.mulf %726, %725 : vector<8x128xf32>
    %cst_239 = arith.constant 5.000000e-01 : f32
    %728 = vector.broadcast %cst_239 : f32 to vector<8x128xf32>
    %729 = arith.addf %727, %728 : vector<8x128xf32>
    %730 = vector.extract_strided_slice %721 {offsets = [0, 256], sizes = [8, 128], strides = [1, 1]} : vector<8x512xf32> to vector<8x128xf32>
    %731 = math.tanh %730 : vector<8x128xf32>
    %732 = vector.extract_strided_slice %721 {offsets = [0, 384], sizes = [8, 128], strides = [1, 1]} : vector<8x512xf32> to vector<8x128xf32>
    %cst_240 = arith.constant 5.000000e-01 : f32
    %733 = vector.broadcast %cst_240 : f32 to vector<8x128xf32>
    %734 = arith.mulf %733, %732 : vector<8x128xf32>
    %735 = math.tanh %734 : vector<8x128xf32>
    %cst_241 = arith.constant 5.000000e-01 : f32
    %736 = vector.broadcast %cst_241 : f32 to vector<8x128xf32>
    %737 = arith.mulf %736, %735 : vector<8x128xf32>
    %cst_242 = arith.constant 5.000000e-01 : f32
    %738 = vector.broadcast %cst_242 : f32 to vector<8x128xf32>
    %739 = arith.addf %737, %738 : vector<8x128xf32>
    %740 = vector.extract_strided_slice %721 {offsets = [0, 128], sizes = [8, 128], strides = [1, 1]} : vector<8x512xf32> to vector<8x128xf32>
    %cst_243 = arith.constant 5.000000e-01 : f32
    %741 = vector.broadcast %cst_243 : f32 to vector<8x128xf32>
    %742 = arith.mulf %741, %740 : vector<8x128xf32>
    %743 = math.tanh %742 : vector<8x128xf32>
    %cst_244 = arith.constant 5.000000e-01 : f32
    %744 = vector.broadcast %cst_244 : f32 to vector<8x128xf32>
    %745 = arith.mulf %744, %743 : vector<8x128xf32>
    %cst_245 = arith.constant 5.000000e-01 : f32
    %746 = vector.broadcast %cst_245 : f32 to vector<8x128xf32>
    %747 = arith.addf %745, %746 : vector<8x128xf32>
    %748 = arith.mulf %747, %712 : vector<8x128xf32>
    %749 = arith.mulf %729, %731 : vector<8x128xf32>
    %750 = arith.addf %748, %749 : vector<8x128xf32>
    %751 = math.tanh %750 : vector<8x128xf32>
    %752 = arith.mulf %739, %751 : vector<8x128xf32>
    %c20_i32 = arith.constant 20 : i32
    %c8_i32_246 = arith.constant 8 : i32
    %753 = arith.muli %c20_i32, %c8_i32_246 : i32
    %754 = tpu.assume_multiple %753, 8 : i32
    %755 = arith.index_cast %754 : i32 to index
    %c0_247 = arith.constant 0 : index
    %756 = vector.load %arg8[%755, %c0_247] : memref<224x512xf32, #tpu.memory_space<vmem>>, vector<8x512xf32>
    %757 = arith.truncf %752 : vector<8x128xf32> to vector<8x128xbf16>
    %cst_248 = arith.constant dense<0.000000e+00> : vector<8x512xf32>
    %758 = tpu.matmul %757, %8, %cst_248 {dimension_numbers = #tpu.dot_dimension_numbers<[1], [0], [0], [1], [0, 0, 1, 1], [], []>} : vector<8x128xbf16>, vector<128x512xbf16>, vector<8x512xf32> -> vector<8x512xf32>
    %759 = arith.addf %756, %758 : vector<8x512xf32>
    %760 = vector.extract_strided_slice %759 {offsets = [0, 0], sizes = [8, 128], strides = [1, 1]} : vector<8x512xf32> to vector<8x128xf32>
    %cst_249 = arith.constant 5.000000e-01 : f32
    %761 = vector.broadcast %cst_249 : f32 to vector<8x128xf32>
    %762 = arith.mulf %761, %760 : vector<8x128xf32>
    %763 = math.tanh %762 : vector<8x128xf32>
    %cst_250 = arith.constant 5.000000e-01 : f32
    %764 = vector.broadcast %cst_250 : f32 to vector<8x128xf32>
    %765 = arith.mulf %764, %763 : vector<8x128xf32>
    %cst_251 = arith.constant 5.000000e-01 : f32
    %766 = vector.broadcast %cst_251 : f32 to vector<8x128xf32>
    %767 = arith.addf %765, %766 : vector<8x128xf32>
    %768 = vector.extract_strided_slice %759 {offsets = [0, 256], sizes = [8, 128], strides = [1, 1]} : vector<8x512xf32> to vector<8x128xf32>
    %769 = math.tanh %768 : vector<8x128xf32>
    %770 = vector.extract_strided_slice %759 {offsets = [0, 384], sizes = [8, 128], strides = [1, 1]} : vector<8x512xf32> to vector<8x128xf32>
    %cst_252 = arith.constant 5.000000e-01 : f32
    %771 = vector.broadcast %cst_252 : f32 to vector<8x128xf32>
    %772 = arith.mulf %771, %770 : vector<8x128xf32>
    %773 = math.tanh %772 : vector<8x128xf32>
    %cst_253 = arith.constant 5.000000e-01 : f32
    %774 = vector.broadcast %cst_253 : f32 to vector<8x128xf32>
    %775 = arith.mulf %774, %773 : vector<8x128xf32>
    %cst_254 = arith.constant 5.000000e-01 : f32
    %776 = vector.broadcast %cst_254 : f32 to vector<8x128xf32>
    %777 = arith.addf %775, %776 : vector<8x128xf32>
    %778 = vector.extract_strided_slice %759 {offsets = [0, 128], sizes = [8, 128], strides = [1, 1]} : vector<8x512xf32> to vector<8x128xf32>
    %cst_255 = arith.constant 5.000000e-01 : f32
    %779 = vector.broadcast %cst_255 : f32 to vector<8x128xf32>
    %780 = arith.mulf %779, %778 : vector<8x128xf32>
    %781 = math.tanh %780 : vector<8x128xf32>
    %cst_256 = arith.constant 5.000000e-01 : f32
    %782 = vector.broadcast %cst_256 : f32 to vector<8x128xf32>
    %783 = arith.mulf %782, %781 : vector<8x128xf32>
    %cst_257 = arith.constant 5.000000e-01 : f32
    %784 = vector.broadcast %cst_257 : f32 to vector<8x128xf32>
    %785 = arith.addf %783, %784 : vector<8x128xf32>
    %786 = arith.mulf %785, %750 : vector<8x128xf32>
    %787 = arith.mulf %767, %769 : vector<8x128xf32>
    %788 = arith.addf %786, %787 : vector<8x128xf32>
    %789 = math.tanh %788 : vector<8x128xf32>
    %790 = arith.mulf %777, %789 : vector<8x128xf32>
    %c21_i32 = arith.constant 21 : i32
    %c8_i32_258 = arith.constant 8 : i32
    %791 = arith.muli %c21_i32, %c8_i32_258 : i32
    %792 = tpu.assume_multiple %791, 8 : i32
    %793 = arith.index_cast %792 : i32 to index
    %c0_259 = arith.constant 0 : index
    %794 = vector.load %arg8[%793, %c0_259] : memref<224x512xf32, #tpu.memory_space<vmem>>, vector<8x512xf32>
    %795 = arith.truncf %790 : vector<8x128xf32> to vector<8x128xbf16>
    %cst_260 = arith.constant dense<0.000000e+00> : vector<8x512xf32>
    %796 = tpu.matmul %795, %8, %cst_260 {dimension_numbers = #tpu.dot_dimension_numbers<[1], [0], [0], [1], [0, 0, 1, 1], [], []>} : vector<8x128xbf16>, vector<128x512xbf16>, vector<8x512xf32> -> vector<8x512xf32>
    %797 = arith.addf %794, %796 : vector<8x512xf32>
    %798 = vector.extract_strided_slice %797 {offsets = [0, 0], sizes = [8, 128], strides = [1, 1]} : vector<8x512xf32> to vector<8x128xf32>
    %cst_261 = arith.constant 5.000000e-01 : f32
    %799 = vector.broadcast %cst_261 : f32 to vector<8x128xf32>
    %800 = arith.mulf %799, %798 : vector<8x128xf32>
    %801 = math.tanh %800 : vector<8x128xf32>
    %cst_262 = arith.constant 5.000000e-01 : f32
    %802 = vector.broadcast %cst_262 : f32 to vector<8x128xf32>
    %803 = arith.mulf %802, %801 : vector<8x128xf32>
    %cst_263 = arith.constant 5.000000e-01 : f32
    %804 = vector.broadcast %cst_263 : f32 to vector<8x128xf32>
    %805 = arith.addf %803, %804 : vector<8x128xf32>
    %806 = vector.extract_strided_slice %797 {offsets = [0, 256], sizes = [8, 128], strides = [1, 1]} : vector<8x512xf32> to vector<8x128xf32>
    %807 = math.tanh %806 : vector<8x128xf32>
    %808 = vector.extract_strided_slice %797 {offsets = [0, 384], sizes = [8, 128], strides = [1, 1]} : vector<8x512xf32> to vector<8x128xf32>
    %cst_264 = arith.constant 5.000000e-01 : f32
    %809 = vector.broadcast %cst_264 : f32 to vector<8x128xf32>
    %810 = arith.mulf %809, %808 : vector<8x128xf32>
    %811 = math.tanh %810 : vector<8x128xf32>
    %cst_265 = arith.constant 5.000000e-01 : f32
    %812 = vector.broadcast %cst_265 : f32 to vector<8x128xf32>
    %813 = arith.mulf %812, %811 : vector<8x128xf32>
    %cst_266 = arith.constant 5.000000e-01 : f32
    %814 = vector.broadcast %cst_266 : f32 to vector<8x128xf32>
    %815 = arith.addf %813, %814 : vector<8x128xf32>
    %816 = vector.extract_strided_slice %797 {offsets = [0, 128], sizes = [8, 128], strides = [1, 1]} : vector<8x512xf32> to vector<8x128xf32>
    %cst_267 = arith.constant 5.000000e-01 : f32
    %817 = vector.broadcast %cst_267 : f32 to vector<8x128xf32>
    %818 = arith.mulf %817, %816 : vector<8x128xf32>
    %819 = math.tanh %818 : vector<8x128xf32>
    %cst_268 = arith.constant 5.000000e-01 : f32
    %820 = vector.broadcast %cst_268 : f32 to vector<8x128xf32>
    %821 = arith.mulf %820, %819 : vector<8x128xf32>
    %cst_269 = arith.constant 5.000000e-01 : f32
    %822 = vector.broadcast %cst_269 : f32 to vector<8x128xf32>
    %823 = arith.addf %821, %822 : vector<8x128xf32>
    %824 = arith.mulf %823, %788 : vector<8x128xf32>
    %825 = arith.mulf %805, %807 : vector<8x128xf32>
    %826 = arith.addf %824, %825 : vector<8x128xf32>
    %827 = math.tanh %826 : vector<8x128xf32>
    %828 = arith.mulf %815, %827 : vector<8x128xf32>
    %c22_i32 = arith.constant 22 : i32
    %c8_i32_270 = arith.constant 8 : i32
    %829 = arith.muli %c22_i32, %c8_i32_270 : i32
    %830 = tpu.assume_multiple %829, 8 : i32
    %831 = arith.index_cast %830 : i32 to index
    %c0_271 = arith.constant 0 : index
    %832 = vector.load %arg8[%831, %c0_271] : memref<224x512xf32, #tpu.memory_space<vmem>>, vector<8x512xf32>
    %833 = arith.truncf %828 : vector<8x128xf32> to vector<8x128xbf16>
    %cst_272 = arith.constant dense<0.000000e+00> : vector<8x512xf32>
    %834 = tpu.matmul %833, %8, %cst_272 {dimension_numbers = #tpu.dot_dimension_numbers<[1], [0], [0], [1], [0, 0, 1, 1], [], []>} : vector<8x128xbf16>, vector<128x512xbf16>, vector<8x512xf32> -> vector<8x512xf32>
    %835 = arith.addf %832, %834 : vector<8x512xf32>
    %836 = vector.extract_strided_slice %835 {offsets = [0, 0], sizes = [8, 128], strides = [1, 1]} : vector<8x512xf32> to vector<8x128xf32>
    %cst_273 = arith.constant 5.000000e-01 : f32
    %837 = vector.broadcast %cst_273 : f32 to vector<8x128xf32>
    %838 = arith.mulf %837, %836 : vector<8x128xf32>
    %839 = math.tanh %838 : vector<8x128xf32>
    %cst_274 = arith.constant 5.000000e-01 : f32
    %840 = vector.broadcast %cst_274 : f32 to vector<8x128xf32>
    %841 = arith.mulf %840, %839 : vector<8x128xf32>
    %cst_275 = arith.constant 5.000000e-01 : f32
    %842 = vector.broadcast %cst_275 : f32 to vector<8x128xf32>
    %843 = arith.addf %841, %842 : vector<8x128xf32>
    %844 = vector.extract_strided_slice %835 {offsets = [0, 256], sizes = [8, 128], strides = [1, 1]} : vector<8x512xf32> to vector<8x128xf32>
    %845 = math.tanh %844 : vector<8x128xf32>
    %846 = vector.extract_strided_slice %835 {offsets = [0, 384], sizes = [8, 128], strides = [1, 1]} : vector<8x512xf32> to vector<8x128xf32>
    %cst_276 = arith.constant 5.000000e-01 : f32
    %847 = vector.broadcast %cst_276 : f32 to vector<8x128xf32>
    %848 = arith.mulf %847, %846 : vector<8x128xf32>
    %849 = math.tanh %848 : vector<8x128xf32>
    %cst_277 = arith.constant 5.000000e-01 : f32
    %850 = vector.broadcast %cst_277 : f32 to vector<8x128xf32>
    %851 = arith.mulf %850, %849 : vector<8x128xf32>
    %cst_278 = arith.constant 5.000000e-01 : f32
    %852 = vector.broadcast %cst_278 : f32 to vector<8x128xf32>
    %853 = arith.addf %851, %852 : vector<8x128xf32>
    %854 = vector.extract_strided_slice %835 {offsets = [0, 128], sizes = [8, 128], strides = [1, 1]} : vector<8x512xf32> to vector<8x128xf32>
    %cst_279 = arith.constant 5.000000e-01 : f32
    %855 = vector.broadcast %cst_279 : f32 to vector<8x128xf32>
    %856 = arith.mulf %855, %854 : vector<8x128xf32>
    %857 = math.tanh %856 : vector<8x128xf32>
    %cst_280 = arith.constant 5.000000e-01 : f32
    %858 = vector.broadcast %cst_280 : f32 to vector<8x128xf32>
    %859 = arith.mulf %858, %857 : vector<8x128xf32>
    %cst_281 = arith.constant 5.000000e-01 : f32
    %860 = vector.broadcast %cst_281 : f32 to vector<8x128xf32>
    %861 = arith.addf %859, %860 : vector<8x128xf32>
    %862 = arith.mulf %861, %826 : vector<8x128xf32>
    %863 = arith.mulf %843, %845 : vector<8x128xf32>
    %864 = arith.addf %862, %863 : vector<8x128xf32>
    %865 = math.tanh %864 : vector<8x128xf32>
    %866 = arith.mulf %853, %865 : vector<8x128xf32>
    %c23_i32 = arith.constant 23 : i32
    %c8_i32_282 = arith.constant 8 : i32
    %867 = arith.muli %c23_i32, %c8_i32_282 : i32
    %868 = tpu.assume_multiple %867, 8 : i32
    %869 = arith.index_cast %868 : i32 to index
    %c0_283 = arith.constant 0 : index
    %870 = vector.load %arg8[%869, %c0_283] : memref<224x512xf32, #tpu.memory_space<vmem>>, vector<8x512xf32>
    %871 = arith.truncf %866 : vector<8x128xf32> to vector<8x128xbf16>
    %cst_284 = arith.constant dense<0.000000e+00> : vector<8x512xf32>
    %872 = tpu.matmul %871, %8, %cst_284 {dimension_numbers = #tpu.dot_dimension_numbers<[1], [0], [0], [1], [0, 0, 1, 1], [], []>} : vector<8x128xbf16>, vector<128x512xbf16>, vector<8x512xf32> -> vector<8x512xf32>
    %873 = arith.addf %870, %872 : vector<8x512xf32>
    %874 = vector.extract_strided_slice %873 {offsets = [0, 0], sizes = [8, 128], strides = [1, 1]} : vector<8x512xf32> to vector<8x128xf32>
    %cst_285 = arith.constant 5.000000e-01 : f32
    %875 = vector.broadcast %cst_285 : f32 to vector<8x128xf32>
    %876 = arith.mulf %875, %874 : vector<8x128xf32>
    %877 = math.tanh %876 : vector<8x128xf32>
    %cst_286 = arith.constant 5.000000e-01 : f32
    %878 = vector.broadcast %cst_286 : f32 to vector<8x128xf32>
    %879 = arith.mulf %878, %877 : vector<8x128xf32>
    %cst_287 = arith.constant 5.000000e-01 : f32
    %880 = vector.broadcast %cst_287 : f32 to vector<8x128xf32>
    %881 = arith.addf %879, %880 : vector<8x128xf32>
    %882 = vector.extract_strided_slice %873 {offsets = [0, 256], sizes = [8, 128], strides = [1, 1]} : vector<8x512xf32> to vector<8x128xf32>
    %883 = math.tanh %882 : vector<8x128xf32>
    %884 = vector.extract_strided_slice %873 {offsets = [0, 384], sizes = [8, 128], strides = [1, 1]} : vector<8x512xf32> to vector<8x128xf32>
    %cst_288 = arith.constant 5.000000e-01 : f32
    %885 = vector.broadcast %cst_288 : f32 to vector<8x128xf32>
    %886 = arith.mulf %885, %884 : vector<8x128xf32>
    %887 = math.tanh %886 : vector<8x128xf32>
    %cst_289 = arith.constant 5.000000e-01 : f32
    %888 = vector.broadcast %cst_289 : f32 to vector<8x128xf32>
    %889 = arith.mulf %888, %887 : vector<8x128xf32>
    %cst_290 = arith.constant 5.000000e-01 : f32
    %890 = vector.broadcast %cst_290 : f32 to vector<8x128xf32>
    %891 = arith.addf %889, %890 : vector<8x128xf32>
    %892 = vector.extract_strided_slice %873 {offsets = [0, 128], sizes = [8, 128], strides = [1, 1]} : vector<8x512xf32> to vector<8x128xf32>
    %cst_291 = arith.constant 5.000000e-01 : f32
    %893 = vector.broadcast %cst_291 : f32 to vector<8x128xf32>
    %894 = arith.mulf %893, %892 : vector<8x128xf32>
    %895 = math.tanh %894 : vector<8x128xf32>
    %cst_292 = arith.constant 5.000000e-01 : f32
    %896 = vector.broadcast %cst_292 : f32 to vector<8x128xf32>
    %897 = arith.mulf %896, %895 : vector<8x128xf32>
    %cst_293 = arith.constant 5.000000e-01 : f32
    %898 = vector.broadcast %cst_293 : f32 to vector<8x128xf32>
    %899 = arith.addf %897, %898 : vector<8x128xf32>
    %900 = arith.mulf %899, %864 : vector<8x128xf32>
    %901 = arith.mulf %881, %883 : vector<8x128xf32>
    %902 = arith.addf %900, %901 : vector<8x128xf32>
    %903 = math.tanh %902 : vector<8x128xf32>
    %904 = arith.mulf %891, %903 : vector<8x128xf32>
    %c24_i32 = arith.constant 24 : i32
    %c8_i32_294 = arith.constant 8 : i32
    %905 = arith.muli %c24_i32, %c8_i32_294 : i32
    %906 = tpu.assume_multiple %905, 8 : i32
    %907 = arith.index_cast %906 : i32 to index
    %c0_295 = arith.constant 0 : index
    %908 = vector.load %arg8[%907, %c0_295] : memref<224x512xf32, #tpu.memory_space<vmem>>, vector<8x512xf32>
    %909 = arith.truncf %904 : vector<8x128xf32> to vector<8x128xbf16>
    %cst_296 = arith.constant dense<0.000000e+00> : vector<8x512xf32>
    %910 = tpu.matmul %909, %8, %cst_296 {dimension_numbers = #tpu.dot_dimension_numbers<[1], [0], [0], [1], [0, 0, 1, 1], [], []>} : vector<8x128xbf16>, vector<128x512xbf16>, vector<8x512xf32> -> vector<8x512xf32>
    %911 = arith.addf %908, %910 : vector<8x512xf32>
    %912 = vector.extract_strided_slice %911 {offsets = [0, 0], sizes = [8, 128], strides = [1, 1]} : vector<8x512xf32> to vector<8x128xf32>
    %cst_297 = arith.constant 5.000000e-01 : f32
    %913 = vector.broadcast %cst_297 : f32 to vector<8x128xf32>
    %914 = arith.mulf %913, %912 : vector<8x128xf32>
    %915 = math.tanh %914 : vector<8x128xf32>
    %cst_298 = arith.constant 5.000000e-01 : f32
    %916 = vector.broadcast %cst_298 : f32 to vector<8x128xf32>
    %917 = arith.mulf %916, %915 : vector<8x128xf32>
    %cst_299 = arith.constant 5.000000e-01 : f32
    %918 = vector.broadcast %cst_299 : f32 to vector<8x128xf32>
    %919 = arith.addf %917, %918 : vector<8x128xf32>
    %920 = vector.extract_strided_slice %911 {offsets = [0, 256], sizes = [8, 128], strides = [1, 1]} : vector<8x512xf32> to vector<8x128xf32>
    %921 = math.tanh %920 : vector<8x128xf32>
    %922 = vector.extract_strided_slice %911 {offsets = [0, 384], sizes = [8, 128], strides = [1, 1]} : vector<8x512xf32> to vector<8x128xf32>
    %cst_300 = arith.constant 5.000000e-01 : f32
    %923 = vector.broadcast %cst_300 : f32 to vector<8x128xf32>
    %924 = arith.mulf %923, %922 : vector<8x128xf32>
    %925 = math.tanh %924 : vector<8x128xf32>
    %cst_301 = arith.constant 5.000000e-01 : f32
    %926 = vector.broadcast %cst_301 : f32 to vector<8x128xf32>
    %927 = arith.mulf %926, %925 : vector<8x128xf32>
    %cst_302 = arith.constant 5.000000e-01 : f32
    %928 = vector.broadcast %cst_302 : f32 to vector<8x128xf32>
    %929 = arith.addf %927, %928 : vector<8x128xf32>
    %930 = vector.extract_strided_slice %911 {offsets = [0, 128], sizes = [8, 128], strides = [1, 1]} : vector<8x512xf32> to vector<8x128xf32>
    %cst_303 = arith.constant 5.000000e-01 : f32
    %931 = vector.broadcast %cst_303 : f32 to vector<8x128xf32>
    %932 = arith.mulf %931, %930 : vector<8x128xf32>
    %933 = math.tanh %932 : vector<8x128xf32>
    %cst_304 = arith.constant 5.000000e-01 : f32
    %934 = vector.broadcast %cst_304 : f32 to vector<8x128xf32>
    %935 = arith.mulf %934, %933 : vector<8x128xf32>
    %cst_305 = arith.constant 5.000000e-01 : f32
    %936 = vector.broadcast %cst_305 : f32 to vector<8x128xf32>
    %937 = arith.addf %935, %936 : vector<8x128xf32>
    %938 = arith.mulf %937, %902 : vector<8x128xf32>
    %939 = arith.mulf %919, %921 : vector<8x128xf32>
    %940 = arith.addf %938, %939 : vector<8x128xf32>
    %941 = math.tanh %940 : vector<8x128xf32>
    %942 = arith.mulf %929, %941 : vector<8x128xf32>
    %c25_i32 = arith.constant 25 : i32
    %c8_i32_306 = arith.constant 8 : i32
    %943 = arith.muli %c25_i32, %c8_i32_306 : i32
    %944 = tpu.assume_multiple %943, 8 : i32
    %945 = arith.index_cast %944 : i32 to index
    %c0_307 = arith.constant 0 : index
    %946 = vector.load %arg8[%945, %c0_307] : memref<224x512xf32, #tpu.memory_space<vmem>>, vector<8x512xf32>
    %947 = arith.truncf %942 : vector<8x128xf32> to vector<8x128xbf16>
    %cst_308 = arith.constant dense<0.000000e+00> : vector<8x512xf32>
    %948 = tpu.matmul %947, %8, %cst_308 {dimension_numbers = #tpu.dot_dimension_numbers<[1], [0], [0], [1], [0, 0, 1, 1], [], []>} : vector<8x128xbf16>, vector<128x512xbf16>, vector<8x512xf32> -> vector<8x512xf32>
    %949 = arith.addf %946, %948 : vector<8x512xf32>
    %950 = vector.extract_strided_slice %949 {offsets = [0, 0], sizes = [8, 128], strides = [1, 1]} : vector<8x512xf32> to vector<8x128xf32>
    %cst_309 = arith.constant 5.000000e-01 : f32
    %951 = vector.broadcast %cst_309 : f32 to vector<8x128xf32>
    %952 = arith.mulf %951, %950 : vector<8x128xf32>
    %953 = math.tanh %952 : vector<8x128xf32>
    %cst_310 = arith.constant 5.000000e-01 : f32
    %954 = vector.broadcast %cst_310 : f32 to vector<8x128xf32>
    %955 = arith.mulf %954, %953 : vector<8x128xf32>
    %cst_311 = arith.constant 5.000000e-01 : f32
    %956 = vector.broadcast %cst_311 : f32 to vector<8x128xf32>
    %957 = arith.addf %955, %956 : vector<8x128xf32>
    %958 = vector.extract_strided_slice %949 {offsets = [0, 256], sizes = [8, 128], strides = [1, 1]} : vector<8x512xf32> to vector<8x128xf32>
    %959 = math.tanh %958 : vector<8x128xf32>
    %960 = vector.extract_strided_slice %949 {offsets = [0, 384], sizes = [8, 128], strides = [1, 1]} : vector<8x512xf32> to vector<8x128xf32>
    %cst_312 = arith.constant 5.000000e-01 : f32
    %961 = vector.broadcast %cst_312 : f32 to vector<8x128xf32>
    %962 = arith.mulf %961, %960 : vector<8x128xf32>
    %963 = math.tanh %962 : vector<8x128xf32>
    %cst_313 = arith.constant 5.000000e-01 : f32
    %964 = vector.broadcast %cst_313 : f32 to vector<8x128xf32>
    %965 = arith.mulf %964, %963 : vector<8x128xf32>
    %cst_314 = arith.constant 5.000000e-01 : f32
    %966 = vector.broadcast %cst_314 : f32 to vector<8x128xf32>
    %967 = arith.addf %965, %966 : vector<8x128xf32>
    %968 = vector.extract_strided_slice %949 {offsets = [0, 128], sizes = [8, 128], strides = [1, 1]} : vector<8x512xf32> to vector<8x128xf32>
    %cst_315 = arith.constant 5.000000e-01 : f32
    %969 = vector.broadcast %cst_315 : f32 to vector<8x128xf32>
    %970 = arith.mulf %969, %968 : vector<8x128xf32>
    %971 = math.tanh %970 : vector<8x128xf32>
    %cst_316 = arith.constant 5.000000e-01 : f32
    %972 = vector.broadcast %cst_316 : f32 to vector<8x128xf32>
    %973 = arith.mulf %972, %971 : vector<8x128xf32>
    %cst_317 = arith.constant 5.000000e-01 : f32
    %974 = vector.broadcast %cst_317 : f32 to vector<8x128xf32>
    %975 = arith.addf %973, %974 : vector<8x128xf32>
    %976 = arith.mulf %975, %940 : vector<8x128xf32>
    %977 = arith.mulf %957, %959 : vector<8x128xf32>
    %978 = arith.addf %976, %977 : vector<8x128xf32>
    %979 = math.tanh %978 : vector<8x128xf32>
    %980 = arith.mulf %967, %979 : vector<8x128xf32>
    %c26_i32 = arith.constant 26 : i32
    %c8_i32_318 = arith.constant 8 : i32
    %981 = arith.muli %c26_i32, %c8_i32_318 : i32
    %982 = tpu.assume_multiple %981, 8 : i32
    %983 = arith.index_cast %982 : i32 to index
    %c0_319 = arith.constant 0 : index
    %984 = vector.load %arg8[%983, %c0_319] : memref<224x512xf32, #tpu.memory_space<vmem>>, vector<8x512xf32>
    %985 = arith.truncf %980 : vector<8x128xf32> to vector<8x128xbf16>
    %cst_320 = arith.constant dense<0.000000e+00> : vector<8x512xf32>
    %986 = tpu.matmul %985, %8, %cst_320 {dimension_numbers = #tpu.dot_dimension_numbers<[1], [0], [0], [1], [0, 0, 1, 1], [], []>} : vector<8x128xbf16>, vector<128x512xbf16>, vector<8x512xf32> -> vector<8x512xf32>
    %987 = arith.addf %984, %986 : vector<8x512xf32>
    %988 = vector.extract_strided_slice %987 {offsets = [0, 0], sizes = [8, 128], strides = [1, 1]} : vector<8x512xf32> to vector<8x128xf32>
    %cst_321 = arith.constant 5.000000e-01 : f32
    %989 = vector.broadcast %cst_321 : f32 to vector<8x128xf32>
    %990 = arith.mulf %989, %988 : vector<8x128xf32>
    %991 = math.tanh %990 : vector<8x128xf32>
    %cst_322 = arith.constant 5.000000e-01 : f32
    %992 = vector.broadcast %cst_322 : f32 to vector<8x128xf32>
    %993 = arith.mulf %992, %991 : vector<8x128xf32>
    %cst_323 = arith.constant 5.000000e-01 : f32
    %994 = vector.broadcast %cst_323 : f32 to vector<8x128xf32>
    %995 = arith.addf %993, %994 : vector<8x128xf32>
    %996 = vector.extract_strided_slice %987 {offsets = [0, 256], sizes = [8, 128], strides = [1, 1]} : vector<8x512xf32> to vector<8x128xf32>
    %997 = math.tanh %996 : vector<8x128xf32>
    %998 = vector.extract_strided_slice %987 {offsets = [0, 384], sizes = [8, 128], strides = [1, 1]} : vector<8x512xf32> to vector<8x128xf32>
    %cst_324 = arith.constant 5.000000e-01 : f32
    %999 = vector.broadcast %cst_324 : f32 to vector<8x128xf32>
    %1000 = arith.mulf %999, %998 : vector<8x128xf32>
    %1001 = math.tanh %1000 : vector<8x128xf32>
    %cst_325 = arith.constant 5.000000e-01 : f32
    %1002 = vector.broadcast %cst_325 : f32 to vector<8x128xf32>
    %1003 = arith.mulf %1002, %1001 : vector<8x128xf32>
    %cst_326 = arith.constant 5.000000e-01 : f32
    %1004 = vector.broadcast %cst_326 : f32 to vector<8x128xf32>
    %1005 = arith.addf %1003, %1004 : vector<8x128xf32>
    %1006 = vector.extract_strided_slice %987 {offsets = [0, 128], sizes = [8, 128], strides = [1, 1]} : vector<8x512xf32> to vector<8x128xf32>
    %cst_327 = arith.constant 5.000000e-01 : f32
    %1007 = vector.broadcast %cst_327 : f32 to vector<8x128xf32>
    %1008 = arith.mulf %1007, %1006 : vector<8x128xf32>
    %1009 = math.tanh %1008 : vector<8x128xf32>
    %cst_328 = arith.constant 5.000000e-01 : f32
    %1010 = vector.broadcast %cst_328 : f32 to vector<8x128xf32>
    %1011 = arith.mulf %1010, %1009 : vector<8x128xf32>
    %cst_329 = arith.constant 5.000000e-01 : f32
    %1012 = vector.broadcast %cst_329 : f32 to vector<8x128xf32>
    %1013 = arith.addf %1011, %1012 : vector<8x128xf32>
    %1014 = arith.mulf %1013, %978 : vector<8x128xf32>
    %1015 = arith.mulf %995, %997 : vector<8x128xf32>
    %1016 = arith.addf %1014, %1015 : vector<8x128xf32>
    %1017 = math.tanh %1016 : vector<8x128xf32>
    %1018 = arith.mulf %1005, %1017 : vector<8x128xf32>
    %c27_i32 = arith.constant 27 : i32
    %c8_i32_330 = arith.constant 8 : i32
    %1019 = arith.muli %c27_i32, %c8_i32_330 : i32
    %1020 = tpu.assume_multiple %1019, 8 : i32
    %1021 = arith.index_cast %1020 : i32 to index
    %c0_331 = arith.constant 0 : index
    %1022 = vector.load %arg8[%1021, %c0_331] : memref<224x512xf32, #tpu.memory_space<vmem>>, vector<8x512xf32>
    %1023 = arith.truncf %1018 : vector<8x128xf32> to vector<8x128xbf16>
    %cst_332 = arith.constant dense<0.000000e+00> : vector<8x512xf32>
    %1024 = tpu.matmul %1023, %8, %cst_332 {dimension_numbers = #tpu.dot_dimension_numbers<[1], [0], [0], [1], [0, 0, 1, 1], [], []>} : vector<8x128xbf16>, vector<128x512xbf16>, vector<8x512xf32> -> vector<8x512xf32>
    %1025 = arith.addf %1022, %1024 : vector<8x512xf32>
    %1026 = vector.extract_strided_slice %1025 {offsets = [0, 0], sizes = [8, 128], strides = [1, 1]} : vector<8x512xf32> to vector<8x128xf32>
    %cst_333 = arith.constant 5.000000e-01 : f32
    %1027 = vector.broadcast %cst_333 : f32 to vector<8x128xf32>
    %1028 = arith.mulf %1027, %1026 : vector<8x128xf32>
    %1029 = math.tanh %1028 : vector<8x128xf32>
    %cst_334 = arith.constant 5.000000e-01 : f32
    %1030 = vector.broadcast %cst_334 : f32 to vector<8x128xf32>
    %1031 = arith.mulf %1030, %1029 : vector<8x128xf32>
    %cst_335 = arith.constant 5.000000e-01 : f32
    %1032 = vector.broadcast %cst_335 : f32 to vector<8x128xf32>
    %1033 = arith.addf %1031, %1032 : vector<8x128xf32>
    %1034 = vector.extract_strided_slice %1025 {offsets = [0, 256], sizes = [8, 128], strides = [1, 1]} : vector<8x512xf32> to vector<8x128xf32>
    %1035 = math.tanh %1034 : vector<8x128xf32>
    %1036 = vector.extract_strided_slice %1025 {offsets = [0, 384], sizes = [8, 128], strides = [1, 1]} : vector<8x512xf32> to vector<8x128xf32>
    %cst_336 = arith.constant 5.000000e-01 : f32
    %1037 = vector.broadcast %cst_336 : f32 to vector<8x128xf32>
    %1038 = arith.mulf %1037, %1036 : vector<8x128xf32>
    %1039 = math.tanh %1038 : vector<8x128xf32>
    %cst_337 = arith.constant 5.000000e-01 : f32
    %1040 = vector.broadcast %cst_337 : f32 to vector<8x128xf32>
    %1041 = arith.mulf %1040, %1039 : vector<8x128xf32>
    %cst_338 = arith.constant 5.000000e-01 : f32
    %1042 = vector.broadcast %cst_338 : f32 to vector<8x128xf32>
    %1043 = arith.addf %1041, %1042 : vector<8x128xf32>
    %1044 = vector.extract_strided_slice %1025 {offsets = [0, 128], sizes = [8, 128], strides = [1, 1]} : vector<8x512xf32> to vector<8x128xf32>
    %cst_339 = arith.constant 5.000000e-01 : f32
    %1045 = vector.broadcast %cst_339 : f32 to vector<8x128xf32>
    %1046 = arith.mulf %1045, %1044 : vector<8x128xf32>
    %1047 = math.tanh %1046 : vector<8x128xf32>
    %cst_340 = arith.constant 5.000000e-01 : f32
    %1048 = vector.broadcast %cst_340 : f32 to vector<8x128xf32>
    %1049 = arith.mulf %1048, %1047 : vector<8x128xf32>
    %cst_341 = arith.constant 5.000000e-01 : f32
    %1050 = vector.broadcast %cst_341 : f32 to vector<8x128xf32>
    %1051 = arith.addf %1049, %1050 : vector<8x128xf32>
    %1052 = arith.mulf %1051, %1016 : vector<8x128xf32>
    %1053 = arith.mulf %1033, %1035 : vector<8x128xf32>
    %1054 = arith.addf %1052, %1053 : vector<8x128xf32>
    %1055 = math.tanh %1054 : vector<8x128xf32>
    %1056 = arith.mulf %1043, %1055 : vector<8x128xf32>
    %c27_i32_342 = arith.constant 27 : i32
    %1057 = arith.truncf %1056 : vector<8x128xf32> to vector<8x128xbf16>
    %c0_343 = arith.constant 0 : index
    %c0_344 = arith.constant 0 : index
    %1058 = vector.load %arg5[%c0_343, %c0_344] : memref<128x128xbf16, #tpu.memory_space<vmem>>, vector<128x128xbf16>
    %cst_345 = arith.constant dense<0.000000e+00> : vector<8x128xf32>
    %1059 = tpu.matmul %1057, %1058, %cst_345 {dimension_numbers = #tpu.dot_dimension_numbers<[1], [0], [0], [1], [0, 0, 1, 1], [], []>} : vector<8x128xbf16>, vector<128x128xbf16>, vector<8x128xf32> -> vector<8x128xf32>
    %c0_346 = arith.constant 0 : index
    %c0_347 = arith.constant 0 : index
    %1060 = vector.load %arg6[%c0_346, %c0_347] : memref<1x128xf32, #tpu.memory_space<vmem>>, vector<1x128xf32>
    %1061 = vector.broadcast %1060 : vector<1x128xf32> to vector<8x128xf32>
    %1062 = arith.addf %1059, %1061 : vector<8x128xf32>
    %c0_348 = arith.constant 0 : index
    %c0_349 = arith.constant 0 : index
    %1063 = vector.load %arg7[%c0_348, %c0_349] : memref<8x128xf32, #tpu.memory_space<vmem>>, vector<8x128xf32>
    tpu.vector_store %arg7[%c0_348, %c0_349], %1062 {strides = array<i32>} : memref<8x128xf32, #tpu.memory_space<vmem>>, vector<8x128xf32>,
    return
  }
  func.func @transform_0(%arg0: i32) -> (i32, i32, i32) {
    %c0_i32 = arith.constant 0 : i32
    %c0_i32_0 = arith.constant 0 : i32
    %c0_i32_1 = arith.constant 0 : i32
    return %arg0, %c0_i32, %c0_i32_0 : i32, i32, i32
  }
  func.func @transform_1(%arg0: i32) -> (i32, i32) {
    %c0_i32 = arith.constant 0 : i32
    %c0_i32_0 = arith.constant 0 : i32
    %c0_i32_1 = arith.constant 0 : i32
    return %c0_i32, %c0_i32_0 : i32, i32
  }
  func.func @transform_2(%arg0: i32) -> (i32, i32) {
    %c0_i32 = arith.constant 0 : i32
    %c0_i32_0 = arith.constant 0 : i32
    %c0_i32_1 = arith.constant 0 : i32
    return %c0_i32, %c0_i32_0 : i32, i32
  }
  func.func @transform_3(%arg0: i32) -> (i32, i32) {
    %c0_i32 = arith.constant 0 : i32
    %c0_i32_0 = arith.constant 0 : i32
    %c0_i32_1 = arith.constant 0 : i32
    return %c0_i32, %c0_i32_0 : i32, i32
  }
  func.func @transform_4(%arg0: i32) -> (i32, i32) {
    %c0_i32 = arith.constant 0 : i32
    %c0_i32_0 = arith.constant 0 : i32
    %c0_i32_1 = arith.constant 0 : i32
    return %c0_i32, %c0_i32_0 : i32, i32
  }
  func.func @transform_5(%arg0: i32) -> (i32, i32) {
    %c0_i32 = arith.constant 0 : i32
    %c0_i32_0 = arith.constant 0 : i32
    %c0_i32_1 = arith.constant 0 : i32
    return %c0_i32, %c0_i32_0 : i32, i32
  }
  func.func @transform_6(%arg0: i32) -> (i32, i32) {
    %c0_i32 = arith.constant 0 : i32
    %c0_i32_0 = arith.constant 0 : i32
    return %arg0, %c0_i32 : i32, i32
  }
}

</mosaic_0001>

<bundles_post_ra>
// kernel: tpu_custom_call.1
= control target key start
LH: loop header
LB: loop body
LE: loop exit
PB: predicated region body
PF: predicated region fallthrough
CT: control target
= control target key end

     0   :  { %11 = vsyncpa [#allocation4], 0  ;;  %s6756_s0 = inlined_call_operand.vmem [shape: bf16[1,224,28], index: 0, kind: input, shape index: {}]   ;;  %s6757_s1 = inlined_call_operand.vmem [shape: bf16[28,512], index: 1, kind: input, shape index: {}]   ;;  %s6758_s2 = inlined_call_operand.hbm [shape: bf16[128,512], index: 2, kind: input, shape index: {}]   ;;  %s6759_s3 = inlined_call_operand.vmem [shape: f32[1,512], index: 3, kind: input, shape index: {}]   ;;  %s6760_s4 = inlined_call_operand.vmem [shape: bf16[128,128], index: 4, kind: input, shape index: {}]   ;;  %s6761_s5 = inlined_call_operand.vmem [shape: f32[1,128], index: 5, kind: input, shape index: {}]   ;;  %s6762_s6 = inlined_call_operand.hbm [shape: f32[8,128], index: 6, kind: output, shape index: {}]  }
   0x1   :  { %12 = vsyncpa [#allocation5], 0  ;;  %s4760_s21 = smov [#allocation3]   ;;  %s4712_s25 = scalar_lea.hbm %s6758_s2, 4096 }
   0x2   :  { %s22_s22 = sshll.u32 %s4760_s21, 4  ;;  %p4713_p0 = scmp.ne.s32.totalorder %s6758_s2, %s4712_s25  ;;  %s23_s22 = int_to_ptr.vmem [resolvable:$true] %s22_s22 }
   0x3   :  { %p4716_p1 = scmp.lt.u32.totalorder %s4712_s25, %s6758_s2 }
   0x5   :  { %p4718_p2 = pnand %p4716_p1, %p4713_p0 }
   0x7   :  { %4721 = shalt.err (!%p4718_p2)
}
   0x8   :  { %s4722_s30 = scalar_lea.vmem %s23_s22, 4096  ;;  %p4727_p4 = scmp.lt.s32.totalorder %s23_s22, %s23_s22 }
   0x9   :  { %p4723_p3 = scmp.ne.s32.totalorder %s23_s22, %s4722_s30  ;;  %p4728_p5 = scmp.lt.s32.totalorder %s4722_s30, %s4722_s30 }
   0xb   :  { %p4729_p6 = por %p4728_p5, %p4727_p4 }
   0xd   :  { %p4730_p7 = pnand %p4729_p6, %p4723_p3 }
   0xf   :  { %4733 = shalt.err (!%p4730_p7)
}
  0x10   :  { %s4761_s7 = smov 256   ;;  %s4762_s8 = smov 16  }
  0x11   :  { %28 = dma.hbm_to_vmem [thread:$0]  %s6758_s2, 4096, %s23_s22, [#allocation4], %s4761_s7, %s4761_s7, %s4762_s8  }
  0x12   :  { %4756 = dma.done.wait [#allocation4], 4096  }
  0x13   :  { %4757 = vsyncadd [#allocation4], 4294963200  ;;  %v6763_v0 = vmov 0   ;;  %v4236_v1 = vld [vmem:[%s6757_s1 + $0x4] ss:$16 sps:$4 sm:$0xff]   ;;  %vm246_vm0 = vcmask 1045504   ;;  %v77_v57 = vlaneseq }
  0x14   :  { %411 = vmatprep.mubr.bf16.mxu1 %v6763_v0  ;;  %291 = vmatprep.mubr.bf16.mxu0 %v6763_v0  ;;  %v4238_v2 = vld [vmem:[%s6757_s1] ss:$16 sps:$4 sm:$0xff]   ;;  %v4239_v3 = vld [vmem:[%s6757_s1 + $0x24] ss:$16 sps:$4 sm:$0x3f]   ;;  %vm203_vm1 = vcmask 228352  }
  0x15   :  { %4225 = vmatprep.subr.bf16.mxu1 %v4236_v1  ;;  %v4241_v4 = vld [vmem:[%s6757_s1 + $0x20] ss:$16 sps:$4 sm:$0x3f]   ;;  %259 = vmatprep.subr.bf16.mxu0 %v4236_v1  ;;  %v4245_v7 = vld [vmem:[%s6757_s1 + $0xc] ss:$16 sps:$4 sm:$0xff]   ;;  %v5049_v58 = vshrl.u32 %v77_v57, 7 }
  0x16   :  { %4227 = vmatpush1.bf16.msra.mxu1 %v4238_v2  ;;  %260 = vmatpush1.bf16.msra.mxu0 %v4238_v2  ;;  %v248_v5 = vsel %vm246_vm0, %v4241_v4, 0  ;;  %v4833_v6 = vld [vmem:[%s6756_s0 + $0x60] sm:$0xff]   ;;  %v4243_v9 = vld [vmem:[%s6757_s1 + $0x8] ss:$16 sps:$4 sm:$0xff]   ;;  %v4857_v13 = vld [vmem:[#allocation3 + $0xc] ss:$16 sps:$4 sm:$0xff]  }
  0x17   :  { %4226 = vmatprep.subr.msk.bf16.mxu1 %vm246_vm0, %v4239_v3  ;;  %4125 = vmatprep.subr.msk.bf16.mxu0 %vm246_vm0, %v4239_v3  ;;  %v4246_v8 = vld [vmem:[%s6756_s0] sm:$0xff]   ;;  %v4248_v10 = vld [vmem:[%s6757_s1 + $0x2c] ss:$16 sps:$4 sm:$0x3f]   ;;  %v4890_v22 = vld [vmem:[#allocation3 + $0x8] ss:$16 sps:$4 sm:$0xff]  }
  0x18   :  { %v4250_v11 = vld [vmem:[%s6757_s1 + $0x28] ss:$16 sps:$4 sm:$0x3f]   ;;  %v4860_v14 = vld [vmem:[#allocation3 + $0x4] ss:$16 sps:$4 sm:$0xff]   ;;  %v79_v59 = vsub.s32 0, %v5049_v58 }
  0x19   :  { %v254_v12 = vsel %vm246_vm0, %v4250_v11, 0  ;;  %v4862_v15 = vld [vmem:[#allocation3] ss:$16 sps:$4 sm:$0xff]   ;;  %v4867_v16 = vld [vmem:[%s6756_s0 + $0x68] sm:$0xff]   ;;  %v4875_v18 = vld [vmem:[#allocation3 + $0x24] ss:$16 sps:$4 sm:$0xff]  }
  0x1a   :  { %4228 = vmatpush1.bf16.msra.mxu1 %v248_v5  ;;  %262 = vmatpush1.bf16.msra.mxu0 %v248_v5  ;;  %v4253_v17 = vld [vmem:[%s6756_s0 + $0x8] sm:$0xff]   ;;  %v4877_v19 = vld [vmem:[#allocation3 + $0x20] ss:$16 sps:$4 sm:$0xff]   ;;  %v4886_v20 = vld [vmem:[#allocation3 + $0x44] ss:$16 sps:$4 sm:$0xff]   ;;  %vm4765_vm2 = vmmov 0  }
  0x1b   :  { %432 = vmatprep.subr.bf16.mxu1 %v4245_v7  ;;  %932 = vmatprep.subr.bf16.mxu0 %v4860_v14  ;;  %v4888_v21 = vld [vmem:[#allocation3 + $0x40] ss:$16 sps:$4 sm:$0xff]   ;;  %v4896_v24 = vld [vmem:[#allocation3 + $0x2c] ss:$16 sps:$4 sm:$0xff]   ;;  %v4899_v25 = vld [vmem:[#allocation3 + $0x64] ss:$16 sps:$4 sm:$0xff]  }
  0x1c   :  { %v4255_v23 = vld [vmem:[%s6756_s0 + $0x10] sm:$0xff]   ;;  %v4907_v27 = vld [vmem:[#allocation3 + $0x28] ss:$16 sps:$4 sm:$0xff]   ;;  %v4910_v28 = vld [vmem:[#allocation3 + $0x4c] ss:$16 sps:$4 sm:$0xff]   ;;  %s4766_s19 = smov [#allocation6]  }
  0x1d   :  { %4138 = vmatmul.mubr.msk.bf16.vlgmr.msra.gmra.mrb[0].mxu1 %vm203_vm1, %v4833_v6  ;;  %4126 = vmatmul.mubr.msk.bf16.vlgmr.msra.gmra.mrb[0].mxu0 %vm203_vm1, %v4246_v8  ;;  %v4903_v26 = vld [vmem:[#allocation3 + $0x60] ss:$16 sps:$4 sm:$0xff]   ;;  %v4913_v29 = vld [vmem:[#allocation3 + $0x48] ss:$16 sps:$4 sm:$0xff]   ;;  %v4916_v30 = vld [vmem:[#allocation3 + $0x84] ss:$16 sps:$4 sm:$0xff]  }
  0x1e   :  { %433 = vmatpush1.bf16.msra.mxu1 %v4243_v9  ;;  %421 = vmatprep.mubr.bf16.mxu1 %v6763_v0  ;;  %v4262_v31 = vld [vmem:[%s6756_s0 + $0x18] sm:$0xff]   ;;  %v4266_v35 = vld [vmem:[%s6756_s0 + $0x20] sm:$0xff]   ;;  %v4270_v37 = vld [vmem:[%s6756_s0 + $0x28] sm:$0xff]   ;;  %s4067_s20 = sshll.u32 %s4766_s19, 4  ;;  %s4068_s20 = int_to_ptr.vmem [resolvable:$true] %s4067_s20 }
  0x1f   :  { %4140 = vmatprep.subr.msk.bf16.mxu1 %vm246_vm0, %v4248_v10  ;;  %301 = vmatprep.mubr.bf16.mxu0 %v6763_v0  ;;  %v4921_v32 = vld [vmem:[#allocation3 + $0x6c] ss:$16 sps:$4 sm:$0xff]   ;;  %v4927_v33 = vld [vmem:[#allocation3 + $0x68] ss:$16 sps:$4 sm:$0xff]   ;;  %v4274_v38 = vld [vmem:[%s6756_s0 + $0x30] sm:$0xff]   ;;  %s4734_s21 = scalar_lea.vmem %s4068_s20, 128  ;;  %p4739_p9 = scmp.lt.s32.totalorder %s4068_s20, %s4068_s20 }
  0x20   :  { %933 = vmatpush1.bf16.msra.mxu0 %v4862_v15  ;;  %v4931_v34 = vld [vmem:[#allocation3 + $0x8c] ss:$16 sps:$4 sm:$0xff]   ;;  %v4940_v36 = vld [vmem:[#allocation3 + $0x88] ss:$16 sps:$4 sm:$0xff]   ;;  %v4284_v40 = vld [vmem:[%s6756_s0 + $0x40] sm:$0xff]   ;;  %p4735_p8 = scmp.ne.s32.totalorder %s4068_s20, %s4734_s21  ;;  %p4740_p10 = scmp.lt.s32.totalorder %s4734_s21, %s4734_s21 }
  0x21   :  { %934 = vmatprep.subr.bf16.mxu0 %v4875_v18  ;;  %v4281_v39 = vld [vmem:[%s6756_s0 + $0x38] sm:$0xff]   ;;  %v4981_v41 = vld [vmem:[#allocation3 + $0x80] ss:$16 sps:$4 sm:$0xff]   ;;  %v4289_v42 = vld [vmem:[%s6756_s0 + $0x48] sm:$0xff]  }
  0x22   :  { %435 = vmatpush1.bf16.msra.mxu1 %v254_v12  ;;  %v4296_v43 = vld [vmem:[%s6756_s0 + $0x50] sm:$0xff]   ;;  %v5002_v46 = vld [vmem:[#allocation3 + $0xac] ss:$16 sps:$4 sm:$0xff]   ;;  %v5004_v47 = vld [vmem:[#allocation3 + $0xa8] ss:$16 sps:$4 sm:$0xff]   ;;  %v87_v12 = vsub.s32 2, %v5049_v58  ;;  %p4741_p11 = por %p4740_p10, %p4739_p9 }
  0x23   :  { %973 = vmatprep.subr.bf16.mxu1 %v4857_v13  ;;  %v4998_v44 = vld [vmem:[#allocation3 + $0xa4] ss:$16 sps:$4 sm:$0xff]   ;;  %v5000_v45 = vld [vmem:[#allocation3 + $0xa0] ss:$16 sps:$4 sm:$0xff]   ;;  %v4297_v48 = vld [vmem:[%s6756_s0 + $0x58] sm:$0xff]  }
  0x24   :  { %935 = vmatpush1.bf16.msra.mxu0 %v4877_v19  ;;  %v5020_v49 = vld [vmem:[#allocation3 + $0xc4] ss:$16 sps:$4 sm:$0xff]   ;;  %v5022_v50 = vld [vmem:[#allocation3 + $0xcc] ss:$16 sps:$4 sm:$0xff]   ;;  %v5024_v51 = vld [vmem:[#allocation3 + $0xc0] ss:$16 sps:$4 sm:$0xff]   ;;  %p4742_p12 = pnand %p4741_p11, %p4735_p8 }
  0x25   :  { %4139 = vmatmul.mubr.msk.bf16.gmra.mrb[4].mxu1 %vm203_vm1, %v4867_v16  ;;  %4127 = vmatmul.mubr.msk.bf16.gmra.mrb[4].mxu0 %vm203_vm1, %v4253_v17  ;;  %v5026_v52 = vld [vmem:[#allocation3 + $0xc8] ss:$16 sps:$4 sm:$0xff]   ;;  %v5032_v53 = vld [vmem:[#allocation3 + $0xe4] ss:$16 sps:$4 sm:$0xff]   ;;  %v5036_v54 = vld [vmem:[#allocation3 + $0xec] ss:$16 sps:$4 sm:$0xff]  }
  0x26   :  { %464 = vmatprep.mubr.bf16.mxu1 %v6763_v0  ;;  %311 = vmatprep.mubr.bf16.mxu0 %v6763_v0  ;;  %v5038_v55 = vld [vmem:[#allocation3 + $0xe0] ss:$16 sps:$4 sm:$0xff]   ;;  %v5040_v56 = vld [vmem:[#allocation3 + $0xe8] ss:$16 sps:$4 sm:$0xff]  }
  0x27   :  { %936 = vmatprep.subr.bf16.mxu0 %v4886_v20  ;;  %v5055_v60 = vld [vmem:[%s6759_s3] sm:$0xf] }
  0x28   :  { %937 = vmatpush1.bf16.msra.mxu0 %v4888_v21  ;;  %v5058_v61 = vrot.slane %v5055_v60, %v79_v59 }
  0x29   :  { %938 = vmatprep.subr.bf16.mxu0 %v4899_v25 }
  0x2c   :  { %939 = vmatpush1.bf16.msra.mxu0 %v4903_v26 }
  0x2d   :  { %4141 = vmatmul.mubr.msk.bf16.vlgmr.msra.gmra.mrb[8].mxu1 %vm203_vm1, %v4246_v8  ;;  %4128 = vmatmul.mubr.msk.bf16.gmra.mrb[8].mxu0 %vm203_vm1, %v4255_v23 }
  0x2e   :  { %474 = vmatprep.mubr.bf16.mxu1 %v6763_v0  ;;  %974 = vmatpush1.bf16.msra.mxu1 %v4890_v22 }
  0x2f   :  { %975 = vmatprep.subr.bf16.mxu1 %v4896_v24  ;;  %321 = vmatprep.mubr.bf16.mxu0 %v6763_v0 }
  0x30   :  { %940 = vmatprep.subr.bf16.mxu0 %v4916_v30 }
  0x31   :  { %941 = vmatpush1.bf16.msra.mxu0 %v4981_v41 }
  0x32   :  { %976 = vmatpush1.bf16.msra.mxu1 %v4907_v27  ;;  %942 = vmatprep.subr.bf16.mxu0 %v4998_v44 }
  0x33   :  { %977 = vmatprep.subr.bf16.mxu1 %v4910_v28 }
  0x35   :  { %4142 = vmatmul.mubr.msk.bf16.gmra.mrb[12].mxu1 %vm203_vm1, %v4253_v17  ;;  %4129 = vmatmul.mubr.msk.bf16.gmra.mrb[12].mxu0 %vm203_vm1, %v4262_v31 }
  0x36   :  { %484 = vmatprep.mubr.bf16.mxu1 %v6763_v0  ;;  %978 = vmatpush1.bf16.msra.mxu1 %v4913_v29 }
  0x37   :  { %331 = vmatprep.mubr.bf16.mxu0 %v6763_v0  ;;  %979 = vmatprep.subr.bf16.mxu1 %v4921_v32 }
  0x38   :  { %943 = vmatpush1.bf16.msra.mxu0 %v5000_v45 }
  0x39   :  { %944 = vmatprep.subr.bf16.mxu0 %v5020_v49 }
  0x3a   :  { %980 = vmatpush1.bf16.msra.mxu1 %v4927_v33 }
  0x3b   :  { %981 = vmatprep.subr.bf16.mxu1 %v4931_v34 }
  0x3c   :  { %945 = vmatpush1.bf16.msra.mxu0 %v5024_v51 }
  0x3d   :  { %4143 = vmatmul.mubr.msk.bf16.gmra.mrb[16].mxu1 %vm203_vm1, %v4255_v23  ;;  %4130 = vmatmul.mubr.msk.bf16.gmra.mrb[16].mxu0 %vm203_vm1, %v4266_v35  ;;  %v91_v23 = vsub.s32 3, %v5049_v58 }
  0x3e   :  { %494 = vmatprep.mubr.bf16.mxu1 %v6763_v0  ;;  %341 = vmatprep.mubr.bf16.mxu0 %v6763_v0 }
  0x3f   :  { %982 = vmatpush1.bf16.msra.mxu1 %v4940_v36  ;;  %946 = vmatprep.subr.bf16.mxu0 %v5032_v53 }
  0x40   :  { %983 = vmatprep.subr.bf16.mxu1 %v5002_v46  ;;  %947 = vmatpush1.bf16.msra.mxu0 %v5038_v55 }
  0x41   :  { %1044 = vmatprep.subr.bf16.mxu0 %v4860_v14 }
  0x43   :  { %984 = vmatpush1.bf16.msra.mxu1 %v5004_v47 }
  0x44   :  { %985 = vmatprep.subr.bf16.mxu1 %v5022_v50 }
  0x45   :  { %4144 = vmatmul.mubr.msk.bf16.gmra.mrb[20].mxu1 %vm203_vm1, %v4262_v31  ;;  %4131 = vmatmul.mubr.msk.bf16.gmra.mrb[20].mxu0 %vm203_vm1, %v4270_v37 }
  0x46   :  { %504 = vmatprep.mubr.bf16.mxu1 %v6763_v0  ;;  %351 = vmatprep.mubr.bf16.mxu0 %v6763_v0 }
  0x47   :  { %986 = vmatpush1.bf16.msra.mxu1 %v5026_v52 }
  0x48   :  { %987 = vmatprep.subr.bf16.mxu1 %v5036_v54 }
  0x4b   :  { %988 = vmatpush1.bf16.msra.mxu1 %v5040_v56 }
  0x4c   :  { %1085 = vmatprep.subr.bf16.mxu1 %v4857_v13 }
  0x4d   :  { %4145 = vmatmul.mubr.msk.bf16.gmra.mrb[24].mxu1 %vm203_vm1, %v4266_v35  ;;  %4132 = vmatmul.mubr.msk.bf16.gmra.mrb[24].mxu0 %vm203_vm1, %v4274_v38 }
  0x4e   :  { %514 = vmatprep.mubr.bf16.mxu1 %v6763_v0  ;;  %361 = vmatprep.mubr.bf16.mxu0 %v6763_v0 }
  0x55   :  { %4146 = vmatmul.mubr.msk.bf16.gmra.mrb[28].mxu1 %vm203_vm1, %v4270_v37  ;;  %4133 = vmatmul.mubr.msk.bf16.gmra.mrb[28].mxu0 %vm203_vm1, %v4281_v39 }
  0x56   :  { %524 = vmatprep.mubr.bf16.mxu1 %v6763_v0  ;;  %371 = vmatprep.mubr.bf16.mxu0 %v6763_v0 }
  0x5d   :  { %4147 = vmatmul.mubr.msk.bf16.gmra.mrb[32].mxu1 %vm203_vm1, %v4274_v38  ;;  %4134 = vmatmul.mubr.msk.bf16.gmra.mrb[32].mxu0 %vm203_vm1, %v4284_v40  ;;  %v5092_v38 = vrot.slane %v5055_v60, %v87_v12 }
  0x5e   :  { %534 = vmatprep.mubr.bf16.mxu1 %v6763_v0  ;;  %381 = vmatprep.mubr.bf16.mxu0 %v6763_v0 }
  0x65   :  { %4148 = vmatmul.mubr.msk.bf16.gmra.mrb[36].mxu1 %vm203_vm1, %v4281_v39  ;;  %4135 = vmatmul.mubr.msk.bf16.gmra.mrb[36].mxu0 %vm203_vm1, %v4289_v42  ;;  %v5095_v39 = vrot.slane %v5055_v60, %v91_v23 }
  0x66   :  { %544 = vmatprep.mubr.bf16.mxu1 %v6763_v0  ;;  %391 = vmatprep.mubr.bf16.mxu0 %v6763_v0 }
  0x6d   :  { %4149 = vmatmul.mubr.msk.bf16.gmra.mrb[40].mxu1 %vm203_vm1, %v4284_v40  ;;  %4136 = vmatmul.mubr.msk.bf16.gmra.mrb[40].mxu0 %vm203_vm1, %v4296_v43 }
  0x6e   :  { %554 = vmatprep.mubr.bf16.mxu1 %v6763_v0  ;;  %401 = vmatprep.mubr.bf16.mxu0 %v6763_v0 }
  0x75   :  { %4150 = vmatmul.mubr.msk.bf16.gmra.mrb[44].mxu1 %vm203_vm1, %v4289_v42  ;;  %4137 = vmatmul.mubr.msk.bf16.gmra.mrb[44].mxu0 %vm203_vm1, %v4297_v48 }
  0x76   :  { %564 = vmatprep.mubr.bf16.mxu1 %v6763_v0  ;;  %964 = vmatprep.mubr.bf16.mxu0 %v6763_v0 }
  0x7d   :  { %4151 = vmatmul.mubr.msk.bf16.gmra.mrb[48].mxu1 %vm203_vm1, %v4296_v43 }
  0x7e   :  { %574 = vmatprep.mubr.bf16.mxu1 %v6763_v0 }
  0x85   :  { %4152 = vmatmul.mubr.msk.bf16.gmra.mrb[52].mxu1 %vm203_vm1, %v4297_v48 }
  0x86   :  { %584 = vmatprep.mubr.bf16.mxu1 %v6763_v0 }
  0x8d   :  { %4153 = vmatmul.mubr.msk.bf16.gmra.mrb[56].mxu1 %vm203_vm1, %v4833_v6 }
  0x8e   :  { %594 = vmatprep.mubr.bf16.mxu1 %v6763_v0 }
  0x95   :  { %4154 = vmatmul.mubr.msk.bf16.gmra.mrb[60].mxu1 %vm203_vm1, %v4867_v16 }
  0x96   :  { %1005 = vmatprep.mubr.bf16.mxu1 %v6763_v0 }
  0xf0   :  { %v5060_v62 = vpop.f32.mrb[0].mxu1  ;;  %v293_v63 = vpop.f32.mrb[0].mxu0 }
  0xf1   :  { %6765 = vst [vmem:[#allocation9_spill] sm:$0xff] %v5060_v62  ;;  %v5062_v1 = vpop.f32.mrb[1].mxu1  ;;  %v294_v2 = vadd.f32 %v293_v63, %v5058_v61  ;;  %v295_v3 = vpop.f32.mrb[1].mxu0 }
  0xf2   :  { %6766 = vst [vmem:[#allocation10_spill] sm:$0xff] %v5062_v1  ;;  %v5065_v4 = vpop.f32.mrb[2].mxu1  ;;  %v5067_v5 = vpop.f32.mrb[2].mxu0 }
  0xf3   :  { %6767 = vst [vmem:[#allocation11_spill] sm:$0xff] %v5065_v4  ;;  %v5069_v6 = vpop.f32.mrb[3].mxu1  ;;  %v5071_v7 = vpop.f32.mrb[3].mxu0  ;;  %v752_v8 = vmul.f32 0.5, %v294_v2 }
  0xf4   :  { %6768 = vst [vmem:[#allocation12_spill] sm:$0xff] %v5069_v6 }
  0xf5   :  { %4318 = vtanh.f32 %v752_v8 }
  0xf8   :  { %v5073_v9 = vpop.f32.mrb[4].mxu1  ;;  %v5075_v10 = vpop.f32.mrb[4].mxu0 }
  0xf9   :  { %6769 = vst [vmem:[#allocation13_spill] sm:$0xff] %v5073_v9  ;;  %v5077_v11 = vpop.f32.mrb[5].mxu1  ;;  %v5080_v16 = vpop.f32.mrb[5].mxu0 }
  0xfa   :  { %6770 = vst [vmem:[#allocation14_spill] sm:$0xff] %v5077_v11  ;;  %6771 = vst [vmem:[#allocation15_spill] sm:$0xff] %v5080_v16  ;;  %v5082_v17 = vpop.f32.mrb[6].mxu1  ;;  %v5085_v31 = vpop.f32.mrb[6].mxu0 }
  0xfb   :  { %6772 = vst [vmem:[#allocation16_spill] sm:$0xff] %v5082_v17  ;;  %6773 = vst [vmem:[#allocation17_spill] sm:$0xff] %v5085_v31  ;;  %v5087_v35 = vpop.f32.mrb[7].mxu1  ;;  %v5089_v37 = vpop.f32.mrb[7].mxu0 }
  0xfc   :  { %6774 = vst [vmem:[#allocation18_spill] sm:$0xff] %v5087_v35  ;;  %6775 = vst [vmem:[#allocation19_spill] sm:$0xff] %v5089_v37 }
  0xff   :  { %v4319_v3 = vpop.eup %4318 }
 0x100   :  { %v466_v40 = vpop.f32.mrb[8].mxu1  ;;  %v5097_v42 = vpop.f32.mrb[8].mxu0  ;;  %v754_v0 = vmul.f32 0.5, %v4319_v3 }
 0x101   :  { %6776 = vst [vmem:[#allocation20_spill] sm:$0xff] %v5097_v42  ;;  %v467_v43 = vadd.f32 %v466_v40, %v5092_v38  ;;  %v468_v48 = vpop.f32.mrb[9].mxu1  ;;  %v5100_v57 = vpop.f32.mrb[9].mxu0 }
 0x102   :  { %6777 = vst [vmem:[#allocation21_spill] sm:$0xff] %v5100_v57  ;;  %v469_v59 = vadd.f32 %v468_v48, %v5095_v39  ;;  %v5103_v63 = vpop.f32.mrb[10].mxu1  ;;  %v5105_v2 = vpop.f32.mrb[10].mxu0  ;;  %v755_v11 = vadd.f32 0.5, %v754_v0 }
 0x103   :  { %6778 = vst [vmem:[#allocation22_spill] sm:$0xff] %v5105_v2  ;;  %4320 = vtanh.f32 %v467_v43  ;;  %v5107_v8 = vpop.f32.mrb[11].mxu1  ;;  %v5109_v12 = vpop.f32.mrb[11].mxu0 }
 0x104   :  { %6779 = vst [vmem:[#allocation23_spill] sm:$0xff] %v5109_v12  ;;  %v757_v23 = vmul.f32 0.5, %v469_v59 }
 0x106   :  { %4322 = vtanh.f32 %v757_v23 }
 0x108   :  { %v5111_v35 = vpop.f32.mrb[12].mxu1  ;;  %v5113_v40 = vpop.f32.mrb[12].mxu0 }
 0x109   :  { %6780 = vst [vmem:[#allocation24_spill] sm:$0xff] %v5113_v40  ;;  %v5115_v17 = vpop.f32.mrb[13].mxu1  ;;  %v5117_v48 = vpop.f32.mrb[13].mxu0 }
 0x10a   :  { %6781 = vst [vmem:[#allocation25_spill] sm:$0xff] %v5117_v48  ;;  %v5119_v9 = vpop.f32.mrb[14].mxu1  ;;  %v5121_v6 = vpop.f32.mrb[14].mxu0 }
 0x10b   :  { %6782 = vst [vmem:[#allocation26_spill] sm:$0xff] %v5119_v9  ;;  %6783 = vst [vmem:[#allocation27_spill] sm:$0xff] %v5121_v6  ;;  %v5123_v43 = vpop.f32.mrb[15].mxu1  ;;  %v5125_v4 = vpop.f32.mrb[15].mxu0 }
 0x10c   :  { %6784 = vst [vmem:[#allocation28_spill] sm:$0xff] %v5123_v43  ;;  %6785 = vst [vmem:[#allocation29_spill] sm:$0xff] %v5125_v4 }
 0x10d   :  { %v4321_v59 = vpop.eup %4320 }
 0x10e   :  { %v5127_v3 = vmul.f32 %v4321_v59, %v755_v11 }
 0x110   :  { %4324 = vtanh.f32 %v5127_v3  ;;  %v5130_v23 = vpop.f32.mrb[16].mxu1  ;;  %v5132_v1 = vpop.f32.mrb[16].mxu0 }
 0x111   :  { %6786 = vst [vmem:[#allocation30_spill] sm:$0xff] %v5130_v23  ;;  %6787 = vst [vmem:[#allocation31_spill] sm:$0xff] %v5132_v1  ;;  %v5134_v62 = vpop.f32.mrb[17].mxu1  ;;  %v5136_v0 = vpop.f32.mrb[17].mxu0 }
 0x112   :  { %6788 = vst [vmem:[#allocation32_spill] sm:$0xff] %v5134_v62  ;;  %6789 = vst [vmem:[#allocation33_spill] sm:$0xff] %v5136_v0  ;;  %v4323_v48 = vpop.eup %4322  ;;  %v5138_v40 = vpop.f32.mrb[18].mxu1 }
 0x113   :  { %6790 = vst [vmem:[#allocation34_spill] sm:$0xff] %v5138_v40  ;;  %v5140_v6 = vpop.f32.mrb[18].mxu0  ;;  %v5142_v12 = vpop.f32.mrb[19].mxu1  ;;  %v759_v11 = vmul.f32 0.5, %v4323_v48 }
 0x114   :  { %6791 = vst [vmem:[#allocation35_spill] sm:$0xff] %v5140_v6  ;;  %6792 = vst [vmem:[#allocation36_spill] sm:$0xff] %v5142_v12  ;;  %v5144_v4 = vpop.f32.mrb[19].mxu0 }
 0x115   :  { %6793 = vst [vmem:[#allocation37_spill] sm:$0xff] %v5144_v4  ;;  %v760_v57 = vadd.f32 0.5, %v759_v11 }
 0x118   :  { %v5146_v59 = vpop.f32.mrb[20].mxu1  ;;  %v5148_v2 = vpop.f32.mrb[20].mxu0 }
 0x119   :  { %6794 = vst [vmem:[#allocation38_spill] sm:$0xff] %v5146_v59  ;;  %6795 = vst [vmem:[#allocation39_spill] sm:$0xff] %v5148_v2  ;;  %v5150_v1 = vpop.f32.mrb[21].mxu1  ;;  %v5152_v62 = vpop.f32.mrb[21].mxu0 }
 0x11a   :  { %6796 = vst [vmem:[#allocation40_spill] sm:$0xff] %v5150_v1  ;;  %6797 = vst [vmem:[#allocation41_spill] sm:$0xff] %v5152_v62  ;;  %v4325_v0 = vpop.eup %4324  ;;  %v5154_v42 = vpop.f32.mrb[22].mxu1 }
 0x11b   :  { %6798 = vst [vmem:[#allocation42_spill] sm:$0xff] %v5154_v42  ;;  %v5156_v40 = vpop.f32.mrb[22].mxu0  ;;  %v763_v6 = vmul.f32 %v4325_v0, %v760_v57  ;;  %v5158_v23 = vpop.f32.mrb[23].mxu1  ;;  %v6808_v0 = vmov 0  }
 0x11c   :  { %6799 = vst [vmem:[#allocation43_spill] sm:$0xff] %v5156_v40  ;;  %6800 = vst [vmem:[#allocation44_spill] sm:$0xff] %v5158_v23  ;;  %v5160_v12 = vpop.f32.mrb[23].mxu0 }
 0x11d   :  { %6801 = vst [vmem:[#allocation45_spill] sm:$0xff] %v5160_v12  ;;  %v771_v48 = vpack.c.bf16 %v763_v6, %v763_v6 }
 0x11f   :  { %965 = vmatmul.mubr.bf16.vlgmr.msra.gmra.mrb[48].mxu0 %v771_v48  ;;  %1006 = vmatmul.mubr.bf16.vlgmr.msra.gmra.mrb[64].mxu1 %v771_v48 }
 0x120   :  { %v5162_v4 = vpop.f32.mrb[24].mxu1  ;;  %v5164_v11 = vpop.f32.mrb[24].mxu0  ;;  %1045 = vmatpush1.bf16.msra.mxu0 %v4862_v15  ;;  %1086 = vmatpush1.bf16.msra.mxu1 %v4890_v22 }
 0x121   :  { %6802 = vst [vmem:[#allocation46_spill] sm:$0xff] %v5162_v4  ;;  %6803 = vst [vmem:[#allocation47_spill] sm:$0xff] %v5164_v11  ;;  %v5168_v62 = vpop.f32.mrb[25].mxu1  ;;  %v5170_v2 = vpop.f32.mrb[25].mxu0  ;;  %1046 = vmatprep.subr.bf16.mxu0 %v4875_v18  ;;  %1087 = vmatprep.subr.bf16.mxu1 %v4896_v24 }
 0x122   :  { %6804 = vst [vmem:[#allocation48_spill] sm:$0xff] %v5168_v62  ;;  %6805 = vst [vmem:[#allocation49_spill] sm:$0xff] %v5170_v2  ;;  %v5174_v57 = vpop.f32.mrb[26].mxu1  ;;  %v5176_v6 = vpop.f32.mrb[26].mxu0  ;;  %1076 = vmatprep.mubr.bf16.mxu0 %v6808_v0  ;;  %1117 = vmatprep.mubr.bf16.mxu1 %v6808_v0 }
 0x123   :  { %6806 = vst [vmem:[#allocation50_spill] sm:$0xff] %v5174_v57  ;;  %6807 = vst [vmem:[#allocation51_spill] sm:$0xff] %v5176_v6  ;;  %v5180_v48 = vpop.f32.mrb[27].mxu1  ;;  %v5182_v11 = vpop.f32.mrb[27].mxu0 }
 0x124   :  { %6809 = vst [vmem:[#allocation52_spill] sm:$0xff] %v5180_v48  ;;  %6810 = vst [vmem:[#allocation53_spill] sm:$0xff] %v5182_v11  ;;  %1047 = vmatpush1.bf16.msra.mxu0 %v4877_v19  ;;  %1088 = vmatpush1.bf16.msra.mxu1 %v4907_v27 }
 0x125   :  { %1048 = vmatprep.subr.bf16.mxu0 %v4886_v20  ;;  %1089 = vmatprep.subr.bf16.mxu1 %v4910_v28 }
 0x128   :  { %v5188_v2 = vpop.f32.mrb[28].mxu1  ;;  %v5190_v12 = vpop.f32.mrb[28].mxu0  ;;  %1049 = vmatpush1.bf16.msra.mxu0 %v4888_v21  ;;  %1090 = vmatpush1.bf16.msra.mxu1 %v4913_v29 }
 0x129   :  { %6811 = vst [vmem:[#allocation54_spill] sm:$0xff] %v5188_v2  ;;  %6812 = vst [vmem:[#allocation55_spill] sm:$0xff] %v5190_v12  ;;  %v5194_v6 = vpop.f32.mrb[29].mxu1  ;;  %v5196_v40 = vpop.f32.mrb[29].mxu0  ;;  %1050 = vmatprep.subr.bf16.mxu0 %v4899_v25  ;;  %1091 = vmatprep.subr.bf16.mxu1 %v4921_v32 }
 0x12a   :  { %6813 = vst [vmem:[#allocation56_spill] sm:$0xff] %v5194_v6  ;;  %6814 = vst [vmem:[#allocation57_spill] sm:$0xff] %v5196_v40  ;;  %v5200_v11 = vpop.f32.mrb[30].mxu1  ;;  %v5202_v48 = vpop.f32.mrb[30].mxu0 }
 0x12b   :  { %6815 = vst [vmem:[#allocation58_spill] sm:$0xff] %v5200_v11  ;;  %6816 = vst [vmem:[#allocation59_spill] sm:$0xff] %v5202_v48  ;;  %v5204_v57 = vpop.f32.mrb[31].mxu1  ;;  %v5206_v2 = vpop.f32.mrb[31].mxu0 }
 0x12c   :  { %6817 = vst [vmem:[#allocation60_spill] sm:$0xff] %v5204_v57  ;;  %6818 = vst [vmem:[#allocation61_spill] sm:$0xff] %v5206_v2  ;;  %1051 = vmatpush1.bf16.msra.mxu0 %v4903_v26  ;;  %1092 = vmatpush1.bf16.msra.mxu1 %v4927_v33 }
 0x12d   :  { %1052 = vmatprep.subr.bf16.mxu0 %v4916_v30  ;;  %1093 = vmatprep.subr.bf16.mxu1 %v4931_v34 }
 0x130   :  { %v5212_v40 = vpop.f32.mrb[32].mxu1  ;;  %v5214_v12 = vpop.f32.mrb[32].mxu0  ;;  %1053 = vmatpush1.bf16.msra.mxu0 %v4981_v41  ;;  %1094 = vmatpush1.bf16.msra.mxu1 %v4940_v36 }
 0x131   :  { %6819 = vst [vmem:[#allocation62_spill] sm:$0xff] %v5212_v40  ;;  %6820 = vst [vmem:[#allocation63_spill] sm:$0xff] %v5214_v12  ;;  %v5218_v48 = vpop.f32.mrb[33].mxu1  ;;  %v5220_v57 = vpop.f32.mrb[33].mxu0  ;;  %1054 = vmatprep.subr.bf16.mxu0 %v4998_v44  ;;  %1095 = vmatprep.subr.bf16.mxu1 %v5002_v46 }
 0x132   :  { %6821 = vst [vmem:[#allocation64_spill] sm:$0xff] %v5218_v48  ;;  %6822 = vst [vmem:[#allocation65_spill] sm:$0xff] %v5220_v57  ;;  %v5224_v2 = vpop.f32.mrb[34].mxu1  ;;  %v5226_v11 = vpop.f32.mrb[34].mxu0 }
 0x133   :  { %6823 = vst [vmem:[#allocation66_spill] sm:$0xff] %v5224_v2  ;;  %6824 = vst [vmem:[#allocation67_spill] sm:$0xff] %v5226_v11  ;;  %v5228_v6 = vpop.f32.mrb[35].mxu1  ;;  %v5230_v40 = vpop.f32.mrb[35].mxu0 }
 0x134   :  { %6825 = vst [vmem:[#allocation68_spill] sm:$0xff] %v5228_v6  ;;  %6826 = vst [vmem:[#allocation69_spill] sm:$0xff] %v5230_v40  ;;  %1055 = vmatpush1.bf16.msra.mxu0 %v5000_v45  ;;  %1096 = vmatpush1.bf16.msra.mxu1 %v5004_v47 }
 0x135   :  { %1056 = vmatprep.subr.bf16.mxu0 %v5020_v49  ;;  %1097 = vmatprep.subr.bf16.mxu1 %v5022_v50 }
 0x138   :  { %v5236_v57 = vpop.f32.mrb[36].mxu1  ;;  %1057 = vmatpush1.bf16.msra.mxu0 %v5024_v51  ;;  %1098 = vmatpush1.bf16.msra.mxu1 %v5026_v52 }
 0x139   :  { %6827 = vst [vmem:[#allocation70_spill] sm:$0xff] %v5236_v57  ;;  %v5240_v12 = vpop.f32.mrb[37].mxu1  ;;  %1058 = vmatprep.subr.bf16.mxu0 %v5032_v53  ;;  %1099 = vmatprep.subr.bf16.mxu1 %v5036_v54 }
 0x13a   :  { %6828 = vst [vmem:[#allocation71_spill] sm:$0xff] %v5240_v12  ;;  %v5244_v40 = vpop.f32.mrb[38].mxu1 }
 0x13b   :  { %6829 = vst [vmem:[#allocation72_spill] sm:$0xff] %v5244_v40  ;;  %v5246_v11 = vpop.f32.mrb[39].mxu1  ;;  %v5262_v40 = vpop.f32.mrb[36].mxu0 }
 0x13c   :  { %6830 = vst [vmem:[#allocation73_spill] sm:$0xff] %v5246_v11  ;;  %1059 = vmatpush1.bf16.msra.mxu0 %v5038_v55  ;;  %1100 = vmatpush1.bf16.msra.mxu1 %v5040_v56  ;;  %6836 = vst [vmem:[#allocation79_spill] sm:$0xff] %v5262_v40  ;;  %v5266_v62 = vpop.f32.mrb[37].mxu0 }
 0x13d   :  { %1156 = vmatprep.subr.bf16.mxu0 %v4860_v14  ;;  %1197 = vmatprep.subr.bf16.mxu1 %v4857_v13  ;;  %6838 = vst [vmem:[#allocation81_spill] sm:$0xff] %v5266_v62  ;;  %v5270_v23 = vpop.f32.mrb[38].mxu0 }
 0x13e   :  { %6840 = vst [vmem:[#allocation83_spill] sm:$0xff] %v5270_v23 }
 0x140   :  { %v5252_v57 = vpop.f32.mrb[40].mxu1 }
 0x141   :  { %6831 = vst [vmem:[#allocation74_spill] sm:$0xff] %v5252_v57  ;;  %v5254_v6 = vpop.f32.mrb[41].mxu1  ;;  %v5274_v57 = vpop.f32.mrb[39].mxu0 }
 0x142   :  { %6832 = vst [vmem:[#allocation75_spill] sm:$0xff] %v5254_v6  ;;  %v5256_v12 = vpop.f32.mrb[42].mxu1  ;;  %6842 = vst [vmem:[#allocation85_spill] sm:$0xff] %v5274_v57 }
 0x143   :  { %6833 = vst [vmem:[#allocation76_spill] sm:$0xff] %v5256_v12  ;;  %v5258_v2 = vpop.f32.mrb[43].mxu1  ;;  %v5278_v12 = vpop.f32.mrb[40].mxu0 }
 0x144   :  { %6834 = vst [vmem:[#allocation77_spill] sm:$0xff] %v5258_v2  ;;  %6844 = vst [vmem:[#allocation87_spill] sm:$0xff] %v5278_v12 }
 0x148   :  { %v5260_v48 = vpop.f32.mrb[44].mxu1 }
 0x149   :  { %6835 = vst [vmem:[#allocation78_spill] sm:$0xff] %v5260_v48  ;;  %v5264_v11 = vpop.f32.mrb[45].mxu1  ;;  %v5282_v48 = vpop.f32.mrb[41].mxu0 }
 0x14a   :  { %6837 = vst [vmem:[#allocation80_spill] sm:$0xff] %v5264_v11  ;;  %v5268_v4 = vpop.f32.mrb[46].mxu1  ;;  %6846 = vst [vmem:[#allocation89_spill] sm:$0xff] %v5282_v48  ;;  %v5286_v11 = vpop.f32.mrb[42].mxu0 }
 0x14b   :  { %6839 = vst [vmem:[#allocation82_spill] sm:$0xff] %v5268_v4  ;;  %v5272_v42 = vpop.f32.mrb[47].mxu1  ;;  %6848 = vst [vmem:[#allocation91_spill] sm:$0xff] %v5286_v11  ;;  %v5290_v4 = vpop.f32.mrb[43].mxu0 }
 0x14c   :  { %6841 = vst [vmem:[#allocation84_spill] sm:$0xff] %v5272_v42  ;;  %6850 = vst [vmem:[#allocation93_spill] sm:$0xff] %v5290_v4  ;;  %v5294_v42 = vpop.f32.mrb[44].mxu0 }
 0x14d   :  { %6852 = vst [vmem:[#allocation95_spill] sm:$0xff] %v5294_v42 }
 0x150   :  { %v5276_v6 = vpop.f32.mrb[48].mxu1 }
 0x151   :  { %6843 = vst [vmem:[#allocation86_spill] sm:$0xff] %v5276_v6  ;;  %v5280_v2 = vpop.f32.mrb[49].mxu1  ;;  %v5298_v6 = vpop.f32.mrb[45].mxu0 }
 0x152   :  { %6845 = vst [vmem:[#allocation88_spill] sm:$0xff] %v5280_v2  ;;  %v5284_v40 = vpop.f32.mrb[50].mxu1  ;;  %6854 = vst [vmem:[#allocation97_spill] sm:$0xff] %v5298_v6  ;;  %v5302_v2 = vpop.f32.mrb[46].mxu0 }
 0x153   :  { %6847 = vst [vmem:[#allocation90_spill] sm:$0xff] %v5284_v40  ;;  %v5288_v62 = vpop.f32.mrb[51].mxu1  ;;  %6856 = vst [vmem:[#allocation99_spill] sm:$0xff] %v5302_v2  ;;  %v5306_v40 = vpop.f32.mrb[47].mxu0 }
 0x154   :  { %6849 = vst [vmem:[#allocation92_spill] sm:$0xff] %v5288_v62  ;;  %6858 = vst [vmem:[#allocation101_spill] sm:$0xff] %v5306_v40 }
 0x158   :  { %v5292_v23 = vpop.f32.mrb[52].mxu1 }
 0x159   :  { %6851 = vst [vmem:[#allocation94_spill] sm:$0xff] %v5292_v23  ;;  %v5296_v57 = vpop.f32.mrb[53].mxu1 }
 0x15a   :  { %6853 = vst [vmem:[#allocation96_spill] sm:$0xff] %v5296_v57  ;;  %v5300_v12 = vpop.f32.mrb[54].mxu1 }
 0x15b   :  { %6855 = vst [vmem:[#allocation98_spill] sm:$0xff] %v5300_v12  ;;  %v5304_v48 = vpop.f32.mrb[55].mxu1 }
 0x15c   :  { %6857 = vst [vmem:[#allocation100_spill] sm:$0xff] %v5304_v48  ;;  %v83_v48 = vsub.s32 1, %v5049_v58 }
 0x15e   :  { %v5326_v40 = vrot.slane %v5055_v60, %v83_v48 }
 0x160   :  { %v5308_v11 = vpop.f32.mrb[56].mxu1 }
 0x161   :  { %6859 = vst [vmem:[#allocation102_spill] sm:$0xff] %v5308_v11  ;;  %v5310_v62 = vpop.f32.mrb[57].mxu1 }
 0x162   :  { %6860 = vst [vmem:[#allocation103_spill] sm:$0xff] %v5310_v62  ;;  %v5312_v4 = vpop.f32.mrb[58].mxu1  ;;  %v298_v62 = vadd.f32 %v5067_v5, %v5058_v61 }
 0x163   :  { %6861 = vst [vmem:[#allocation104_spill] sm:$0xff] %v5312_v4  ;;  %v5314_v23 = vpop.f32.mrb[59].mxu1  ;;  %v471_v4 = vadd.f32 %v5103_v63, %v5092_v38 }
 0x164   :  { %6862 = vst [vmem:[#allocation105_spill] sm:$0xff] %v5314_v23 }
 0x168   :  { %v5316_v42 = vpop.f32.mrb[60].mxu1 }
 0x169   :  { %6863 = vst [vmem:[#allocation106_spill] sm:$0xff] %v5316_v42  ;;  %v5318_v57 = vpop.f32.mrb[61].mxu1  ;;  %v300_v42 = vadd.f32 %v5071_v7, %v5326_v40 }
 0x16a   :  { %6864 = vst [vmem:[#allocation107_spill] sm:$0xff] %v5318_v57  ;;  %v5320_v6 = vpop.f32.mrb[62].mxu1  ;;  %v473_v57 = vadd.f32 %v5107_v8, %v5095_v39 }
 0x16b   :  { %6865 = vst [vmem:[#allocation108_spill] sm:$0xff] %v5320_v6  ;;  %v5322_v12 = vpop.f32.mrb[63].mxu1 }
 0x16c   :  { %6866 = vst [vmem:[#allocation109_spill] sm:$0xff] %v5322_v12 }
 0x1f2   :  { %v966_v6 = vpop.f32.mrb[48].mxu0  ;;  %v1007_v23 = vpop.f32.mrb[64].mxu1 }
 0x1f3   :  { %v1014_v12 = vadd.f32 %v966_v6, %v298_v62  ;;  %v1016_v11 = vadd.f32 %v1007_v23, %v471_v4  ;;  %v968_v58 = vpop.f32.mrb[49].mxu0  ;;  %v1009_v2 = vpop.f32.mrb[65].mxu1 }
 0x1f4   :  { %v1015_v60 = vadd.f32 %v968_v58, %v300_v42  ;;  %v1017_v48 = vadd.f32 %v1009_v2, %v473_v57  ;;  %v970_v1 = vpop.f32.mrb[50].mxu0  ;;  %v1011_v59 = vpop.f32.mrb[66].mxu1 }
 0x1f5   :  { %v1018_v5 = vmul.f32 0.5, %v1014_v12  ;;  %v971_v37 = vpop.f32.mrb[51].mxu0  ;;  %v1012_v43 = vpop.f32.mrb[67].mxu1 }
 0x1f6   :  { %v1027_v63 = vmul.f32 0.5, %v1015_v60  ;;  %v1023_v7 = vmul.f32 0.5, %v1017_v48 }
 0x1f7   :  { %4326 = vtanh.f32 %v1018_v5 }
 0x1f8   :  { %4328 = vtanh.f32 %v1027_v63 }
 0x1f9   :  { %4330 = vtanh.f32 %v1016_v11 }
 0x1fa   :  { %4332 = vtanh.f32 %v1023_v7 }
 0x201   :  { %v4327_v31 = vpop.eup %4326 }
 0x202   :  { %v4329_v8 = vpop.eup %4328  ;;  %v1020_v9 = vmul.f32 0.5, %v4327_v31  ;;  %v479_v31 = vadd.f32 %v5115_v17, %v5095_v39 }
 0x203   :  { %v1029_v16 = vmul.f32 0.5, %v4329_v8  ;;  %v4331_v4 = vpop.eup %4330 }
 0x204   :  { %v1021_v62 = vadd.f32 0.5, %v1020_v9  ;;  %v4333_v37 = vpop.eup %4332  ;;  %v477_v9 = vadd.f32 %v5111_v35, %v5092_v38 }
 0x205   :  { %v1030_v23 = vadd.f32 0.5, %v1029_v16  ;;  %v1025_v12 = vmul.f32 0.5, %v4333_v37  ;;  %v304_v16 = vadd.f32 %v5075_v10, %v5058_v61 }
 0x206   :  { %v1032_v42 = vmul.f32 %v4331_v4, %v1021_v62 }
 0x207   :  { %v1031_v1 = vmul.f32 %v1030_v23, %v5127_v3  ;;  %v1026_v43 = vadd.f32 0.5, %v1025_v12  ;;  %v6867_v3 = vld [vmem:[#allocation15_spill] sm:$0xff] }
 0x208   :  { %v306_v6 = vadd.f32 %v6867_v3, %v5326_v40 }
 0x209   :  { %v5337_v2 = vadd.f32 %v1032_v42, %v1031_v1 }
 0x20b   :  { %4334 = vtanh.f32 %v5337_v2 }
 0x215   :  { %v4335_v59 = vpop.eup %4334 }
 0x216   :  { %v1035_v11 = vmul.f32 %v4335_v59, %v1026_v43 }
 0x218   :  { %v1043_v57 = vpack.c.bf16 %v1035_v11, %v1035_v11 }
 0x21a   :  { %1077 = vmatmul.mubr.bf16.vlgmr.msra.gmra.mrb[52].mxu0 %v1043_v57  ;;  %1118 = vmatmul.mubr.bf16.vlgmr.msra.gmra.mrb[68].mxu1 %v1043_v57 }
 0x21b   :  { %1157 = vmatpush1.bf16.msra.mxu0 %v4862_v15  ;;  %1198 = vmatpush1.bf16.msra.mxu1 %v4890_v22 }
 0x21c   :  { %1158 = vmatprep.subr.bf16.mxu0 %v4875_v18  ;;  %1199 = vmatprep.subr.bf16.mxu1 %v4896_v24 }
 0x21d   :  { %1188 = vmatprep.mubr.bf16.mxu0 %v6808_v0  ;;  %1229 = vmatprep.mubr.bf16.mxu1 %v6808_v0 }
 0x21f   :  { %1159 = vmatpush1.bf16.msra.mxu0 %v4877_v19  ;;  %1200 = vmatpush1.bf16.msra.mxu1 %v4907_v27 }
 0x220   :  { %1160 = vmatprep.subr.bf16.mxu0 %v4886_v20  ;;  %1201 = vmatprep.subr.bf16.mxu1 %v4910_v28 }
 0x223   :  { %1161 = vmatpush1.bf16.msra.mxu0 %v4888_v21  ;;  %1202 = vmatpush1.bf16.msra.mxu1 %v4913_v29 }
 0x224   :  { %1162 = vmatprep.subr.bf16.mxu0 %v4899_v25  ;;  %1203 = vmatprep.subr.bf16.mxu1 %v4921_v32 }
 0x227   :  { %1163 = vmatpush1.bf16.msra.mxu0 %v4903_v26  ;;  %1204 = vmatpush1.bf16.msra.mxu1 %v4927_v33 }
 0x228   :  { %1164 = vmatprep.subr.bf16.mxu0 %v4916_v30  ;;  %1205 = vmatprep.subr.bf16.mxu1 %v4931_v34 }
 0x22b   :  { %1165 = vmatpush1.bf16.msra.mxu0 %v4981_v41  ;;  %1206 = vmatpush1.bf16.msra.mxu1 %v4940_v36 }
 0x22c   :  { %1166 = vmatprep.subr.bf16.mxu0 %v4998_v44  ;;  %1207 = vmatprep.subr.bf16.mxu1 %v5002_v46 }
 0x22f   :  { %1167 = vmatpush1.bf16.msra.mxu0 %v5000_v45  ;;  %1208 = vmatpush1.bf16.msra.mxu1 %v5004_v47 }
 0x230   :  { %1168 = vmatprep.subr.bf16.mxu0 %v5020_v49  ;;  %1209 = vmatprep.subr.bf16.mxu1 %v5022_v50 }
 0x233   :  { %1169 = vmatpush1.bf16.msra.mxu0 %v5024_v51  ;;  %1210 = vmatpush1.bf16.msra.mxu1 %v5026_v52 }
 0x234   :  { %1170 = vmatprep.subr.bf16.mxu0 %v5032_v53  ;;  %1211 = vmatprep.subr.bf16.mxu1 %v5036_v54 }
 0x237   :  { %1171 = vmatpush1.bf16.msra.mxu0 %v5038_v55  ;;  %1212 = vmatpush1.bf16.msra.mxu1 %v5040_v56 }
 0x238   :  { %1268 = vmatprep.subr.bf16.mxu0 %v4860_v14  ;;  %1309 = vmatprep.subr.bf16.mxu1 %v4857_v13 }
 0x2ed   :  { %v1078_v58 = vpop.f32.mrb[52].mxu0  ;;  %v1119_v60 = vpop.f32.mrb[68].mxu1 }
 0x2ee   :  { %v1126_v48 = vadd.f32 %v1078_v58, %v304_v16  ;;  %v1128_v5 = vadd.f32 %v1119_v60, %v477_v9  ;;  %v1080_v63 = vpop.f32.mrb[53].mxu0  ;;  %v1121_v14 = vpop.f32.mrb[69].mxu1 }
 0x2ef   :  { %v1127_v7 = vadd.f32 %v1080_v63, %v306_v6  ;;  %v1129_v13 = vadd.f32 %v1121_v14, %v479_v31  ;;  %v1082_v8 = vpop.f32.mrb[54].mxu0  ;;  %v1123_v62 = vpop.f32.mrb[70].mxu1 }
 0x2f0   :  { %v1130_v35 = vmul.f32 0.5, %v1126_v48  ;;  %v1083_v4 = vpop.f32.mrb[55].mxu0  ;;  %v1124_v23 = vpop.f32.mrb[71].mxu1 }
 0x2f1   :  { %v1139_v10 = vmul.f32 0.5, %v1127_v7  ;;  %v1135_v17 = vmul.f32 0.5, %v1129_v13 }
 0x2f2   :  { %4336 = vtanh.f32 %v1130_v35 }
 0x2f3   :  { %4338 = vtanh.f32 %v1139_v10 }
 0x2f4   :  { %4340 = vtanh.f32 %v1128_v5 }
 0x2f5   :  { %4342 = vtanh.f32 %v1135_v17 }
 0x2fc   :  { %v4337_v42 = vpop.eup %4336 }
 0x2fd   :  { %v4339_v1 = vpop.eup %4338  ;;  %v1132_v37 = vmul.f32 0.5, %v4337_v42 }
 0x2fe   :  { %v1141_v12 = vmul.f32 0.5, %v4339_v1  ;;  %v4341_v59 = vpop.eup %4340 }
 0x2ff   :  { %v1133_v43 = vadd.f32 0.5, %v1132_v37  ;;  %v4343_v31 = vpop.eup %4342 }
 0x300   :  { %v1142_v11 = vadd.f32 0.5, %v1141_v12  ;;  %v1137_v3 = vmul.f32 0.5, %v4343_v31 }
 0x301   :  { %v1144_v57 = vmul.f32 %v4341_v59, %v1133_v43 }
 0x302   :  { %v1143_v9 = vmul.f32 %v1142_v11, %v5337_v2  ;;  %v1138_v6 = vadd.f32 0.5, %v1137_v3 }
 0x304   :  { %v5383_v16 = vadd.f32 %v1144_v57, %v1143_v9 }
 0x306   :  { %4344 = vtanh.f32 %v5383_v16 }
 0x310   :  { %v4345_v58 = vpop.eup %4344 }
 0x311   :  { %v1147_v60 = vmul.f32 %v4345_v58, %v1138_v6 }
 0x313   :  { %v1155_v48 = vpack.c.bf16 %v1147_v60, %v1147_v60 }
 0x315   :  { %1189 = vmatmul.mubr.bf16.vlgmr.msra.gmra.mrb[56].mxu0 %v1155_v48  ;;  %1230 = vmatmul.mubr.bf16.vlgmr.msra.gmra.mrb[72].mxu1 %v1155_v48  ;;  %v5436_v48 = vld [vmem:[#allocation3] ss:$16 sps:$4 sm:$0xff]  }
 0x316   :  { %1269 = vmatpush1.bf16.msra.mxu0 %v4862_v15  ;;  %1310 = vmatpush1.bf16.msra.mxu1 %v4890_v22  ;;  %v5418_v15 = vld [vmem:[#allocation3 + $0x4] ss:$16 sps:$4 sm:$0xff]  }
 0x317   :  { %1270 = vmatprep.subr.bf16.mxu0 %v4875_v18  ;;  %1311 = vmatprep.subr.bf16.mxu1 %v4896_v24  ;;  %v5421_v18 = vld [vmem:[#allocation3 + $0xc] ss:$16 sps:$4 sm:$0xff]   ;;  %v6870_v24 = vld [vmem:[#allocation28_spill] sm:$0xff] }
 0x318   :  { %1300 = vmatprep.mubr.bf16.mxu0 %v6808_v0  ;;  %1341 = vmatprep.mubr.bf16.mxu1 %v6808_v0 }
 0x31a   :  { %1271 = vmatpush1.bf16.msra.mxu0 %v4877_v19  ;;  %1312 = vmatpush1.bf16.msra.mxu1 %v4907_v27  ;;  %v6868_v19 = vld [vmem:[#allocation26_spill] sm:$0xff] }
 0x31b   :  { %1272 = vmatprep.subr.bf16.mxu0 %v4886_v20  ;;  %1313 = vmatprep.subr.bf16.mxu1 %v4910_v28  ;;  %v481_v20 = vadd.f32 %v6868_v19, %v5092_v38  ;;  %v5439_v19 = vld [vmem:[#allocation3 + $0x8] ss:$16 sps:$4 sm:$0xff]  }
 0x31e   :  { %1273 = vmatpush1.bf16.msra.mxu0 %v4888_v21  ;;  %1314 = vmatpush1.bf16.msra.mxu1 %v4913_v29  ;;  %v6869_v21 = vld [vmem:[#allocation17_spill] sm:$0xff] }
 0x31f   :  { %1274 = vmatprep.subr.bf16.mxu0 %v4899_v25  ;;  %1315 = vmatprep.subr.bf16.mxu1 %v4921_v32  ;;  %v308_v22 = vadd.f32 %v6869_v21, %v5058_v61  ;;  %v483_v25 = vadd.f32 %v6870_v24, %v5095_v39  ;;  %v5450_v21 = vld [vmem:[#allocation3 + $0x20] ss:$16 sps:$4 sm:$0xff]   ;;  %v5456_v24 = vld [vmem:[#allocation3 + $0x44] ss:$16 sps:$4 sm:$0xff]  }
 0x322   :  { %1275 = vmatpush1.bf16.msra.mxu0 %v4903_v26  ;;  %1316 = vmatpush1.bf16.msra.mxu1 %v4927_v33  ;;  %v6871_v26 = vld [vmem:[#allocation19_spill] sm:$0xff] }
 0x323   :  { %1276 = vmatprep.subr.bf16.mxu0 %v4916_v30  ;;  %1317 = vmatprep.subr.bf16.mxu1 %v4931_v34  ;;  %v310_v27 = vadd.f32 %v6871_v26, %v5326_v40  ;;  %v5462_v26 = vld [vmem:[#allocation3 + $0x40] ss:$16 sps:$4 sm:$0xff]  }
 0x326   :  { %1277 = vmatpush1.bf16.msra.mxu0 %v4981_v41  ;;  %1318 = vmatpush1.bf16.msra.mxu1 %v4940_v36 }
 0x327   :  { %1278 = vmatprep.subr.bf16.mxu0 %v4998_v44  ;;  %1319 = vmatprep.subr.bf16.mxu1 %v5002_v46 }
 0x32a   :  { %1279 = vmatpush1.bf16.msra.mxu0 %v5000_v45  ;;  %1320 = vmatpush1.bf16.msra.mxu1 %v5004_v47 }
 0x32b   :  { %1280 = vmatprep.subr.bf16.mxu0 %v5020_v49  ;;  %1321 = vmatprep.subr.bf16.mxu1 %v5022_v50 }
 0x32e   :  { %1281 = vmatpush1.bf16.msra.mxu0 %v5024_v51  ;;  %1322 = vmatpush1.bf16.msra.mxu1 %v5026_v52 }
 0x32f   :  { %1282 = vmatprep.subr.bf16.mxu0 %v5032_v53  ;;  %1323 = vmatprep.subr.bf16.mxu1 %v5036_v54 }
 0x332   :  { %1283 = vmatpush1.bf16.msra.mxu0 %v5038_v55  ;;  %1324 = vmatpush1.bf16.msra.mxu1 %v5040_v56 }
 0x333   :  { %1380 = vmatprep.subr.bf16.mxu0 %v5418_v15  ;;  %1421 = vmatprep.subr.bf16.mxu1 %v5421_v18 }
 0x3e8   :  { %v1190_v28 = vpop.f32.mrb[56].mxu0  ;;  %v1231_v29 = vpop.f32.mrb[72].mxu1 }
 0x3e9   :  { %v1238_v30 = vadd.f32 %v1190_v28, %v308_v22  ;;  %v1240_v32 = vadd.f32 %v1231_v29, %v481_v20  ;;  %v1192_v2 = vpop.f32.mrb[57].mxu0  ;;  %v1233_v5 = vpop.f32.mrb[73].mxu1  ;;  %v5445_v20 = vld [vmem:[#allocation3 + $0x2c] ss:$16 sps:$4 sm:$0xff]   ;;  %v5453_v22 = vld [vmem:[#allocation3 + $0x28] ss:$16 sps:$4 sm:$0xff]  }
 0x3ea   :  { %v1239_v63 = vadd.f32 %v1192_v2, %v310_v27  ;;  %v1241_v14 = vadd.f32 %v1233_v5, %v483_v25  ;;  %v1194_v7 = vpop.f32.mrb[58].mxu0  ;;  %v1235_v13 = vpop.f32.mrb[74].mxu1  ;;  %v5459_v25 = vld [vmem:[#allocation3 + $0x4c] ss:$16 sps:$4 sm:$0xff]   ;;  %v5465_v27 = vld [vmem:[#allocation3 + $0x48] ss:$16 sps:$4 sm:$0xff]  }
 0x3eb   :  { %v1242_v8 = vmul.f32 0.5, %v1238_v30  ;;  %v1195_v62 = vpop.f32.mrb[59].mxu0  ;;  %v1236_v35 = vpop.f32.mrb[75].mxu1  ;;  %v5468_v28 = vld [vmem:[#allocation3 + $0x64] ss:$16 sps:$4 sm:$0xff]  }
 0x3ec   :  { %v1251_v4 = vmul.f32 0.5, %v1239_v63  ;;  %v1247_v23 = vmul.f32 0.5, %v1241_v14  ;;  %v5471_v29 = vld [vmem:[#allocation3 + $0x6c] ss:$16 sps:$4 sm:$0xff]   ;;  %v5474_v30 = vld [vmem:[#allocation3 + $0x60] ss:$16 sps:$4 sm:$0xff]  }
 0x3ed   :  { %4346 = vtanh.f32 %v1242_v8  ;;  %v6874_v2 = vld [vmem:[#allocation32_spill] sm:$0xff]  ;;  %v6875_v63 = vld [vmem:[#allocation21_spill] sm:$0xff] }
 0x3ee   :  { %4348 = vtanh.f32 %v1251_v4  ;;  %v489_v5 = vadd.f32 %v6874_v2, %v5095_v39  ;;  %v316_v14 = vadd.f32 %v6875_v63, %v5326_v40 }
 0x3ef   :  { %4350 = vtanh.f32 %v1240_v32  ;;  %v5478_v32 = vld [vmem:[#allocation3 + $0x84] ss:$16 sps:$4 sm:$0xff]  }
 0x3f0   :  { %4352 = vtanh.f32 %v1247_v23 }
 0x3f7   :  { %v4347_v10 = vpop.eup %4346 }
 0x3f8   :  { %v4349_v17 = vpop.eup %4348  ;;  %v1244_v42 = vmul.f32 0.5, %v4347_v10 }
 0x3f9   :  { %v1253_v1 = vmul.f32 0.5, %v4349_v17  ;;  %v4351_v12 = vpop.eup %4350 }
 0x3fa   :  { %v1245_v37 = vadd.f32 0.5, %v1244_v42  ;;  %v4353_v9 = vpop.eup %4352 }
 0x3fb   :  { %v1254_v43 = vadd.f32 0.5, %v1253_v1  ;;  %v1249_v31 = vmul.f32 0.5, %v4353_v9 }
 0x3fc   :  { %v1256_v59 = vmul.f32 %v4351_v12, %v1245_v37 }
 0x3fd   :  { %v1255_v11 = vmul.f32 %v1254_v43, %v5383_v16  ;;  %v1250_v3 = vadd.f32 0.5, %v1249_v31  ;;  %v5442_v16 = vld [vmem:[#allocation3 + $0x24] ss:$16 sps:$4 sm:$0xff]  }
 0x3ff   :  { %v5433_v57 = vadd.f32 %v1256_v59, %v1255_v11 }
 0x401   :  { %4354 = vtanh.f32 %v5433_v57 }
 0x40b   :  { %v4355_v6 = vpop.eup %4354 }
 0x40c   :  { %v1259_v58 = vmul.f32 %v4355_v6, %v1250_v3 }
 0x40e   :  { %v1267_v60 = vpack.c.bf16 %v1259_v58, %v1259_v58 }
 0x410   :  { %1301 = vmatmul.mubr.bf16.vlgmr.msra.gmra.mrb[60].mxu0 %v1267_v60  ;;  %1342 = vmatmul.mubr.bf16.vlgmr.msra.gmra.mrb[76].mxu1 %v1267_v60 }
 0x411   :  { %1381 = vmatpush1.bf16.msra.mxu0 %v5436_v48  ;;  %1422 = vmatpush1.bf16.msra.mxu1 %v5439_v19 }
 0x412   :  { %1382 = vmatprep.subr.bf16.mxu0 %v5442_v16  ;;  %1423 = vmatprep.subr.bf16.mxu1 %v5445_v20 }
 0x413   :  { %1412 = vmatprep.mubr.bf16.mxu0 %v6808_v0  ;;  %1453 = vmatprep.mubr.bf16.mxu1 %v6808_v0 }
 0x415   :  { %1383 = vmatpush1.bf16.msra.mxu0 %v5450_v21  ;;  %1424 = vmatpush1.bf16.msra.mxu1 %v5453_v22 }
 0x416   :  { %1384 = vmatprep.subr.bf16.mxu0 %v5456_v24  ;;  %1425 = vmatprep.subr.bf16.mxu1 %v5459_v25 }
 0x419   :  { %1385 = vmatpush1.bf16.msra.mxu0 %v5462_v26  ;;  %1426 = vmatpush1.bf16.msra.mxu1 %v5465_v27 }
 0x41a   :  { %1386 = vmatprep.subr.bf16.mxu0 %v5468_v28  ;;  %1427 = vmatprep.subr.bf16.mxu1 %v5471_v29 }
 0x41d   :  { %1387 = vmatpush1.bf16.msra.mxu0 %v5474_v30  ;;  %1428 = vmatpush1.bf16.msra.mxu1 %v4927_v33  ;;  %v6872_v33 = vld [vmem:[#allocation30_spill] sm:$0xff] }
 0x41e   :  { %1388 = vmatprep.subr.bf16.mxu0 %v5478_v32  ;;  %1429 = vmatprep.subr.bf16.mxu1 %v4931_v34  ;;  %v487_v34 = vadd.f32 %v6872_v33, %v5092_v38 }
 0x421   :  { %1389 = vmatpush1.bf16.msra.mxu0 %v4981_v41  ;;  %1430 = vmatpush1.bf16.msra.mxu1 %v4940_v36  ;;  %v6873_v36 = vld [vmem:[#allocation20_spill] sm:$0xff] }
 0x422   :  { %1390 = vmatprep.subr.bf16.mxu0 %v4998_v44  ;;  %1431 = vmatprep.subr.bf16.mxu1 %v5002_v46  ;;  %v314_v41 = vadd.f32 %v6873_v36, %v5058_v61 }
 0x425   :  { %1391 = vmatpush1.bf16.msra.mxu0 %v5000_v45  ;;  %1432 = vmatpush1.bf16.msra.mxu1 %v5004_v47 }
 0x426   :  { %1392 = vmatprep.subr.bf16.mxu0 %v5020_v49  ;;  %1433 = vmatprep.subr.bf16.mxu1 %v5022_v50 }
 0x429   :  { %1393 = vmatpush1.bf16.msra.mxu0 %v5024_v51  ;;  %1434 = vmatpush1.bf16.msra.mxu1 %v5026_v52 }
 0x42a   :  { %1394 = vmatprep.subr.bf16.mxu0 %v5032_v53  ;;  %1435 = vmatprep.subr.bf16.mxu1 %v5036_v54 }
 0x42d   :  { %1395 = vmatpush1.bf16.msra.mxu0 %v5038_v55  ;;  %1436 = vmatpush1.bf16.msra.mxu1 %v5040_v56 }
 0x42e   :  { %1492 = vmatprep.subr.bf16.mxu0 %v5418_v15  ;;  %1533 = vmatprep.subr.bf16.mxu1 %v5421_v18 }
 0x4e3   :  { %v1302_v7 = vpop.f32.mrb[60].mxu0  ;;  %v1343_v13 = vpop.f32.mrb[76].mxu1 }
 0x4e4   :  { %v1350_v8 = vadd.f32 %v1302_v7, %v314_v41  ;;  %v1352_v62 = vadd.f32 %v1343_v13, %v487_v34  ;;  %v1304_v35 = vpop.f32.mrb[61].mxu0  ;;  %v1345_v4 = vpop.f32.mrb[77].mxu1  ;;  %v5529_v13 = vld [vmem:[#allocation3 + $0x8c] ss:$16 sps:$4 sm:$0xff]  }
 0x4e5   :  { %v1351_v23 = vadd.f32 %v1304_v35, %v316_v14  ;;  %v1353_v10 = vadd.f32 %v1345_v4, %v489_v5  ;;  %v1306_v17 = vpop.f32.mrb[62].mxu0  ;;  %v1347_v42 = vpop.f32.mrb[78].mxu1 }
 0x4e6   :  { %v1354_v1 = vmul.f32 0.5, %v1350_v8  ;;  %v1307_v37 = vpop.f32.mrb[63].mxu0  ;;  %v1348_v12 = vpop.f32.mrb[79].mxu1  ;;  %v5532_v8 = vld [vmem:[#allocation3 + $0x80] ss:$16 sps:$4 sm:$0xff]  }
 0x4e7   :  { %v1363_v43 = vmul.f32 0.5, %v1351_v23  ;;  %v1359_v59 = vmul.f32 0.5, %v1353_v10 }
 0x4e8   :  { %4356 = vtanh.f32 %v1354_v1 }
 0x4e9   :  { %4358 = vtanh.f32 %v1363_v43 }
 0x4ea   :  { %4360 = vtanh.f32 %v1352_v62  ;;  %v5535_v62 = vld [vmem:[#allocation3 + $0x88] ss:$16 sps:$4 sm:$0xff]  }
 0x4eb   :  { %4362 = vtanh.f32 %v1359_v59 }
 0x4f2   :  { %v4357_v11 = vpop.eup %4356 }
 0x4f3   :  { %v4359_v9 = vpop.eup %4358  ;;  %v1356_v31 = vmul.f32 0.5, %v4357_v11 }
 0x4f4   :  { %v1365_v3 = vmul.f32 0.5, %v4359_v9  ;;  %v4361_v58 = vpop.eup %4360 }
 0x4f5   :  { %v1357_v6 = vadd.f32 0.5, %v1356_v31  ;;  %v4363_v41 = vpop.eup %4362 }
 0x4f6   :  { %v1366_v60 = vadd.f32 0.5, %v1365_v3  ;;  %v1361_v2 = vmul.f32 0.5, %v4363_v41 }
 0x4f7   :  { %v1368_v33 = vmul.f32 %v4361_v58, %v1357_v6 }
 0x4f8   :  { %v1367_v34 = vmul.f32 %v1366_v60, %v5433_v57  ;;  %v1362_v5 = vadd.f32 0.5, %v1361_v2  ;;  %v5525_v57 = vld [vmem:[#allocation3 + $0x68] ss:$16 sps:$4 sm:$0xff]  }
 0x4fa   :  { %v5507_v36 = vadd.f32 %v1368_v33, %v1367_v34 }
 0x4fc   :  { %4364 = vtanh.f32 %v5507_v36 }
 0x506   :  { %v4365_v63 = vpop.eup %4364 }
 0x507   :  { %v1371_v14 = vmul.f32 %v4365_v63, %v1362_v5 }
 0x509   :  { %v1379_v7 = vpack.c.bf16 %v1371_v14, %v1371_v14 }
 0x50b   :  { %1413 = vmatmul.mubr.bf16.vlgmr.msra.gmra.mrb[64].mxu0 %v1379_v7  ;;  %1454 = vmatmul.mubr.bf16.vlgmr.msra.gmra.mrb[80].mxu1 %v1379_v7 }
 0x50c   :  { %1493 = vmatpush1.bf16.msra.mxu0 %v5436_v48  ;;  %1534 = vmatpush1.bf16.msra.mxu1 %v5439_v19 }
 0x50d   :  { %1494 = vmatprep.subr.bf16.mxu0 %v5442_v16  ;;  %1535 = vmatprep.subr.bf16.mxu1 %v5445_v20 }
 0x50e   :  { %1524 = vmatprep.mubr.bf16.mxu0 %v6808_v0  ;;  %1565 = vmatprep.mubr.bf16.mxu1 %v6808_v0 }
 0x510   :  { %1495 = vmatpush1.bf16.msra.mxu0 %v5450_v21  ;;  %1536 = vmatpush1.bf16.msra.mxu1 %v5453_v22 }
 0x511   :  { %1496 = vmatprep.subr.bf16.mxu0 %v5456_v24  ;;  %1537 = vmatprep.subr.bf16.mxu1 %v5459_v25 }
 0x514   :  { %1497 = vmatpush1.bf16.msra.mxu0 %v5462_v26  ;;  %1538 = vmatpush1.bf16.msra.mxu1 %v5465_v27 }
 0x515   :  { %1498 = vmatprep.subr.bf16.mxu0 %v5468_v28  ;;  %1539 = vmatprep.subr.bf16.mxu1 %v5471_v29 }
 0x518   :  { %1499 = vmatpush1.bf16.msra.mxu0 %v5474_v30  ;;  %1540 = vmatpush1.bf16.msra.mxu1 %v5525_v57 }
 0x519   :  { %1500 = vmatprep.subr.bf16.mxu0 %v5478_v32  ;;  %1541 = vmatprep.subr.bf16.mxu1 %v5529_v13 }
 0x51c   :  { %1501 = vmatpush1.bf16.msra.mxu0 %v5532_v8  ;;  %1542 = vmatpush1.bf16.msra.mxu1 %v5535_v62 }
 0x51d   :  { %1502 = vmatprep.subr.bf16.mxu0 %v4998_v44  ;;  %1543 = vmatprep.subr.bf16.mxu1 %v5002_v46  ;;  %v6876_v44 = vld [vmem:[#allocation34_spill] sm:$0xff] }
 0x51e   :  { %v6877_v46 = vld [vmem:[#allocation22_spill] sm:$0xff] }
 0x520   :  { %1503 = vmatpush1.bf16.msra.mxu0 %v5000_v45  ;;  %1544 = vmatpush1.bf16.msra.mxu1 %v5004_v47  ;;  %v491_v45 = vadd.f32 %v6876_v44, %v5092_v38  ;;  %v318_v47 = vadd.f32 %v6877_v46, %v5058_v61  ;;  %v5590_v46 = vld [vmem:[#allocation3 + $0xa0] ss:$16 sps:$4 sm:$0xff]  }
 0x521   :  { %1504 = vmatprep.subr.bf16.mxu0 %v5020_v49  ;;  %1545 = vmatprep.subr.bf16.mxu1 %v5022_v50  ;;  %v6878_v49 = vld [vmem:[#allocation36_spill] sm:$0xff] }
 0x522   :  { %v493_v50 = vadd.f32 %v6878_v49, %v5095_v39  ;;  %v5596_v49 = vld [vmem:[#allocation3 + $0xc4] ss:$16 sps:$4 sm:$0xff]  }
 0x524   :  { %1505 = vmatpush1.bf16.msra.mxu0 %v5024_v51  ;;  %1546 = vmatpush1.bf16.msra.mxu1 %v5026_v52  ;;  %v6879_v51 = vld [vmem:[#allocation23_spill] sm:$0xff] }
 0x525   :  { %1506 = vmatprep.subr.bf16.mxu0 %v5032_v53  ;;  %1547 = vmatprep.subr.bf16.mxu1 %v5036_v54  ;;  %v320_v52 = vadd.f32 %v6879_v51, %v5326_v40  ;;  %v5602_v51 = vld [vmem:[#allocation3 + $0xc0] ss:$16 sps:$4 sm:$0xff]  }
 0x528   :  { %1507 = vmatpush1.bf16.msra.mxu0 %v5038_v55  ;;  %1548 = vmatpush1.bf16.msra.mxu1 %v5040_v56 }
 0x529   :  { %1604 = vmatprep.subr.bf16.mxu0 %v5418_v15  ;;  %1645 = vmatprep.subr.bf16.mxu1 %v5421_v18 }
 0x5de   :  { %v1414_v53 = vpop.f32.mrb[64].mxu0  ;;  %v1455_v54 = vpop.f32.mrb[80].mxu1 }
 0x5df   :  { %v1462_v55 = vadd.f32 %v1414_v53, %v318_v47  ;;  %v1464_v56 = vadd.f32 %v1455_v54, %v491_v45  ;;  %v1416_v35 = vpop.f32.mrb[65].mxu0  ;;  %v1457_v4 = vpop.f32.mrb[81].mxu1  ;;  %v5587_v45 = vld [vmem:[#allocation3 + $0xac] ss:$16 sps:$4 sm:$0xff]   ;;  %v5593_v47 = vld [vmem:[#allocation3 + $0xa8] ss:$16 sps:$4 sm:$0xff]  }
 0x5e0   :  { %v1463_v23 = vadd.f32 %v1416_v35, %v320_v52  ;;  %v1465_v10 = vadd.f32 %v1457_v4, %v493_v50  ;;  %v1418_v17 = vpop.f32.mrb[66].mxu0  ;;  %v1459_v42 = vpop.f32.mrb[82].mxu1  ;;  %v5599_v50 = vld [vmem:[#allocation3 + $0xcc] ss:$16 sps:$4 sm:$0xff]   ;;  %v5605_v52 = vld [vmem:[#allocation3 + $0xc8] ss:$16 sps:$4 sm:$0xff]  }
 0x5e1   :  { %v1466_v1 = vmul.f32 0.5, %v1462_v55  ;;  %v1419_v37 = vpop.f32.mrb[67].mxu0  ;;  %v1460_v12 = vpop.f32.mrb[83].mxu1  ;;  %v5608_v53 = vld [vmem:[#allocation3 + $0xe4] ss:$16 sps:$4 sm:$0xff]  }
 0x5e2   :  { %v1475_v43 = vmul.f32 0.5, %v1463_v23  ;;  %v1471_v59 = vmul.f32 0.5, %v1465_v10  ;;  %v5611_v54 = vld [vmem:[#allocation3 + $0xec] ss:$16 sps:$4 sm:$0xff]   ;;  %v5614_v55 = vld [vmem:[#allocation3 + $0xe0] ss:$16 sps:$4 sm:$0xff]  }
 0x5e3   :  { %4366 = vtanh.f32 %v1466_v1  ;;  %v6880_v35 = vld [vmem:[#allocation38_spill] sm:$0xff]  ;;  %v6881_v23 = vld [vmem:[#allocation24_spill] sm:$0xff]  ;;  %v6883_v1 = vld [vmem:[#allocation25_spill] sm:$0xff] }
 0x5e4   :  { %4368 = vtanh.f32 %v1475_v43  ;;  %v497_v4 = vadd.f32 %v6880_v35, %v5092_v38  ;;  %v324_v10 = vadd.f32 %v6881_v23, %v5058_v61  ;;  %v6882_v17 = vld [vmem:[#allocation40_spill] sm:$0xff]  ;;  %v326_v37 = vadd.f32 %v6883_v1, %v5326_v40 }
 0x5e5   :  { %4370 = vtanh.f32 %v1464_v56  ;;  %v5617_v56 = vld [vmem:[#allocation3 + $0xe8] ss:$16 sps:$4 sm:$0xff]   ;;  %v499_v42 = vadd.f32 %v6882_v17, %v5095_v39 }
 0x5e6   :  { %4372 = vtanh.f32 %v1471_v59 }
 0x5ed   :  { %v4367_v11 = vpop.eup %4366 }
 0x5ee   :  { %v4369_v9 = vpop.eup %4368  ;;  %v1468_v31 = vmul.f32 0.5, %v4367_v11 }
 0x5ef   :  { %v1477_v3 = vmul.f32 0.5, %v4369_v9  ;;  %v4371_v58 = vpop.eup %4370 }
 0x5f0   :  { %v1469_v6 = vadd.f32 0.5, %v1468_v31  ;;  %v4373_v2 = vpop.eup %4372 }
 0x5f1   :  { %v1478_v60 = vadd.f32 0.5, %v1477_v3  ;;  %v1473_v5 = vmul.f32 0.5, %v4373_v2 }
 0x5f2   :  { %v1480_v33 = vmul.f32 %v4371_v58, %v1469_v6 }
 0x5f3   :  { %v1479_v34 = vmul.f32 %v1478_v60, %v5507_v36  ;;  %v1474_v63 = vadd.f32 0.5, %v1473_v5  ;;  %v5584_v36 = vld [vmem:[#allocation3 + $0xa4] ss:$16 sps:$4 sm:$0xff]  }
 0x5f5   :  { %v5561_v41 = vadd.f32 %v1480_v33, %v1479_v34 }
 0x5f7   :  { %4374 = vtanh.f32 %v5561_v41 }
 0x601   :  { %v4375_v14 = vpop.eup %4374 }
 0x602   :  { %v1483_v7 = vmul.f32 %v4375_v14, %v1474_v63 }
 0x604   :  { %v1491_v44 = vpack.c.bf16 %v1483_v7, %v1483_v7 }
 0x606   :  { %1525 = vmatmul.mubr.bf16.vlgmr.msra.gmra.mrb[68].mxu0 %v1491_v44  ;;  %1566 = vmatmul.mubr.bf16.vlgmr.msra.gmra.mrb[84].mxu1 %v1491_v44 }
 0x607   :  { %1605 = vmatpush1.bf16.msra.mxu0 %v5436_v48  ;;  %1646 = vmatpush1.bf16.msra.mxu1 %v5439_v19 }
 0x608   :  { %1606 = vmatprep.subr.bf16.mxu0 %v5442_v16  ;;  %1647 = vmatprep.subr.bf16.mxu1 %v5445_v20 }
 0x609   :  { %1636 = vmatprep.mubr.bf16.mxu0 %v6808_v0  ;;  %1677 = vmatprep.mubr.bf16.mxu1 %v6808_v0 }
 0x60b   :  { %1607 = vmatpush1.bf16.msra.mxu0 %v5450_v21  ;;  %1648 = vmatpush1.bf16.msra.mxu1 %v5453_v22 }
 0x60c   :  { %1608 = vmatprep.subr.bf16.mxu0 %v5456_v24  ;;  %1649 = vmatprep.subr.bf16.mxu1 %v5459_v25 }
 0x60f   :  { %1609 = vmatpush1.bf16.msra.mxu0 %v5462_v26  ;;  %1650 = vmatpush1.bf16.msra.mxu1 %v5465_v27 }
 0x610   :  { %1610 = vmatprep.subr.bf16.mxu0 %v5468_v28  ;;  %1651 = vmatprep.subr.bf16.mxu1 %v5471_v29 }
 0x613   :  { %1611 = vmatpush1.bf16.msra.mxu0 %v5474_v30  ;;  %1652 = vmatpush1.bf16.msra.mxu1 %v5525_v57 }
 0x614   :  { %1612 = vmatprep.subr.bf16.mxu0 %v5478_v32  ;;  %1653 = vmatprep.subr.bf16.mxu1 %v5529_v13 }
 0x617   :  { %1613 = vmatpush1.bf16.msra.mxu0 %v5532_v8  ;;  %1654 = vmatpush1.bf16.msra.mxu1 %v5535_v62 }
 0x618   :  { %1614 = vmatprep.subr.bf16.mxu0 %v5584_v36  ;;  %1655 = vmatprep.subr.bf16.mxu1 %v5587_v45 }
 0x61b   :  { %1615 = vmatpush1.bf16.msra.mxu0 %v5590_v46  ;;  %1656 = vmatpush1.bf16.msra.mxu1 %v5593_v47 }
 0x61c   :  { %1616 = vmatprep.subr.bf16.mxu0 %v5596_v49  ;;  %1657 = vmatprep.subr.bf16.mxu1 %v5599_v50 }
 0x61f   :  { %1617 = vmatpush1.bf16.msra.mxu0 %v5602_v51  ;;  %1658 = vmatpush1.bf16.msra.mxu1 %v5605_v52 }
 0x620   :  { %1618 = vmatprep.subr.bf16.mxu0 %v5608_v53  ;;  %1659 = vmatprep.subr.bf16.mxu1 %v5611_v54 }
 0x623   :  { %1619 = vmatpush1.bf16.msra.mxu0 %v5614_v55  ;;  %1660 = vmatpush1.bf16.msra.mxu1 %v5617_v56 }
 0x624   :  { %1716 = vmatprep.subr.bf16.mxu0 %v5418_v15  ;;  %1757 = vmatprep.subr.bf16.mxu1 %v5421_v18 }
 0x6d9   :  { %v1526_v12 = vpop.f32.mrb[68].mxu0  ;;  %v1567_v43 = vpop.f32.mrb[84].mxu1 }
 0x6da   :  { %v1574_v59 = vadd.f32 %v1526_v12, %v324_v10  ;;  %v1576_v11 = vadd.f32 %v1567_v43, %v497_v4  ;;  %v1528_v9 = vpop.f32.mrb[69].mxu0  ;;  %v1569_v31 = vpop.f32.mrb[85].mxu1 }
 0x6db   :  { %v1575_v3 = vadd.f32 %v1528_v9, %v326_v37  ;;  %v1577_v6 = vadd.f32 %v1569_v31, %v499_v42  ;;  %v1530_v58 = vpop.f32.mrb[70].mxu0  ;;  %v1571_v60 = vpop.f32.mrb[86].mxu1 }
 0x6dc   :  { %v1578_v33 = vmul.f32 0.5, %v1574_v59  ;;  %v1531_v34 = vpop.f32.mrb[71].mxu0  ;;  %v1572_v2 = vpop.f32.mrb[87].mxu1  ;;  %v6886_v58 = vld [vmem:[#allocation44_spill] sm:$0xff] }
 0x6dd   :  { %v1587_v5 = vmul.f32 0.5, %v1575_v3  ;;  %v1583_v63 = vmul.f32 0.5, %v1577_v6  ;;  %v6885_v3 = vld [vmem:[#allocation27_spill] sm:$0xff]  ;;  %v503_v60 = vadd.f32 %v6886_v58, %v5095_v39 }
 0x6de   :  { %4376 = vtanh.f32 %v1578_v33  ;;  %v328_v6 = vadd.f32 %v6885_v3, %v5058_v61  ;;  %v6887_v33 = vld [vmem:[#allocation29_spill] sm:$0xff] }
 0x6df   :  { %4378 = vtanh.f32 %v1587_v5  ;;  %v330_v34 = vadd.f32 %v6887_v33, %v5326_v40 }
 0x6e0   :  { %4380 = vtanh.f32 %v1576_v11 }
 0x6e1   :  { %4382 = vtanh.f32 %v1583_v63 }
 0x6e8   :  { %v4377_v14 = vpop.eup %4376 }
 0x6e9   :  { %v4379_v7 = vpop.eup %4378  ;;  %v1580_v44 = vmul.f32 0.5, %v4377_v14 }
 0x6ea   :  { %v1589_v35 = vmul.f32 0.5, %v4379_v7  ;;  %v4381_v23 = vpop.eup %4380 }
 0x6eb   :  { %v1581_v4 = vadd.f32 0.5, %v1580_v44  ;;  %v4383_v37 = vpop.eup %4382 }
 0x6ec   :  { %v1590_v10 = vadd.f32 0.5, %v1589_v35  ;;  %v1585_v12 = vmul.f32 0.5, %v4383_v37 }
 0x6ed   :  { %v1592_v17 = vmul.f32 %v4381_v23, %v1581_v4 }
 0x6ee   :  { %v1591_v42 = vmul.f32 %v1590_v10, %v5561_v41  ;;  %v1586_v43 = vadd.f32 0.5, %v1585_v12  ;;  %v6884_v41 = vld [vmem:[#allocation42_spill] sm:$0xff] }
 0x6ef   :  { %v501_v31 = vadd.f32 %v6884_v41, %v5092_v38 }
 0x6f0   :  { %v5631_v1 = vadd.f32 %v1592_v17, %v1591_v42 }
 0x6f2   :  { %4384 = vtanh.f32 %v5631_v1 }
 0x6fc   :  { %v4385_v59 = vpop.eup %4384 }
 0x6fd   :  { %v1595_v11 = vmul.f32 %v4385_v59, %v1586_v43 }
 0x6ff   :  { %v1603_v9 = vpack.c.bf16 %v1595_v11, %v1595_v11 }
 0x701   :  { %1637 = vmatmul.mubr.bf16.vlgmr.msra.gmra.mrb[72].mxu0 %v1603_v9  ;;  %1678 = vmatmul.mubr.bf16.vlgmr.msra.gmra.mrb[88].mxu1 %v1603_v9 }
 0x702   :  { %1717 = vmatpush1.bf16.msra.mxu0 %v5436_v48  ;;  %1758 = vmatpush1.bf16.msra.mxu1 %v5439_v19 }
 0x703   :  { %1718 = vmatprep.subr.bf16.mxu0 %v5442_v16  ;;  %1759 = vmatprep.subr.bf16.mxu1 %v5445_v20 }
 0x704   :  { %1748 = vmatprep.mubr.bf16.mxu0 %v6808_v0  ;;  %1789 = vmatprep.mubr.bf16.mxu1 %v6808_v0 }
 0x706   :  { %1719 = vmatpush1.bf16.msra.mxu0 %v5450_v21  ;;  %1760 = vmatpush1.bf16.msra.mxu1 %v5453_v22 }
 0x707   :  { %1720 = vmatprep.subr.bf16.mxu0 %v5456_v24  ;;  %1761 = vmatprep.subr.bf16.mxu1 %v5459_v25 }
 0x70a   :  { %1721 = vmatpush1.bf16.msra.mxu0 %v5462_v26  ;;  %1762 = vmatpush1.bf16.msra.mxu1 %v5465_v27 }
 0x70b   :  { %1722 = vmatprep.subr.bf16.mxu0 %v5468_v28  ;;  %1763 = vmatprep.subr.bf16.mxu1 %v5471_v29 }
 0x70e   :  { %1723 = vmatpush1.bf16.msra.mxu0 %v5474_v30  ;;  %1764 = vmatpush1.bf16.msra.mxu1 %v5525_v57 }
 0x70f   :  { %1724 = vmatprep.subr.bf16.mxu0 %v5478_v32  ;;  %1765 = vmatprep.subr.bf16.mxu1 %v5529_v13 }
 0x712   :  { %1725 = vmatpush1.bf16.msra.mxu0 %v5532_v8  ;;  %1766 = vmatpush1.bf16.msra.mxu1 %v5535_v62 }
 0x713   :  { %1726 = vmatprep.subr.bf16.mxu0 %v5584_v36  ;;  %1767 = vmatprep.subr.bf16.mxu1 %v5587_v45 }
 0x716   :  { %1727 = vmatpush1.bf16.msra.mxu0 %v5590_v46  ;;  %1768 = vmatpush1.bf16.msra.mxu1 %v5593_v47 }
 0x717   :  { %1728 = vmatprep.subr.bf16.mxu0 %v5596_v49  ;;  %1769 = vmatprep.subr.bf16.mxu1 %v5599_v50 }
 0x71a   :  { %1729 = vmatpush1.bf16.msra.mxu0 %v5602_v51  ;;  %1770 = vmatpush1.bf16.msra.mxu1 %v5605_v52 }
 0x71b   :  { %1730 = vmatprep.subr.bf16.mxu0 %v5608_v53  ;;  %1771 = vmatprep.subr.bf16.mxu1 %v5611_v54 }
 0x71e   :  { %1731 = vmatpush1.bf16.msra.mxu0 %v5614_v55  ;;  %1772 = vmatpush1.bf16.msra.mxu1 %v5617_v56 }
 0x71f   :  { %1828 = vmatprep.subr.bf16.mxu0 %v5418_v15  ;;  %1869 = vmatprep.subr.bf16.mxu1 %v5421_v18 }
 0x7d4   :  { %v1638_v2 = vpop.f32.mrb[72].mxu0  ;;  %v1679_v5 = vpop.f32.mrb[88].mxu1 }
 0x7d5   :  { %v1686_v63 = vadd.f32 %v1638_v2, %v328_v6  ;;  %v1688_v14 = vadd.f32 %v1679_v5, %v501_v31  ;;  %v1640_v7 = vpop.f32.mrb[73].mxu0  ;;  %v1681_v44 = vpop.f32.mrb[89].mxu1 }
 0x7d6   :  { %v1687_v35 = vadd.f32 %v1640_v7, %v330_v34  ;;  %v1689_v4 = vadd.f32 %v1681_v44, %v503_v60  ;;  %v1642_v23 = vpop.f32.mrb[74].mxu0  ;;  %v1683_v10 = vpop.f32.mrb[90].mxu1 }
 0x7d7   :  { %v1690_v17 = vmul.f32 0.5, %v1686_v63  ;;  %v1643_v42 = vpop.f32.mrb[75].mxu0  ;;  %v1684_v37 = vpop.f32.mrb[91].mxu1  ;;  %v6890_v23 = vld [vmem:[#allocation48_spill] sm:$0xff] }
 0x7d8   :  { %v1699_v12 = vmul.f32 0.5, %v1687_v35  ;;  %v1695_v43 = vmul.f32 0.5, %v1689_v4  ;;  %v6889_v35 = vld [vmem:[#allocation31_spill] sm:$0xff]  ;;  %v509_v10 = vadd.f32 %v6890_v23, %v5095_v39 }
 0x7d9   :  { %4386 = vtanh.f32 %v1690_v17  ;;  %v334_v4 = vadd.f32 %v6889_v35, %v5058_v61  ;;  %v6891_v17 = vld [vmem:[#allocation33_spill] sm:$0xff] }
 0x7da   :  { %4388 = vtanh.f32 %v1699_v12  ;;  %v336_v42 = vadd.f32 %v6891_v17, %v5326_v40 }
 0x7db   :  { %4390 = vtanh.f32 %v1688_v14 }
 0x7dc   :  { %4392 = vtanh.f32 %v1695_v43 }
 0x7e3   :  { %v4387_v59 = vpop.eup %4386 }
 0x7e4   :  { %v4389_v11 = vpop.eup %4388  ;;  %v1692_v9 = vmul.f32 0.5, %v4387_v59 }
 0x7e5   :  { %v1701_v41 = vmul.f32 0.5, %v4389_v11  ;;  %v4391_v3 = vpop.eup %4390 }
 0x7e6   :  { %v1693_v31 = vadd.f32 0.5, %v1692_v9  ;;  %v4393_v34 = vpop.eup %4392 }
 0x7e7   :  { %v1702_v6 = vadd.f32 0.5, %v1701_v41  ;;  %v1697_v2 = vmul.f32 0.5, %v4393_v34 }
 0x7e8   :  { %v1704_v58 = vmul.f32 %v4391_v3, %v1693_v31 }
 0x7e9   :  { %v1703_v60 = vmul.f32 %v1702_v6, %v5631_v1  ;;  %v1698_v5 = vadd.f32 0.5, %v1697_v2  ;;  %v6888_v1 = vld [vmem:[#allocation46_spill] sm:$0xff] }
 0x7ea   :  { %v507_v44 = vadd.f32 %v6888_v1, %v5092_v38 }
 0x7eb   :  { %v5677_v33 = vadd.f32 %v1704_v58, %v1703_v60 }
 0x7ed   :  { %4394 = vtanh.f32 %v5677_v33 }
 0x7f7   :  { %v4395_v63 = vpop.eup %4394 }
 0x7f8   :  { %v1707_v14 = vmul.f32 %v4395_v63, %v1698_v5 }
 0x7fa   :  { %v1715_v7 = vpack.c.bf16 %v1707_v14, %v1707_v14 }
 0x7fc   :  { %1749 = vmatmul.mubr.bf16.vlgmr.msra.gmra.mrb[76].mxu0 %v1715_v7  ;;  %1790 = vmatmul.mubr.bf16.vlgmr.msra.gmra.mrb[92].mxu1 %v1715_v7 }
 0x7fd   :  { %1829 = vmatpush1.bf16.msra.mxu0 %v5436_v48  ;;  %1870 = vmatpush1.bf16.msra.mxu1 %v5439_v19 }
 0x7fe   :  { %1830 = vmatprep.subr.bf16.mxu0 %v5442_v16  ;;  %1871 = vmatprep.subr.bf16.mxu1 %v5445_v20 }
 0x7ff   :  { %1860 = vmatprep.mubr.bf16.mxu0 %v6808_v0  ;;  %1901 = vmatprep.mubr.bf16.mxu1 %v6808_v0 }
 0x801   :  { %1831 = vmatpush1.bf16.msra.mxu0 %v5450_v21  ;;  %1872 = vmatpush1.bf16.msra.mxu1 %v5453_v22 }
 0x802   :  { %1832 = vmatprep.subr.bf16.mxu0 %v5456_v24  ;;  %1873 = vmatprep.subr.bf16.mxu1 %v5459_v25 }
 0x805   :  { %1833 = vmatpush1.bf16.msra.mxu0 %v5462_v26  ;;  %1874 = vmatpush1.bf16.msra.mxu1 %v5465_v27 }
 0x806   :  { %1834 = vmatprep.subr.bf16.mxu0 %v5468_v28  ;;  %1875 = vmatprep.subr.bf16.mxu1 %v5471_v29 }
 0x809   :  { %1835 = vmatpush1.bf16.msra.mxu0 %v5474_v30  ;;  %1876 = vmatpush1.bf16.msra.mxu1 %v5525_v57 }
 0x80a   :  { %1836 = vmatprep.subr.bf16.mxu0 %v5478_v32  ;;  %1877 = vmatprep.subr.bf16.mxu1 %v5529_v13 }
 0x80d   :  { %1837 = vmatpush1.bf16.msra.mxu0 %v5532_v8  ;;  %1878 = vmatpush1.bf16.msra.mxu1 %v5535_v62 }
 0x80e   :  { %1838 = vmatprep.subr.bf16.mxu0 %v5584_v36  ;;  %1879 = vmatprep.subr.bf16.mxu1 %v5587_v45 }
 0x811   :  { %1839 = vmatpush1.bf16.msra.mxu0 %v5590_v46  ;;  %1880 = vmatpush1.bf16.msra.mxu1 %v5593_v47 }
 0x812   :  { %1840 = vmatprep.subr.bf16.mxu0 %v5596_v49  ;;  %1881 = vmatprep.subr.bf16.mxu1 %v5599_v50 }
 0x815   :  { %1841 = vmatpush1.bf16.msra.mxu0 %v5602_v51  ;;  %1882 = vmatpush1.bf16.msra.mxu1 %v5605_v52 }
 0x816   :  { %1842 = vmatprep.subr.bf16.mxu0 %v5608_v53  ;;  %1883 = vmatprep.subr.bf16.mxu1 %v5611_v54 }
 0x819   :  { %1843 = vmatpush1.bf16.msra.mxu0 %v5614_v55  ;;  %1884 = vmatpush1.bf16.msra.mxu1 %v5617_v56 }
 0x81a   :  { %1940 = vmatprep.subr.bf16.mxu0 %v5418_v15  ;;  %1981 = vmatprep.subr.bf16.mxu1 %v5421_v18 }
 0x8cf   :  { %v1750_v37 = vpop.f32.mrb[76].mxu0  ;;  %v1791_v12 = vpop.f32.mrb[92].mxu1 }
 0x8d0   :  { %v1798_v43 = vadd.f32 %v1750_v37, %v334_v4  ;;  %v1800_v59 = vadd.f32 %v1791_v12, %v507_v44  ;;  %v1752_v11 = vpop.f32.mrb[77].mxu0  ;;  %v1793_v9 = vpop.f32.mrb[93].mxu1 }
 0x8d1   :  { %v1799_v41 = vadd.f32 %v1752_v11, %v336_v42  ;;  %v1801_v31 = vadd.f32 %v1793_v9, %v509_v10  ;;  %v1754_v3 = vpop.f32.mrb[78].mxu0  ;;  %v1795_v6 = vpop.f32.mrb[94].mxu1 }
 0x8d2   :  { %v1802_v58 = vmul.f32 0.5, %v1798_v43  ;;  %v1755_v60 = vpop.f32.mrb[79].mxu0  ;;  %v1796_v34 = vpop.f32.mrb[95].mxu1  ;;  %v6894_v3 = vld [vmem:[#allocation52_spill] sm:$0xff] }
 0x8d3   :  { %v1811_v2 = vmul.f32 0.5, %v1799_v41  ;;  %v1807_v5 = vmul.f32 0.5, %v1801_v31  ;;  %v6893_v41 = vld [vmem:[#allocation35_spill] sm:$0xff]  ;;  %v513_v6 = vadd.f32 %v6894_v3, %v5095_v39 }
 0x8d4   :  { %4396 = vtanh.f32 %v1802_v58  ;;  %v338_v31 = vadd.f32 %v6893_v41, %v5058_v61  ;;  %v6895_v58 = vld [vmem:[#allocation37_spill] sm:$0xff] }
 0x8d5   :  { %4398 = vtanh.f32 %v1811_v2  ;;  %v340_v60 = vadd.f32 %v6895_v58, %v5326_v40 }
 0x8d6   :  { %4400 = vtanh.f32 %v1800_v59 }
 0x8d7   :  { %4402 = vtanh.f32 %v1807_v5 }
 0x8de   :  { %v4397_v63 = vpop.eup %4396 }
 0x8df   :  { %v4399_v14 = vpop.eup %4398  ;;  %v1804_v7 = vmul.f32 0.5, %v4397_v63 }
 0x8e0   :  { %v1813_v1 = vmul.f32 0.5, %v4399_v14  ;;  %v4401_v35 = vpop.eup %4400 }
 0x8e1   :  { %v1805_v44 = vadd.f32 0.5, %v1804_v7  ;;  %v4403_v42 = vpop.eup %4402 }
 0x8e2   :  { %v1814_v4 = vadd.f32 0.5, %v1813_v1  ;;  %v1809_v37 = vmul.f32 0.5, %v4403_v42 }
 0x8e3   :  { %v1816_v23 = vmul.f32 %v4401_v35, %v1805_v44 }
 0x8e4   :  { %v1815_v10 = vmul.f32 %v1814_v4, %v5677_v33  ;;  %v1810_v12 = vadd.f32 0.5, %v1809_v37  ;;  %v6892_v33 = vld [vmem:[#allocation50_spill] sm:$0xff] }
 0x8e5   :  { %v511_v9 = vadd.f32 %v6892_v33, %v5092_v38 }
 0x8e6   :  { %v5723_v17 = vadd.f32 %v1816_v23, %v1815_v10 }
 0x8e8   :  { %4404 = vtanh.f32 %v5723_v17 }
 0x8f2   :  { %v4405_v43 = vpop.eup %4404 }
 0x8f3   :  { %v1819_v59 = vmul.f32 %v4405_v43, %v1810_v12 }
 0x8f5   :  { %v1827_v11 = vpack.c.bf16 %v1819_v59, %v1819_v59 }
 0x8f7   :  { %1861 = vmatmul.mubr.bf16.vlgmr.msra.gmra.mrb[80].mxu0 %v1827_v11  ;;  %1902 = vmatmul.mubr.bf16.vlgmr.msra.gmra.mrb[96].mxu1 %v1827_v11 }
 0x8f8   :  { %1941 = vmatpush1.bf16.msra.mxu0 %v5436_v48  ;;  %1982 = vmatpush1.bf16.msra.mxu1 %v5439_v19 }
 0x8f9   :  { %1942 = vmatprep.subr.bf16.mxu0 %v5442_v16  ;;  %1983 = vmatprep.subr.bf16.mxu1 %v5445_v20 }
 0x8fa   :  { %1972 = vmatprep.mubr.bf16.mxu0 %v6808_v0  ;;  %2013 = vmatprep.mubr.bf16.mxu1 %v6808_v0 }
 0x8fc   :  { %1943 = vmatpush1.bf16.msra.mxu0 %v5450_v21  ;;  %1984 = vmatpush1.bf16.msra.mxu1 %v5453_v22 }
 0x8fd   :  { %1944 = vmatprep.subr.bf16.mxu0 %v5456_v24  ;;  %1985 = vmatprep.subr.bf16.mxu1 %v5459_v25 }
 0x900   :  { %1945 = vmatpush1.bf16.msra.mxu0 %v5462_v26  ;;  %1986 = vmatpush1.bf16.msra.mxu1 %v5465_v27 }
 0x901   :  { %1946 = vmatprep.subr.bf16.mxu0 %v5468_v28  ;;  %1987 = vmatprep.subr.bf16.mxu1 %v5471_v29 }
 0x904   :  { %1947 = vmatpush1.bf16.msra.mxu0 %v5474_v30  ;;  %1988 = vmatpush1.bf16.msra.mxu1 %v5525_v57 }
 0x905   :  { %1948 = vmatprep.subr.bf16.mxu0 %v5478_v32  ;;  %1989 = vmatprep.subr.bf16.mxu1 %v5529_v13 }
 0x908   :  { %1949 = vmatpush1.bf16.msra.mxu0 %v5532_v8  ;;  %1990 = vmatpush1.bf16.msra.mxu1 %v5535_v62 }
 0x909   :  { %1950 = vmatprep.subr.bf16.mxu0 %v5584_v36  ;;  %1991 = vmatprep.subr.bf16.mxu1 %v5587_v45 }
 0x90c   :  { %1951 = vmatpush1.bf16.msra.mxu0 %v5590_v46  ;;  %1992 = vmatpush1.bf16.msra.mxu1 %v5593_v47 }
 0x90d   :  { %1952 = vmatprep.subr.bf16.mxu0 %v5596_v49  ;;  %1993 = vmatprep.subr.bf16.mxu1 %v5599_v50 }
 0x910   :  { %1953 = vmatpush1.bf16.msra.mxu0 %v5602_v51  ;;  %1994 = vmatpush1.bf16.msra.mxu1 %v5605_v52 }
 0x911   :  { %1954 = vmatprep.subr.bf16.mxu0 %v5608_v53  ;;  %1995 = vmatprep.subr.bf16.mxu1 %v5611_v54 }
 0x914   :  { %1955 = vmatpush1.bf16.msra.mxu0 %v5614_v55  ;;  %1996 = vmatpush1.bf16.msra.mxu1 %v5617_v56 }
 0x915   :  { %2052 = vmatprep.subr.bf16.mxu0 %v5418_v15  ;;  %2093 = vmatprep.subr.bf16.mxu1 %v5421_v18 }
 0x9ca   :  { %v1862_v34 = vpop.f32.mrb[80].mxu0  ;;  %v1903_v2 = vpop.f32.mrb[96].mxu1 }
 0x9cb   :  { %v1910_v5 = vadd.f32 %v1862_v34, %v338_v31  ;;  %v1912_v63 = vadd.f32 %v1903_v2, %v511_v9  ;;  %v1864_v14 = vpop.f32.mrb[81].mxu0  ;;  %v1905_v15 = vpop.f32.mrb[97].mxu1 }
 0x9cc   :  { %v1911_v7 = vadd.f32 %v1864_v14, %v340_v60  ;;  %v1913_v18 = vadd.f32 %v1905_v15, %v513_v6  ;;  %v1866_v1 = vpop.f32.mrb[82].mxu0  ;;  %v1907_v44 = vpop.f32.mrb[98].mxu1 }
 0x9cd   :  { %v1914_v35 = vmul.f32 0.5, %v1910_v5  ;;  %v1867_v4 = vpop.f32.mrb[83].mxu0  ;;  %v1908_v23 = vpop.f32.mrb[99].mxu1 }
 0x9ce   :  { %v1923_v10 = vmul.f32 0.5, %v1911_v7  ;;  %v1919_v42 = vmul.f32 0.5, %v1913_v18 }
 0x9cf   :  { %4406 = vtanh.f32 %v1914_v35 }
 0x9d0   :  { %4408 = vtanh.f32 %v1923_v10 }
 0x9d1   :  { %4410 = vtanh.f32 %v1912_v63 }
 0x9d2   :  { %4412 = vtanh.f32 %v1919_v42 }
 0x9d9   :  { %v4407_v37 = vpop.eup %4406 }
 0x9da   :  { %v4409_v12 = vpop.eup %4408  ;;  %v1916_v43 = vmul.f32 0.5, %v4407_v37 }
 0x9db   :  { %v1925_v59 = vmul.f32 0.5, %v4409_v12  ;;  %v4411_v33 = vpop.eup %4410 }
 0x9dc   :  { %v1917_v11 = vadd.f32 0.5, %v1916_v43  ;;  %v4413_v6 = vpop.eup %4412 }
 0x9dd   :  { %v1926_v9 = vadd.f32 0.5, %v1925_v59  ;;  %v1921_v58 = vmul.f32 0.5, %v4413_v6 }
 0x9de   :  { %v1928_v41 = vmul.f32 %v4411_v33, %v1917_v11 }
 0x9df   :  { %v1927_v31 = vmul.f32 %v1926_v9, %v5723_v17  ;;  %v1922_v60 = vadd.f32 0.5, %v1921_v58 }
 0x9e1   :  { %v5769_v3 = vadd.f32 %v1928_v41, %v1927_v31 }
 0x9e3   :  { %4414 = vtanh.f32 %v5769_v3 }
 0x9ed   :  { %v4415_v34 = vpop.eup %4414 }
 0x9ee   :  { %v1931_v2 = vmul.f32 %v4415_v34, %v1922_v60 }
 0x9f0   :  { %v1939_v5 = vpack.c.bf16 %v1931_v2, %v1931_v2 }
 0x9f2   :  { %1973 = vmatmul.mubr.bf16.vlgmr.msra.gmra.mrb[84].mxu0 %v1939_v5  ;;  %2014 = vmatmul.mubr.bf16.vlgmr.msra.gmra.mrb[100].mxu1 %v1939_v5  ;;  %v5822_v5 = vld [vmem:[#allocation3] ss:$16 sps:$4 sm:$0xff]  }
 0x9f3   :  { %2053 = vmatpush1.bf16.msra.mxu0 %v5436_v48  ;;  %2094 = vmatpush1.bf16.msra.mxu1 %v5439_v19  ;;  %v5804_v48 = vld [vmem:[#allocation3 + $0x4] ss:$16 sps:$4 sm:$0xff]   ;;  %v5807_v19 = vld [vmem:[#allocation3 + $0xc] ss:$16 sps:$4 sm:$0xff]  }
 0x9f4   :  { %2054 = vmatprep.subr.bf16.mxu0 %v5442_v16  ;;  %2095 = vmatprep.subr.bf16.mxu1 %v5445_v20  ;;  %v6896_v16 = vld [vmem:[#allocation54_spill] sm:$0xff] }
 0x9f5   :  { %2084 = vmatprep.mubr.bf16.mxu0 %v6808_v0  ;;  %2125 = vmatprep.mubr.bf16.mxu1 %v6808_v0  ;;  %v517_v20 = vadd.f32 %v6896_v16, %v5092_v38  ;;  %v5825_v16 = vld [vmem:[#allocation3 + $0x8] ss:$16 sps:$4 sm:$0xff]  }
 0x9f7   :  { %2055 = vmatpush1.bf16.msra.mxu0 %v5450_v21  ;;  %2096 = vmatpush1.bf16.msra.mxu1 %v5453_v22  ;;  %v6897_v21 = vld [vmem:[#allocation39_spill] sm:$0xff] }
 0x9f8   :  { %2056 = vmatprep.subr.bf16.mxu0 %v5456_v24  ;;  %2097 = vmatprep.subr.bf16.mxu1 %v5459_v25  ;;  %v344_v22 = vadd.f32 %v6897_v21, %v5058_v61  ;;  %v6898_v24 = vld [vmem:[#allocation56_spill] sm:$0xff] }
 0x9f9   :  { %v519_v25 = vadd.f32 %v6898_v24, %v5095_v39  ;;  %v5836_v21 = vld [vmem:[#allocation3 + $0x20] ss:$16 sps:$4 sm:$0xff]   ;;  %v5842_v24 = vld [vmem:[#allocation3 + $0x44] ss:$16 sps:$4 sm:$0xff]  }
 0x9fb   :  { %2057 = vmatpush1.bf16.msra.mxu0 %v5462_v26  ;;  %2098 = vmatpush1.bf16.msra.mxu1 %v5465_v27  ;;  %v6899_v26 = vld [vmem:[#allocation41_spill] sm:$0xff] }
 0x9fc   :  { %2058 = vmatprep.subr.bf16.mxu0 %v5468_v28  ;;  %2099 = vmatprep.subr.bf16.mxu1 %v5471_v29  ;;  %v346_v27 = vadd.f32 %v6899_v26, %v5326_v40  ;;  %v5848_v26 = vld [vmem:[#allocation3 + $0x40] ss:$16 sps:$4 sm:$0xff]  }
 0x9ff   :  { %2059 = vmatpush1.bf16.msra.mxu0 %v5474_v30  ;;  %2100 = vmatpush1.bf16.msra.mxu1 %v5525_v57 }
 0xa00   :  { %2060 = vmatprep.subr.bf16.mxu0 %v5478_v32  ;;  %2101 = vmatprep.subr.bf16.mxu1 %v5529_v13 }
 0xa03   :  { %2061 = vmatpush1.bf16.msra.mxu0 %v5532_v8  ;;  %2102 = vmatpush1.bf16.msra.mxu1 %v5535_v62 }
 0xa04   :  { %2062 = vmatprep.subr.bf16.mxu0 %v5584_v36  ;;  %2103 = vmatprep.subr.bf16.mxu1 %v5587_v45 }
 0xa07   :  { %2063 = vmatpush1.bf16.msra.mxu0 %v5590_v46  ;;  %2104 = vmatpush1.bf16.msra.mxu1 %v5593_v47 }
 0xa08   :  { %2064 = vmatprep.subr.bf16.mxu0 %v5596_v49  ;;  %2105 = vmatprep.subr.bf16.mxu1 %v5599_v50 }
 0xa0b   :  { %2065 = vmatpush1.bf16.msra.mxu0 %v5602_v51  ;;  %2106 = vmatpush1.bf16.msra.mxu1 %v5605_v52 }
 0xa0c   :  { %2066 = vmatprep.subr.bf16.mxu0 %v5608_v53  ;;  %2107 = vmatprep.subr.bf16.mxu1 %v5611_v54 }
 0xa0f   :  { %2067 = vmatpush1.bf16.msra.mxu0 %v5614_v55  ;;  %2108 = vmatpush1.bf16.msra.mxu1 %v5617_v56 }
 0xa10   :  { %2164 = vmatprep.subr.bf16.mxu0 %v5804_v48  ;;  %2205 = vmatprep.subr.bf16.mxu1 %v5807_v19 }
 0xac5   :  { %v1974_v28 = vpop.f32.mrb[84].mxu0  ;;  %v2015_v29 = vpop.f32.mrb[100].mxu1 }
 0xac6   :  { %v2022_v30 = vadd.f32 %v1974_v28, %v344_v22  ;;  %v2024_v32 = vadd.f32 %v2015_v29, %v517_v20  ;;  %v1976_v17 = vpop.f32.mrb[85].mxu0  ;;  %v2017_v63 = vpop.f32.mrb[101].mxu1  ;;  %v5831_v20 = vld [vmem:[#allocation3 + $0x2c] ss:$16 sps:$4 sm:$0xff]   ;;  %v5839_v22 = vld [vmem:[#allocation3 + $0x28] ss:$16 sps:$4 sm:$0xff]  }
 0xac7   :  { %v2023_v14 = vadd.f32 %v1976_v17, %v346_v27  ;;  %v2025_v15 = vadd.f32 %v2017_v63, %v519_v25  ;;  %v1978_v7 = vpop.f32.mrb[86].mxu0  ;;  %v2019_v18 = vpop.f32.mrb[102].mxu1  ;;  %v5845_v25 = vld [vmem:[#allocation3 + $0x4c] ss:$16 sps:$4 sm:$0xff]   ;;  %v5851_v27 = vld [vmem:[#allocation3 + $0x48] ss:$16 sps:$4 sm:$0xff]  }
 0xac8   :  { %v2026_v1 = vmul.f32 0.5, %v2022_v30  ;;  %v1979_v44 = vpop.f32.mrb[87].mxu0  ;;  %v2020_v35 = vpop.f32.mrb[103].mxu1  ;;  %v5854_v28 = vld [vmem:[#allocation3 + $0x64] ss:$16 sps:$4 sm:$0xff]  }
 0xac9   :  { %v2035_v4 = vmul.f32 0.5, %v2023_v14  ;;  %v2031_v23 = vmul.f32 0.5, %v2025_v15  ;;  %v5857_v29 = vld [vmem:[#allocation3 + $0x6c] ss:$16 sps:$4 sm:$0xff]   ;;  %v5860_v30 = vld [vmem:[#allocation3 + $0x60] ss:$16 sps:$4 sm:$0xff]  }
 0xaca   :  { %4416 = vtanh.f32 %v2026_v1  ;;  %v6902_v17 = vld [vmem:[#allocation60_spill] sm:$0xff]  ;;  %v6903_v14 = vld [vmem:[#allocation45_spill] sm:$0xff] }
 0xacb   :  { %4418 = vtanh.f32 %v2035_v4  ;;  %v523_v63 = vadd.f32 %v6902_v17, %v5095_v39  ;;  %v350_v15 = vadd.f32 %v6903_v14, %v5326_v40 }
 0xacc   :  { %4420 = vtanh.f32 %v2024_v32  ;;  %v5864_v32 = vld [vmem:[#allocation3 + $0x84] ss:$16 sps:$4 sm:$0xff]  }
 0xacd   :  { %4422 = vtanh.f32 %v2031_v23 }
 0xad4   :  { %v4417_v10 = vpop.eup %4416 }
 0xad5   :  { %v4419_v42 = vpop.eup %4418  ;;  %v2028_v37 = vmul.f32 0.5, %v4417_v10 }
 0xad6   :  { %v2037_v12 = vmul.f32 0.5, %v4419_v42  ;;  %v4421_v59 = vpop.eup %4420 }
 0xad7   :  { %v2029_v43 = vadd.f32 0.5, %v2028_v37  ;;  %v4423_v31 = vpop.eup %4422 }
 0xad8   :  { %v2038_v11 = vadd.f32 0.5, %v2037_v12  ;;  %v2033_v6 = vmul.f32 0.5, %v4423_v31 }
 0xad9   :  { %v2040_v33 = vmul.f32 %v4421_v59, %v2029_v43 }
 0xada   :  { %v2039_v9 = vmul.f32 %v2038_v11, %v5769_v3  ;;  %v2034_v58 = vadd.f32 0.5, %v2033_v6  ;;  %v5828_v3 = vld [vmem:[#allocation3 + $0x24] ss:$16 sps:$4 sm:$0xff]  }
 0xadc   :  { %v5819_v41 = vadd.f32 %v2040_v33, %v2039_v9 }
 0xade   :  { %4424 = vtanh.f32 %v5819_v41 }
 0xae8   :  { %v4425_v60 = vpop.eup %4424 }
 0xae9   :  { %v2043_v34 = vmul.f32 %v4425_v60, %v2034_v58 }
 0xaeb   :  { %v2051_v2 = vpack.c.bf16 %v2043_v34, %v2043_v34 }
 0xaed   :  { %2085 = vmatmul.mubr.bf16.vlgmr.msra.gmra.mrb[88].mxu0 %v2051_v2  ;;  %2126 = vmatmul.mubr.bf16.vlgmr.msra.gmra.mrb[104].mxu1 %v2051_v2 }
 0xaee   :  { %2165 = vmatpush1.bf16.msra.mxu0 %v5822_v5  ;;  %2206 = vmatpush1.bf16.msra.mxu1 %v5825_v16 }
 0xaef   :  { %2166 = vmatprep.subr.bf16.mxu0 %v5828_v3  ;;  %2207 = vmatprep.subr.bf16.mxu1 %v5831_v20 }
 0xaf0   :  { %2196 = vmatprep.mubr.bf16.mxu0 %v6808_v0  ;;  %2237 = vmatprep.mubr.bf16.mxu1 %v6808_v0 }
 0xaf2   :  { %2167 = vmatpush1.bf16.msra.mxu0 %v5836_v21  ;;  %2208 = vmatpush1.bf16.msra.mxu1 %v5839_v22 }
 0xaf3   :  { %2168 = vmatprep.subr.bf16.mxu0 %v5842_v24  ;;  %2209 = vmatprep.subr.bf16.mxu1 %v5845_v25 }
 0xaf6   :  { %2169 = vmatpush1.bf16.msra.mxu0 %v5848_v26  ;;  %2210 = vmatpush1.bf16.msra.mxu1 %v5851_v27 }
 0xaf7   :  { %2170 = vmatprep.subr.bf16.mxu0 %v5854_v28  ;;  %2211 = vmatprep.subr.bf16.mxu1 %v5857_v29 }
 0xafa   :  { %2171 = vmatpush1.bf16.msra.mxu0 %v5860_v30  ;;  %2212 = vmatpush1.bf16.msra.mxu1 %v5525_v57  ;;  %v6900_v57 = vld [vmem:[#allocation58_spill] sm:$0xff] }
 0xafb   :  { %2172 = vmatprep.subr.bf16.mxu0 %v5864_v32  ;;  %2213 = vmatprep.subr.bf16.mxu1 %v5529_v13  ;;  %v521_v13 = vadd.f32 %v6900_v57, %v5092_v38 }
 0xafe   :  { %2173 = vmatpush1.bf16.msra.mxu0 %v5532_v8  ;;  %2214 = vmatpush1.bf16.msra.mxu1 %v5535_v62  ;;  %v6901_v8 = vld [vmem:[#allocation43_spill] sm:$0xff] }
 0xaff   :  { %2174 = vmatprep.subr.bf16.mxu0 %v5584_v36  ;;  %2215 = vmatprep.subr.bf16.mxu1 %v5587_v45  ;;  %v348_v62 = vadd.f32 %v6901_v8, %v5058_v61 }
 0xb02   :  { %2175 = vmatpush1.bf16.msra.mxu0 %v5590_v46  ;;  %2216 = vmatpush1.bf16.msra.mxu1 %v5593_v47 }
 0xb03   :  { %2176 = vmatprep.subr.bf16.mxu0 %v5596_v49  ;;  %2217 = vmatprep.subr.bf16.mxu1 %v5599_v50 }
 0xb06   :  { %2177 = vmatpush1.bf16.msra.mxu0 %v5602_v51  ;;  %2218 = vmatpush1.bf16.msra.mxu1 %v5605_v52 }
 0xb07   :  { %2178 = vmatprep.subr.bf16.mxu0 %v5608_v53  ;;  %2219 = vmatprep.subr.bf16.mxu1 %v5611_v54 }
 0xb0a   :  { %2179 = vmatpush1.bf16.msra.mxu0 %v5614_v55  ;;  %2220 = vmatpush1.bf16.msra.mxu1 %v5617_v56 }
 0xb0b   :  { %2276 = vmatprep.subr.bf16.mxu0 %v5804_v48  ;;  %2317 = vmatprep.subr.bf16.mxu1 %v5807_v19 }
 0xbc0   :  { %v2086_v7 = vpop.f32.mrb[88].mxu0  ;;  %v2127_v18 = vpop.f32.mrb[104].mxu1 }
 0xbc1   :  { %v2134_v1 = vadd.f32 %v2086_v7, %v348_v62  ;;  %v2136_v44 = vadd.f32 %v2127_v18, %v521_v13  ;;  %v2088_v35 = vpop.f32.mrb[89].mxu0  ;;  %v2129_v4 = vpop.f32.mrb[105].mxu1  ;;  %v5915_v18 = vld [vmem:[#allocation3 + $0x8c] ss:$16 sps:$4 sm:$0xff]  }
 0xbc2   :  { %v2135_v23 = vadd.f32 %v2088_v35, %v350_v15  ;;  %v2137_v10 = vadd.f32 %v2129_v4, %v523_v63  ;;  %v2090_v42 = vpop.f32.mrb[90].mxu0  ;;  %v2131_v37 = vpop.f32.mrb[106].mxu1 }
 0xbc3   :  { %v2138_v12 = vmul.f32 0.5, %v2134_v1  ;;  %v2091_v43 = vpop.f32.mrb[91].mxu0  ;;  %v2132_v59 = vpop.f32.mrb[107].mxu1  ;;  %v5918_v1 = vld [vmem:[#allocation3 + $0x80] ss:$16 sps:$4 sm:$0xff]  }
 0xbc4   :  { %v2147_v11 = vmul.f32 0.5, %v2135_v23  ;;  %v2143_v33 = vmul.f32 0.5, %v2137_v10 }
 0xbc5   :  { %4426 = vtanh.f32 %v2138_v12 }
 0xbc6   :  { %4428 = vtanh.f32 %v2147_v11 }
 0xbc7   :  { %4430 = vtanh.f32 %v2136_v44  ;;  %v5921_v44 = vld [vmem:[#allocation3 + $0x88] ss:$16 sps:$4 sm:$0xff]  }
 0xbc8   :  { %4432 = vtanh.f32 %v2143_v33 }
 0xbcf   :  { %v4427_v9 = vpop.eup %4426 }
 0xbd0   :  { %v4429_v31 = vpop.eup %4428  ;;  %v2140_v6 = vmul.f32 0.5, %v4427_v9 }
 0xbd1   :  { %v2149_v58 = vmul.f32 0.5, %v4429_v31  ;;  %v4431_v34 = vpop.eup %4430 }
 0xbd2   :  { %v2141_v60 = vadd.f32 0.5, %v2140_v6  ;;  %v4433_v62 = vpop.eup %4432 }
 0xbd3   :  { %v2150_v2 = vadd.f32 0.5, %v2149_v58  ;;  %v2145_v17 = vmul.f32 0.5, %v4433_v62 }
 0xbd4   :  { %v2152_v57 = vmul.f32 %v4431_v34, %v2141_v60 }
 0xbd5   :  { %v2151_v13 = vmul.f32 %v2150_v2, %v5819_v41  ;;  %v2146_v63 = vadd.f32 0.5, %v2145_v17  ;;  %v5911_v41 = vld [vmem:[#allocation3 + $0x68] ss:$16 sps:$4 sm:$0xff]  }
 0xbd7   :  { %v5893_v8 = vadd.f32 %v2152_v57, %v2151_v13 }
 0xbd9   :  { %4434 = vtanh.f32 %v5893_v8 }
 0xbe3   :  { %v4435_v14 = vpop.eup %4434 }
 0xbe4   :  { %v2155_v15 = vmul.f32 %v4435_v14, %v2146_v63 }
 0xbe6   :  { %v2163_v7 = vpack.c.bf16 %v2155_v15, %v2155_v15 }
 0xbe8   :  { %2197 = vmatmul.mubr.bf16.vlgmr.msra.gmra.mrb[92].mxu0 %v2163_v7  ;;  %2238 = vmatmul.mubr.bf16.vlgmr.msra.gmra.mrb[108].mxu1 %v2163_v7 }
 0xbe9   :  { %2277 = vmatpush1.bf16.msra.mxu0 %v5822_v5  ;;  %2318 = vmatpush1.bf16.msra.mxu1 %v5825_v16 }
 0xbea   :  { %2278 = vmatprep.subr.bf16.mxu0 %v5828_v3  ;;  %2319 = vmatprep.subr.bf16.mxu1 %v5831_v20 }
 0xbeb   :  { %2308 = vmatprep.mubr.bf16.mxu0 %v6808_v0  ;;  %2349 = vmatprep.mubr.bf16.mxu1 %v6808_v0 }
 0xbed   :  { %2279 = vmatpush1.bf16.msra.mxu0 %v5836_v21  ;;  %2320 = vmatpush1.bf16.msra.mxu1 %v5839_v22 }
 0xbee   :  { %2280 = vmatprep.subr.bf16.mxu0 %v5842_v24  ;;  %2321 = vmatprep.subr.bf16.mxu1 %v5845_v25 }
 0xbf1   :  { %2281 = vmatpush1.bf16.msra.mxu0 %v5848_v26  ;;  %2322 = vmatpush1.bf16.msra.mxu1 %v5851_v27 }
 0xbf2   :  { %2282 = vmatprep.subr.bf16.mxu0 %v5854_v28  ;;  %2323 = vmatprep.subr.bf16.mxu1 %v5857_v29 }
 0xbf5   :  { %2283 = vmatpush1.bf16.msra.mxu0 %v5860_v30  ;;  %2324 = vmatpush1.bf16.msra.mxu1 %v5911_v41 }
 0xbf6   :  { %2284 = vmatprep.subr.bf16.mxu0 %v5864_v32  ;;  %2325 = vmatprep.subr.bf16.mxu1 %v5915_v18 }
 0xbf9   :  { %2285 = vmatpush1.bf16.msra.mxu0 %v5918_v1  ;;  %2326 = vmatpush1.bf16.msra.mxu1 %v5921_v44 }
 0xbfa   :  { %2286 = vmatprep.subr.bf16.mxu0 %v5584_v36  ;;  %2327 = vmatprep.subr.bf16.mxu1 %v5587_v45  ;;  %v6904_v36 = vld [vmem:[#allocation62_spill] sm:$0xff] }
 0xbfb   :  { %v527_v45 = vadd.f32 %v6904_v36, %v5092_v38 }
 0xbfd   :  { %2287 = vmatpush1.bf16.msra.mxu0 %v5590_v46  ;;  %2328 = vmatpush1.bf16.msra.mxu1 %v5593_v47  ;;  %v6905_v46 = vld [vmem:[#allocation47_spill] sm:$0xff] }
 0xbfe   :  { %2288 = vmatprep.subr.bf16.mxu0 %v5596_v49  ;;  %2329 = vmatprep.subr.bf16.mxu1 %v5599_v50  ;;  %v354_v47 = vadd.f32 %v6905_v46, %v5058_v61  ;;  %v6906_v49 = vld [vmem:[#allocation64_spill] sm:$0xff] }
 0xbff   :  { %v529_v50 = vadd.f32 %v6906_v49, %v5095_v39  ;;  %v5976_v46 = vld [vmem:[#allocation3 + $0xa0] ss:$16 sps:$4 sm:$0xff]   ;;  %v5982_v49 = vld [vmem:[#allocation3 + $0xc4] ss:$16 sps:$4 sm:$0xff]  }
 0xc01   :  { %2289 = vmatpush1.bf16.msra.mxu0 %v5602_v51  ;;  %2330 = vmatpush1.bf16.msra.mxu1 %v5605_v52  ;;  %v6907_v51 = vld [vmem:[#allocation49_spill] sm:$0xff] }
 0xc02   :  { %2290 = vmatprep.subr.bf16.mxu0 %v5608_v53  ;;  %2331 = vmatprep.subr.bf16.mxu1 %v5611_v54  ;;  %v356_v52 = vadd.f32 %v6907_v51, %v5326_v40  ;;  %v5988_v51 = vld [vmem:[#allocation3 + $0xc0] ss:$16 sps:$4 sm:$0xff]  }
 0xc05   :  { %2291 = vmatpush1.bf16.msra.mxu0 %v5614_v55  ;;  %2332 = vmatpush1.bf16.msra.mxu1 %v5617_v56 }
 0xc06   :  { %2388 = vmatprep.subr.bf16.mxu0 %v5804_v48  ;;  %2429 = vmatprep.subr.bf16.mxu1 %v5807_v19 }
 0xcbb   :  { %v2198_v53 = vpop.f32.mrb[92].mxu0  ;;  %v2239_v54 = vpop.f32.mrb[108].mxu1 }
 0xcbc   :  { %v2246_v55 = vadd.f32 %v2198_v53, %v354_v47  ;;  %v2248_v56 = vadd.f32 %v2239_v54, %v527_v45  ;;  %v2200_v35 = vpop.f32.mrb[93].mxu0  ;;  %v2241_v4 = vpop.f32.mrb[109].mxu1  ;;  %v5973_v45 = vld [vmem:[#allocation3 + $0xac] ss:$16 sps:$4 sm:$0xff]   ;;  %v5979_v47 = vld [vmem:[#allocation3 + $0xa8] ss:$16 sps:$4 sm:$0xff]  }
 0xcbd   :  { %v2247_v23 = vadd.f32 %v2200_v35, %v356_v52  ;;  %v2249_v10 = vadd.f32 %v2241_v4, %v529_v50  ;;  %v2202_v42 = vpop.f32.mrb[94].mxu0  ;;  %v2243_v37 = vpop.f32.mrb[110].mxu1  ;;  %v5985_v50 = vld [vmem:[#allocation3 + $0xcc] ss:$16 sps:$4 sm:$0xff]   ;;  %v5991_v52 = vld [vmem:[#allocation3 + $0xc8] ss:$16 sps:$4 sm:$0xff]  }
 0xcbe   :  { %v2250_v12 = vmul.f32 0.5, %v2246_v55  ;;  %v2203_v43 = vpop.f32.mrb[95].mxu0  ;;  %v2244_v59 = vpop.f32.mrb[111].mxu1  ;;  %v5994_v53 = vld [vmem:[#allocation3 + $0xe4] ss:$16 sps:$4 sm:$0xff]  }
 0xcbf   :  { %v2259_v11 = vmul.f32 0.5, %v2247_v23  ;;  %v2255_v33 = vmul.f32 0.5, %v2249_v10  ;;  %v5997_v54 = vld [vmem:[#allocation3 + $0xec] ss:$16 sps:$4 sm:$0xff]   ;;  %v6000_v55 = vld [vmem:[#allocation3 + $0xe0] ss:$16 sps:$4 sm:$0xff]  }
 0xcc0   :  { %4436 = vtanh.f32 %v2250_v12  ;;  %v6908_v35 = vld [vmem:[#allocation66_spill] sm:$0xff]  ;;  %v6909_v23 = vld [vmem:[#allocation51_spill] sm:$0xff]  ;;  %v6910_v42 = vld [vmem:[#allocation68_spill] sm:$0xff] }
 0xcc1   :  { %4438 = vtanh.f32 %v2259_v11  ;;  %v531_v4 = vadd.f32 %v6908_v35, %v5092_v38  ;;  %v358_v10 = vadd.f32 %v6909_v23, %v5058_v61  ;;  %v533_v37 = vadd.f32 %v6910_v42, %v5095_v39  ;;  %v6911_v12 = vld [vmem:[#allocation53_spill] sm:$0xff] }
 0xcc2   :  { %4440 = vtanh.f32 %v2248_v56  ;;  %v6003_v56 = vld [vmem:[#allocation3 + $0xe8] ss:$16 sps:$4 sm:$0xff]   ;;  %v360_v43 = vadd.f32 %v6911_v12, %v5326_v40 }
 0xcc3   :  { %4442 = vtanh.f32 %v2255_v33 }
 0xcca   :  { %v4437_v9 = vpop.eup %4436 }
 0xccb   :  { %v4439_v31 = vpop.eup %4438  ;;  %v2252_v6 = vmul.f32 0.5, %v4437_v9 }
 0xccc   :  { %v2261_v58 = vmul.f32 0.5, %v4439_v31  ;;  %v4441_v34 = vpop.eup %4440 }
 0xccd   :  { %v2253_v60 = vadd.f32 0.5, %v2252_v6  ;;  %v4443_v17 = vpop.eup %4442 }
 0xcce   :  { %v2262_v2 = vadd.f32 0.5, %v2261_v58  ;;  %v2257_v63 = vmul.f32 0.5, %v4443_v17 }
 0xccf   :  { %v2264_v57 = vmul.f32 %v4441_v34, %v2253_v60 }
 0xcd0   :  { %v2263_v13 = vmul.f32 %v2262_v2, %v5893_v8  ;;  %v2258_v14 = vadd.f32 0.5, %v2257_v63  ;;  %v5970_v8 = vld [vmem:[#allocation3 + $0xa4] ss:$16 sps:$4 sm:$0xff]  }
 0xcd2   :  { %v5947_v62 = vadd.f32 %v2264_v57, %v2263_v13 }
 0xcd4   :  { %4444 = vtanh.f32 %v5947_v62 }
 0xcde   :  { %v4445_v15 = vpop.eup %4444 }
 0xcdf   :  { %v2267_v7 = vmul.f32 %v4445_v15, %v2258_v14 }
 0xce1   :  { %v2275_v36 = vpack.c.bf16 %v2267_v7, %v2267_v7 }
 0xce3   :  { %2309 = vmatmul.mubr.bf16.vlgmr.msra.gmra.mrb[96].mxu0 %v2275_v36  ;;  %2350 = vmatmul.mubr.bf16.vlgmr.msra.gmra.mrb[112].mxu1 %v2275_v36 }
 0xce4   :  { %2389 = vmatpush1.bf16.msra.mxu0 %v5822_v5  ;;  %2430 = vmatpush1.bf16.msra.mxu1 %v5825_v16 }
 0xce5   :  { %2390 = vmatprep.subr.bf16.mxu0 %v5828_v3  ;;  %2431 = vmatprep.subr.bf16.mxu1 %v5831_v20 }
 0xce6   :  { %2420 = vmatprep.mubr.bf16.mxu0 %v6808_v0  ;;  %2461 = vmatprep.mubr.bf16.mxu1 %v6808_v0 }
 0xce8   :  { %2391 = vmatpush1.bf16.msra.mxu0 %v5836_v21  ;;  %2432 = vmatpush1.bf16.msra.mxu1 %v5839_v22 }
 0xce9   :  { %2392 = vmatprep.subr.bf16.mxu0 %v5842_v24  ;;  %2433 = vmatprep.subr.bf16.mxu1 %v5845_v25 }
 0xcec   :  { %2393 = vmatpush1.bf16.msra.mxu0 %v5848_v26  ;;  %2434 = vmatpush1.bf16.msra.mxu1 %v5851_v27 }
 0xced   :  { %2394 = vmatprep.subr.bf16.mxu0 %v5854_v28  ;;  %2435 = vmatprep.subr.bf16.mxu1 %v5857_v29 }
 0xcf0   :  { %2395 = vmatpush1.bf16.msra.mxu0 %v5860_v30  ;;  %2436 = vmatpush1.bf16.msra.mxu1 %v5911_v41 }
 0xcf1   :  { %2396 = vmatprep.subr.bf16.mxu0 %v5864_v32  ;;  %2437 = vmatprep.subr.bf16.mxu1 %v5915_v18 }
 0xcf4   :  { %2397 = vmatpush1.bf16.msra.mxu0 %v5918_v1  ;;  %2438 = vmatpush1.bf16.msra.mxu1 %v5921_v44 }
 0xcf5   :  { %2398 = vmatprep.subr.bf16.mxu0 %v5970_v8  ;;  %2439 = vmatprep.subr.bf16.mxu1 %v5973_v45 }
 0xcf8   :  { %2399 = vmatpush1.bf16.msra.mxu0 %v5976_v46  ;;  %2440 = vmatpush1.bf16.msra.mxu1 %v5979_v47 }
 0xcf9   :  { %2400 = vmatprep.subr.bf16.mxu0 %v5982_v49  ;;  %2441 = vmatprep.subr.bf16.mxu1 %v5985_v50 }
 0xcfc   :  { %2401 = vmatpush1.bf16.msra.mxu0 %v5988_v51  ;;  %2442 = vmatpush1.bf16.msra.mxu1 %v5991_v52 }
 0xcfd   :  { %2402 = vmatprep.subr.bf16.mxu0 %v5994_v53  ;;  %2443 = vmatprep.subr.bf16.mxu1 %v5997_v54 }
 0xd00   :  { %2403 = vmatpush1.bf16.msra.mxu0 %v6000_v55  ;;  %2444 = vmatpush1.bf16.msra.mxu1 %v6003_v56 }
 0xd01   :  { %2500 = vmatprep.subr.bf16.mxu0 %v5804_v48  ;;  %2541 = vmatprep.subr.bf16.mxu1 %v5807_v19 }
 0xdb6   :  { %v2310_v59 = vpop.f32.mrb[96].mxu0  ;;  %v2351_v11 = vpop.f32.mrb[112].mxu1 }
 0xdb7   :  { %v2358_v33 = vadd.f32 %v2310_v59, %v358_v10  ;;  %v2360_v9 = vadd.f32 %v2351_v11, %v531_v4  ;;  %v2312_v31 = vpop.f32.mrb[97].mxu0  ;;  %v2353_v6 = vpop.f32.mrb[113].mxu1 }
 0xdb8   :  { %v2359_v58 = vadd.f32 %v2312_v31, %v360_v43  ;;  %v2361_v60 = vadd.f32 %v2353_v6, %v533_v37  ;;  %v2314_v34 = vpop.f32.mrb[98].mxu0  ;;  %v2355_v2 = vpop.f32.mrb[114].mxu1 }
 0xdb9   :  { %v2362_v57 = vmul.f32 0.5, %v2358_v33  ;;  %v2315_v13 = vpop.f32.mrb[99].mxu0  ;;  %v2356_v17 = vpop.f32.mrb[115].mxu1  ;;  %v6914_v34 = vld [vmem:[#allocation71_spill] sm:$0xff] }
 0xdba   :  { %v2371_v63 = vmul.f32 0.5, %v2359_v58  ;;  %v2367_v14 = vmul.f32 0.5, %v2361_v60  ;;  %v6913_v58 = vld [vmem:[#allocation55_spill] sm:$0xff]  ;;  %v539_v2 = vadd.f32 %v6914_v34, %v5095_v39 }
 0xdbb   :  { %4446 = vtanh.f32 %v2362_v57  ;;  %v364_v60 = vadd.f32 %v6913_v58, %v5058_v61  ;;  %v6915_v57 = vld [vmem:[#allocation57_spill] sm:$0xff] }
 0xdbc   :  { %4448 = vtanh.f32 %v2371_v63  ;;  %v366_v13 = vadd.f32 %v6915_v57, %v5326_v40 }
 0xdbd   :  { %4450 = vtanh.f32 %v2360_v9 }
 0xdbe   :  { %4452 = vtanh.f32 %v2367_v14 }
 0xdc5   :  { %v4447_v15 = vpop.eup %4446 }
 0xdc6   :  { %v4449_v7 = vpop.eup %4448  ;;  %v2364_v36 = vmul.f32 0.5, %v4447_v15 }
 0xdc7   :  { %v2373_v35 = vmul.f32 0.5, %v4449_v7  ;;  %v4451_v23 = vpop.eup %4450 }
 0xdc8   :  { %v2365_v4 = vadd.f32 0.5, %v2364_v36  ;;  %v4453_v43 = vpop.eup %4452 }
 0xdc9   :  { %v2374_v10 = vadd.f32 0.5, %v2373_v35  ;;  %v2369_v59 = vmul.f32 0.5, %v4453_v43 }
 0xdca   :  { %v2376_v42 = vmul.f32 %v4451_v23, %v2365_v4 }
 0xdcb   :  { %v2375_v37 = vmul.f32 %v2374_v10, %v5947_v62  ;;  %v2370_v11 = vadd.f32 0.5, %v2369_v59  ;;  %v6912_v62 = vld [vmem:[#allocation70_spill] sm:$0xff] }
 0xdcc   :  { %v537_v6 = vadd.f32 %v6912_v62, %v5092_v38 }
 0xdcd   :  { %v6017_v12 = vadd.f32 %v2376_v42, %v2375_v37 }
 0xdcf   :  { %4454 = vtanh.f32 %v6017_v12 }
 0xdd9   :  { %v4455_v33 = vpop.eup %4454 }
 0xdda   :  { %v2379_v9 = vmul.f32 %v4455_v33, %v2370_v11 }
 0xddc   :  { %v2387_v31 = vpack.c.bf16 %v2379_v9, %v2379_v9 }
 0xdde   :  { %2421 = vmatmul.mubr.bf16.vlgmr.msra.gmra.mrb[100].mxu0 %v2387_v31  ;;  %2462 = vmatmul.mubr.bf16.vlgmr.msra.gmra.mrb[116].mxu1 %v2387_v31 }
 0xddf   :  { %2501 = vmatpush1.bf16.msra.mxu0 %v5822_v5  ;;  %2542 = vmatpush1.bf16.msra.mxu1 %v5825_v16 }
 0xde0   :  { %2502 = vmatprep.subr.bf16.mxu0 %v5828_v3  ;;  %2543 = vmatprep.subr.bf16.mxu1 %v5831_v20 }
 0xde1   :  { %2532 = vmatprep.mubr.bf16.mxu0 %v6808_v0  ;;  %2573 = vmatprep.mubr.bf16.mxu1 %v6808_v0 }
 0xde3   :  { %2503 = vmatpush1.bf16.msra.mxu0 %v5836_v21  ;;  %2544 = vmatpush1.bf16.msra.mxu1 %v5839_v22 }
 0xde4   :  { %2504 = vmatprep.subr.bf16.mxu0 %v5842_v24  ;;  %2545 = vmatprep.subr.bf16.mxu1 %v5845_v25 }
 0xde7   :  { %2505 = vmatpush1.bf16.msra.mxu0 %v5848_v26  ;;  %2546 = vmatpush1.bf16.msra.mxu1 %v5851_v27 }
 0xde8   :  { %2506 = vmatprep.subr.bf16.mxu0 %v5854_v28  ;;  %2547 = vmatprep.subr.bf16.mxu1 %v5857_v29 }
 0xdeb   :  { %2507 = vmatpush1.bf16.msra.mxu0 %v5860_v30  ;;  %2548 = vmatpush1.bf16.msra.mxu1 %v5911_v41 }
 0xdec   :  { %2508 = vmatprep.subr.bf16.mxu0 %v5864_v32  ;;  %2549 = vmatprep.subr.bf16.mxu1 %v5915_v18 }
 0xdef   :  { %2509 = vmatpush1.bf16.msra.mxu0 %v5918_v1  ;;  %2550 = vmatpush1.bf16.msra.mxu1 %v5921_v44 }
 0xdf0   :  { %2510 = vmatprep.subr.bf16.mxu0 %v5970_v8  ;;  %2551 = vmatprep.subr.bf16.mxu1 %v5973_v45 }
 0xdf3   :  { %2511 = vmatpush1.bf16.msra.mxu0 %v5976_v46  ;;  %2552 = vmatpush1.bf16.msra.mxu1 %v5979_v47 }
 0xdf4   :  { %2512 = vmatprep.subr.bf16.mxu0 %v5982_v49  ;;  %2553 = vmatprep.subr.bf16.mxu1 %v5985_v50 }
 0xdf7   :  { %2513 = vmatpush1.bf16.msra.mxu0 %v5988_v51  ;;  %2554 = vmatpush1.bf16.msra.mxu1 %v5991_v52 }
 0xdf8   :  { %2514 = vmatprep.subr.bf16.mxu0 %v5994_v53  ;;  %2555 = vmatprep.subr.bf16.mxu1 %v5997_v54 }
 0xdfb   :  { %2515 = vmatpush1.bf16.msra.mxu0 %v6000_v55  ;;  %2556 = vmatpush1.bf16.msra.mxu1 %v6003_v56 }
 0xdfc   :  { %2612 = vmatprep.subr.bf16.mxu0 %v5804_v48  ;;  %2653 = vmatprep.subr.bf16.mxu1 %v5807_v19 }
 0xeb1   :  { %v2422_v17 = vpop.f32.mrb[100].mxu0  ;;  %v2463_v63 = vpop.f32.mrb[116].mxu1 }
 0xeb2   :  { %v2470_v14 = vadd.f32 %v2422_v17, %v364_v60  ;;  %v2472_v15 = vadd.f32 %v2463_v63, %v537_v6  ;;  %v2424_v7 = vpop.f32.mrb[101].mxu0  ;;  %v2465_v36 = vpop.f32.mrb[117].mxu1 }
 0xeb3   :  { %v2471_v35 = vadd.f32 %v2424_v7, %v366_v13  ;;  %v2473_v4 = vadd.f32 %v2465_v36, %v539_v2  ;;  %v2426_v23 = vpop.f32.mrb[102].mxu0  ;;  %v2467_v10 = vpop.f32.mrb[118].mxu1 }
 0xeb4   :  { %v2474_v42 = vmul.f32 0.5, %v2470_v14  ;;  %v2427_v37 = vpop.f32.mrb[103].mxu0  ;;  %v2468_v43 = vpop.f32.mrb[119].mxu1  ;;  %v6918_v23 = vld [vmem:[#allocation73_spill] sm:$0xff] }
 0xeb5   :  { %v2483_v59 = vmul.f32 0.5, %v2471_v35  ;;  %v2479_v11 = vmul.f32 0.5, %v2473_v4  ;;  %v6917_v35 = vld [vmem:[#allocation59_spill] sm:$0xff]  ;;  %v543_v10 = vadd.f32 %v6918_v23, %v5095_v39 }
 0xeb6   :  { %4456 = vtanh.f32 %v2474_v42  ;;  %v368_v4 = vadd.f32 %v6917_v35, %v5058_v61  ;;  %v6919_v42 = vld [vmem:[#allocation61_spill] sm:$0xff] }
 0xeb7   :  { %4458 = vtanh.f32 %v2483_v59  ;;  %v370_v37 = vadd.f32 %v6919_v42, %v5326_v40 }
 0xeb8   :  { %4460 = vtanh.f32 %v2472_v15 }
 0xeb9   :  { %4462 = vtanh.f32 %v2479_v11 }
 0xec0   :  { %v4457_v33 = vpop.eup %4456 }
 0xec1   :  { %v4459_v9 = vpop.eup %4458  ;;  %v2476_v31 = vmul.f32 0.5, %v4457_v33 }
 0xec2   :  { %v2485_v62 = vmul.f32 0.5, %v4459_v9  ;;  %v4461_v58 = vpop.eup %4460 }
 0xec3   :  { %v2477_v6 = vadd.f32 0.5, %v2476_v31  ;;  %v4463_v13 = vpop.eup %4462 }
 0xec4   :  { %v2486_v60 = vadd.f32 0.5, %v2485_v62  ;;  %v2481_v17 = vmul.f32 0.5, %v4463_v13 }
 0xec5   :  { %v2488_v34 = vmul.f32 %v4461_v58, %v2477_v6 }
 0xec6   :  { %v2487_v2 = vmul.f32 %v2486_v60, %v6017_v12  ;;  %v2482_v63 = vadd.f32 0.5, %v2481_v17  ;;  %v6916_v12 = vld [vmem:[#allocation72_spill] sm:$0xff] }
 0xec7   :  { %v541_v36 = vadd.f32 %v6916_v12, %v5092_v38 }
 0xec8   :  { %v6063_v57 = vadd.f32 %v2488_v34, %v2487_v2 }
 0xeca   :  { %4464 = vtanh.f32 %v6063_v57 }
 0xed4   :  { %v4465_v14 = vpop.eup %4464 }
 0xed5   :  { %v2491_v15 = vmul.f32 %v4465_v14, %v2482_v63 }
 0xed7   :  { %v2499_v7 = vpack.c.bf16 %v2491_v15, %v2491_v15 }
 0xed9   :  { %2533 = vmatmul.mubr.bf16.vlgmr.msra.gmra.mrb[104].mxu0 %v2499_v7  ;;  %2574 = vmatmul.mubr.bf16.vlgmr.msra.gmra.mrb[120].mxu1 %v2499_v7 }
 0xeda   :  { %2613 = vmatpush1.bf16.msra.mxu0 %v5822_v5  ;;  %2654 = vmatpush1.bf16.msra.mxu1 %v5825_v16 }
 0xedb   :  { %2614 = vmatprep.subr.bf16.mxu0 %v5828_v3  ;;  %2655 = vmatprep.subr.bf16.mxu1 %v5831_v20 }
 0xedc   :  { %2644 = vmatprep.mubr.bf16.mxu0 %v6808_v0  ;;  %2685 = vmatprep.mubr.bf16.mxu1 %v6808_v0 }
 0xede   :  { %2615 = vmatpush1.bf16.msra.mxu0 %v5836_v21  ;;  %2656 = vmatpush1.bf16.msra.mxu1 %v5839_v22 }
 0xedf   :  { %2616 = vmatprep.subr.bf16.mxu0 %v5842_v24  ;;  %2657 = vmatprep.subr.bf16.mxu1 %v5845_v25 }
 0xee2   :  { %2617 = vmatpush1.bf16.msra.mxu0 %v5848_v26  ;;  %2658 = vmatpush1.bf16.msra.mxu1 %v5851_v27 }
 0xee3   :  { %2618 = vmatprep.subr.bf16.mxu0 %v5854_v28  ;;  %2659 = vmatprep.subr.bf16.mxu1 %v5857_v29 }
 0xee6   :  { %2619 = vmatpush1.bf16.msra.mxu0 %v5860_v30  ;;  %2660 = vmatpush1.bf16.msra.mxu1 %v5911_v41 }
 0xee7   :  { %2620 = vmatprep.subr.bf16.mxu0 %v5864_v32  ;;  %2661 = vmatprep.subr.bf16.mxu1 %v5915_v18 }
 0xeea   :  { %2621 = vmatpush1.bf16.msra.mxu0 %v5918_v1  ;;  %2662 = vmatpush1.bf16.msra.mxu1 %v5921_v44 }
 0xeeb   :  { %2622 = vmatprep.subr.bf16.mxu0 %v5970_v8  ;;  %2663 = vmatprep.subr.bf16.mxu1 %v5973_v45 }
 0xeee   :  { %2623 = vmatpush1.bf16.msra.mxu0 %v5976_v46  ;;  %2664 = vmatpush1.bf16.msra.mxu1 %v5979_v47 }
 0xeef   :  { %2624 = vmatprep.subr.bf16.mxu0 %v5982_v49  ;;  %2665 = vmatprep.subr.bf16.mxu1 %v5985_v50 }
 0xef2   :  { %2625 = vmatpush1.bf16.msra.mxu0 %v5988_v51  ;;  %2666 = vmatpush1.bf16.msra.mxu1 %v5991_v52 }
 0xef3   :  { %2626 = vmatprep.subr.bf16.mxu0 %v5994_v53  ;;  %2667 = vmatprep.subr.bf16.mxu1 %v5997_v54 }
 0xef6   :  { %2627 = vmatpush1.bf16.msra.mxu0 %v6000_v55  ;;  %2668 = vmatpush1.bf16.msra.mxu1 %v6003_v56 }
 0xef7   :  { %2724 = vmatprep.subr.bf16.mxu0 %v5804_v48  ;;  %2765 = vmatprep.subr.bf16.mxu1 %v5807_v19 }
 0xfac   :  { %v2534_v43 = vpop.f32.mrb[104].mxu0  ;;  %v2575_v59 = vpop.f32.mrb[120].mxu1 }
 0xfad   :  { %v2582_v11 = vadd.f32 %v2534_v43, %v368_v4  ;;  %v2584_v33 = vadd.f32 %v2575_v59, %v541_v36  ;;  %v2536_v9 = vpop.f32.mrb[105].mxu0  ;;  %v2577_v31 = vpop.f32.mrb[121].mxu1 }
 0xfae   :  { %v2583_v62 = vadd.f32 %v2536_v9, %v370_v37  ;;  %v2585_v6 = vadd.f32 %v2577_v31, %v543_v10  ;;  %v2538_v58 = vpop.f32.mrb[106].mxu0  ;;  %v2579_v60 = vpop.f32.mrb[122].mxu1 }
 0xfaf   :  { %v2586_v34 = vmul.f32 0.5, %v2582_v11  ;;  %v2539_v2 = vpop.f32.mrb[107].mxu0  ;;  %v2580_v13 = vpop.f32.mrb[123].mxu1  ;;  %v6922_v58 = vld [vmem:[#allocation75_spill] sm:$0xff] }
 0xfb0   :  { %v2595_v17 = vmul.f32 0.5, %v2583_v62  ;;  %v2591_v63 = vmul.f32 0.5, %v2585_v6  ;;  %v6921_v62 = vld [vmem:[#allocation63_spill] sm:$0xff]  ;;  %v549_v60 = vadd.f32 %v6922_v58, %v5095_v39 }
 0xfb1   :  { %4466 = vtanh.f32 %v2586_v34  ;;  %v374_v6 = vadd.f32 %v6921_v62, %v5058_v61  ;;  %v6923_v34 = vld [vmem:[#allocation65_spill] sm:$0xff] }
 0xfb2   :  { %4468 = vtanh.f32 %v2595_v17  ;;  %v376_v2 = vadd.f32 %v6923_v34, %v5326_v40 }
 0xfb3   :  { %4470 = vtanh.f32 %v2584_v33 }
 0xfb4   :  { %4472 = vtanh.f32 %v2591_v63 }
 0xfbb   :  { %v4467_v14 = vpop.eup %4466 }
 0xfbc   :  { %v4469_v15 = vpop.eup %4468  ;;  %v2588_v7 = vmul.f32 0.5, %v4467_v14 }
 0xfbd   :  { %v2597_v12 = vmul.f32 0.5, %v4469_v15  ;;  %v4471_v35 = vpop.eup %4470 }
 0xfbe   :  { %v2589_v36 = vadd.f32 0.5, %v2588_v7  ;;  %v4473_v37 = vpop.eup %4472 }
 0xfbf   :  { %v2598_v4 = vadd.f32 0.5, %v2597_v12  ;;  %v2593_v43 = vmul.f32 0.5, %v4473_v37 }
 0xfc0   :  { %v2600_v23 = vmul.f32 %v4471_v35, %v2589_v36 }
 0xfc1   :  { %v2599_v10 = vmul.f32 %v2598_v4, %v6063_v57  ;;  %v2594_v59 = vadd.f32 0.5, %v2593_v43  ;;  %v6920_v57 = vld [vmem:[#allocation74_spill] sm:$0xff] }
 0xfc2   :  { %v547_v31 = vadd.f32 %v6920_v57, %v5092_v38 }
 0xfc3   :  { %v6109_v42 = vadd.f32 %v2600_v23, %v2599_v10 }
 0xfc5   :  { %4474 = vtanh.f32 %v6109_v42 }
 0xfcf   :  { %v4475_v11 = vpop.eup %4474 }
 0xfd0   :  { %v2603_v33 = vmul.f32 %v4475_v11, %v2594_v59 }
 0xfd2   :  { %v2611_v9 = vpack.c.bf16 %v2603_v33, %v2603_v33 }
 0xfd4   :  { %2645 = vmatmul.mubr.bf16.vlgmr.msra.gmra.mrb[108].mxu0 %v2611_v9  ;;  %2686 = vmatmul.mubr.bf16.vlgmr.msra.gmra.mrb[124].mxu1 %v2611_v9 }
 0xfd5   :  { %2725 = vmatpush1.bf16.msra.mxu0 %v5822_v5  ;;  %2766 = vmatpush1.bf16.msra.mxu1 %v5825_v16 }
 0xfd6   :  { %2726 = vmatprep.subr.bf16.mxu0 %v5828_v3  ;;  %2767 = vmatprep.subr.bf16.mxu1 %v5831_v20 }
 0xfd7   :  { %2756 = vmatprep.mubr.bf16.mxu0 %v6808_v0  ;;  %2797 = vmatprep.mubr.bf16.mxu1 %v6808_v0 }
 0xfd9   :  { %2727 = vmatpush1.bf16.msra.mxu0 %v5836_v21  ;;  %2768 = vmatpush1.bf16.msra.mxu1 %v5839_v22 }
 0xfda   :  { %2728 = vmatprep.subr.bf16.mxu0 %v5842_v24  ;;  %2769 = vmatprep.subr.bf16.mxu1 %v5845_v25 }
 0xfdd   :  { %2729 = vmatpush1.bf16.msra.mxu0 %v5848_v26  ;;  %2770 = vmatpush1.bf16.msra.mxu1 %v5851_v27 }
 0xfde   :  { %2730 = vmatprep.subr.bf16.mxu0 %v5854_v28  ;;  %2771 = vmatprep.subr.bf16.mxu1 %v5857_v29 }
 0xfe1   :  { %2731 = vmatpush1.bf16.msra.mxu0 %v5860_v30  ;;  %2772 = vmatpush1.bf16.msra.mxu1 %v5911_v41 }
 0xfe2   :  { %2732 = vmatprep.subr.bf16.mxu0 %v5864_v32  ;;  %2773 = vmatprep.subr.bf16.mxu1 %v5915_v18 }
 0xfe5   :  { %2733 = vmatpush1.bf16.msra.mxu0 %v5918_v1  ;;  %2774 = vmatpush1.bf16.msra.mxu1 %v5921_v44 }
 0xfe6   :  { %2734 = vmatprep.subr.bf16.mxu0 %v5970_v8  ;;  %2775 = vmatprep.subr.bf16.mxu1 %v5973_v45 }
 0xfe9   :  { %2735 = vmatpush1.bf16.msra.mxu0 %v5976_v46  ;;  %2776 = vmatpush1.bf16.msra.mxu1 %v5979_v47 }
 0xfea   :  { %2736 = vmatprep.subr.bf16.mxu0 %v5982_v49  ;;  %2777 = vmatprep.subr.bf16.mxu1 %v5985_v50 }
 0xfed   :  { %2737 = vmatpush1.bf16.msra.mxu0 %v5988_v51  ;;  %2778 = vmatpush1.bf16.msra.mxu1 %v5991_v52 }
 0xfee   :  { %2738 = vmatprep.subr.bf16.mxu0 %v5994_v53  ;;  %2779 = vmatprep.subr.bf16.mxu1 %v5997_v54 }
 0xff1   :  { %2739 = vmatpush1.bf16.msra.mxu0 %v6000_v55  ;;  %2780 = vmatpush1.bf16.msra.mxu1 %v6003_v56 }
 0xff2   :  { %2836 = vmatprep.subr.bf16.mxu0 %v5804_v48  ;;  %2877 = vmatprep.subr.bf16.mxu1 %v5807_v19 }
0x10a7   :  { %v2646_v13 = vpop.f32.mrb[108].mxu0  ;;  %v2687_v17 = vpop.f32.mrb[124].mxu1 }
0x10a8   :  { %v2694_v63 = vadd.f32 %v2646_v13, %v374_v6  ;;  %v2696_v14 = vadd.f32 %v2687_v17, %v547_v31  ;;  %v2648_v15 = vpop.f32.mrb[109].mxu0  ;;  %v2689_v48 = vpop.f32.mrb[125].mxu1 }
0x10a9   :  { %v2695_v7 = vadd.f32 %v2648_v15, %v376_v2  ;;  %v2697_v19 = vadd.f32 %v2689_v48, %v549_v60  ;;  %v2650_v12 = vpop.f32.mrb[110].mxu0  ;;  %v2691_v36 = vpop.f32.mrb[126].mxu1 }
0x10aa   :  { %v2698_v35 = vmul.f32 0.5, %v2694_v63  ;;  %v2651_v4 = vpop.f32.mrb[111].mxu0  ;;  %v2692_v23 = vpop.f32.mrb[127].mxu1 }
0x10ab   :  { %v2707_v10 = vmul.f32 0.5, %v2695_v7  ;;  %v2703_v37 = vmul.f32 0.5, %v2697_v19 }
0x10ac   :  { %4476 = vtanh.f32 %v2698_v35 }
0x10ad   :  { %4478 = vtanh.f32 %v2707_v10 }
0x10ae   :  { %4480 = vtanh.f32 %v2696_v14 }
0x10af   :  { %4482 = vtanh.f32 %v2703_v37 }
0x10b6   :  { %v4477_v43 = vpop.eup %4476 }
0x10b7   :  { %v4479_v59 = vpop.eup %4478  ;;  %v2700_v11 = vmul.f32 0.5, %v4477_v43 }
0x10b8   :  { %v2709_v33 = vmul.f32 0.5, %v4479_v59  ;;  %v4481_v57 = vpop.eup %4480 }
0x10b9   :  { %v2701_v9 = vadd.f32 0.5, %v2700_v11  ;;  %v4483_v60 = vpop.eup %4482 }
0x10ba   :  { %v2710_v31 = vadd.f32 0.5, %v2709_v33  ;;  %v2705_v34 = vmul.f32 0.5, %v4483_v60 }
0x10bb   :  { %v2712_v62 = vmul.f32 %v4481_v57, %v2701_v9 }
0x10bc   :  { %v2711_v6 = vmul.f32 %v2710_v31, %v6109_v42  ;;  %v2706_v2 = vadd.f32 0.5, %v2705_v34 }
0x10be   :  { %v6155_v58 = vadd.f32 %v2712_v62, %v2711_v6 }
0x10c0   :  { %4484 = vtanh.f32 %v6155_v58 }
0x10ca   :  { %v4485_v13 = vpop.eup %4484 }
0x10cb   :  { %v2715_v17 = vmul.f32 %v4485_v13, %v2706_v2 }
0x10cd   :  { %v2723_v63 = vpack.c.bf16 %v2715_v17, %v2715_v17 }
0x10cf   :  { %2757 = vmatmul.mubr.bf16.vlgmr.msra.gmra.mrb[112].mxu0 %v2723_v63  ;;  %2798 = vmatmul.mubr.bf16.vlgmr.msra.gmra.mrb[128].mxu1 %v2723_v63  ;;  %v6208_v63 = vld [vmem:[#allocation3] ss:$16 sps:$4 sm:$0xff]  }
0x10d0   :  { %2837 = vmatpush1.bf16.msra.mxu0 %v5822_v5  ;;  %2878 = vmatpush1.bf16.msra.mxu1 %v5825_v16  ;;  %v6190_v5 = vld [vmem:[#allocation3 + $0x4] ss:$16 sps:$4 sm:$0xff]   ;;  %v6193_v16 = vld [vmem:[#allocation3 + $0xc] ss:$16 sps:$4 sm:$0xff]  }
0x10d1   :  { %2838 = vmatprep.subr.bf16.mxu0 %v5828_v3  ;;  %2879 = vmatprep.subr.bf16.mxu1 %v5831_v20  ;;  %v6924_v3 = vld [vmem:[#allocation76_spill] sm:$0xff] }
0x10d2   :  { %2868 = vmatprep.mubr.bf16.mxu0 %v6808_v0  ;;  %2909 = vmatprep.mubr.bf16.mxu1 %v6808_v0  ;;  %v551_v20 = vadd.f32 %v6924_v3, %v5092_v38  ;;  %v6211_v3 = vld [vmem:[#allocation3 + $0x8] ss:$16 sps:$4 sm:$0xff]  }
0x10d4   :  { %2839 = vmatpush1.bf16.msra.mxu0 %v5836_v21  ;;  %2880 = vmatpush1.bf16.msra.mxu1 %v5839_v22  ;;  %v6925_v21 = vld [vmem:[#allocation67_spill] sm:$0xff] }
0x10d5   :  { %2840 = vmatprep.subr.bf16.mxu0 %v5842_v24  ;;  %2881 = vmatprep.subr.bf16.mxu1 %v5845_v25  ;;  %v378_v22 = vadd.f32 %v6925_v21, %v5058_v61  ;;  %v6926_v24 = vld [vmem:[#allocation77_spill] sm:$0xff]  ;;  %v6222_v21 = vld [vmem:[#allocation3 + $0x20] ss:$16 sps:$4 sm:$0xff]  }
0x10d6   :  { %v553_v25 = vadd.f32 %v6926_v24, %v5095_v39  ;;  %v6228_v24 = vld [vmem:[#allocation3 + $0x44] ss:$16 sps:$4 sm:$0xff]  }
0x10d8   :  { %2841 = vmatpush1.bf16.msra.mxu0 %v5848_v26  ;;  %2882 = vmatpush1.bf16.msra.mxu1 %v5851_v27  ;;  %v6927_v26 = vld [vmem:[#allocation69_spill] sm:$0xff] }
0x10d9   :  { %2842 = vmatprep.subr.bf16.mxu0 %v5854_v28  ;;  %2883 = vmatprep.subr.bf16.mxu1 %v5857_v29  ;;  %v380_v27 = vadd.f32 %v6927_v26, %v5326_v40  ;;  %v6234_v26 = vld [vmem:[#allocation3 + $0x40] ss:$16 sps:$4 sm:$0xff]  }
0x10dc   :  { %2843 = vmatpush1.bf16.msra.mxu0 %v5860_v30  ;;  %2884 = vmatpush1.bf16.msra.mxu1 %v5911_v41 }
0x10dd   :  { %2844 = vmatprep.subr.bf16.mxu0 %v5864_v32  ;;  %2885 = vmatprep.subr.bf16.mxu1 %v5915_v18 }
0x10e0   :  { %2845 = vmatpush1.bf16.msra.mxu0 %v5918_v1  ;;  %2886 = vmatpush1.bf16.msra.mxu1 %v5921_v44 }
0x10e1   :  { %2846 = vmatprep.subr.bf16.mxu0 %v5970_v8  ;;  %2887 = vmatprep.subr.bf16.mxu1 %v5973_v45 }
0x10e4   :  { %2847 = vmatpush1.bf16.msra.mxu0 %v5976_v46  ;;  %2888 = vmatpush1.bf16.msra.mxu1 %v5979_v47 }
0x10e5   :  { %2848 = vmatprep.subr.bf16.mxu0 %v5982_v49  ;;  %2889 = vmatprep.subr.bf16.mxu1 %v5985_v50 }
0x10e8   :  { %2849 = vmatpush1.bf16.msra.mxu0 %v5988_v51  ;;  %2890 = vmatpush1.bf16.msra.mxu1 %v5991_v52 }
0x10e9   :  { %2850 = vmatprep.subr.bf16.mxu0 %v5994_v53  ;;  %2891 = vmatprep.subr.bf16.mxu1 %v5997_v54 }
0x10ec   :  { %2851 = vmatpush1.bf16.msra.mxu0 %v6000_v55  ;;  %2892 = vmatpush1.bf16.msra.mxu1 %v6003_v56 }
0x10ed   :  { %2948 = vmatprep.subr.bf16.mxu0 %v6190_v5  ;;  %2989 = vmatprep.subr.bf16.mxu1 %v6193_v16 }
0x11a2   :  { %v2758_v28 = vpop.f32.mrb[112].mxu0  ;;  %v2799_v29 = vpop.f32.mrb[128].mxu1 }
0x11a3   :  { %v2806_v30 = vadd.f32 %v2758_v28, %v378_v22  ;;  %v2808_v32 = vadd.f32 %v2799_v29, %v551_v20  ;;  %v2760_v42 = vpop.f32.mrb[113].mxu0  ;;  %v2801_v14 = vpop.f32.mrb[129].mxu1  ;;  %v6217_v20 = vld [vmem:[#allocation3 + $0x2c] ss:$16 sps:$4 sm:$0xff]   ;;  %v6225_v22 = vld [vmem:[#allocation3 + $0x28] ss:$16 sps:$4 sm:$0xff]  }
0x11a4   :  { %v2807_v15 = vadd.f32 %v2760_v42, %v380_v27  ;;  %v2809_v48 = vadd.f32 %v2801_v14, %v553_v25  ;;  %v2762_v7 = vpop.f32.mrb[114].mxu0  ;;  %v2803_v19 = vpop.f32.mrb[130].mxu1  ;;  %v6231_v25 = vld [vmem:[#allocation3 + $0x4c] ss:$16 sps:$4 sm:$0xff]   ;;  %v6237_v27 = vld [vmem:[#allocation3 + $0x48] ss:$16 sps:$4 sm:$0xff]  }
0x11a5   :  { %v2810_v12 = vmul.f32 0.5, %v2806_v30  ;;  %v2763_v36 = vpop.f32.mrb[115].mxu0  ;;  %v2804_v35 = vpop.f32.mrb[131].mxu1  ;;  %v6240_v28 = vld [vmem:[#allocation3 + $0x64] ss:$16 sps:$4 sm:$0xff]  }
0x11a6   :  { %v2819_v4 = vmul.f32 0.5, %v2807_v15  ;;  %v2815_v23 = vmul.f32 0.5, %v2809_v48  ;;  %v6243_v29 = vld [vmem:[#allocation3 + $0x6c] ss:$16 sps:$4 sm:$0xff]   ;;  %v6246_v30 = vld [vmem:[#allocation3 + $0x60] ss:$16 sps:$4 sm:$0xff]  }
0x11a7   :  { %4486 = vtanh.f32 %v2810_v12  ;;  %v6930_v42 = vld [vmem:[#allocation80_spill] sm:$0xff]  ;;  %v6931_v15 = vld [vmem:[#allocation81_spill] sm:$0xff] }
0x11a8   :  { %4488 = vtanh.f32 %v2819_v4  ;;  %v559_v14 = vadd.f32 %v6930_v42, %v5095_v39  ;;  %v386_v48 = vadd.f32 %v6931_v15, %v5326_v40 }
0x11a9   :  { %4490 = vtanh.f32 %v2808_v32  ;;  %v6250_v32 = vld [vmem:[#allocation3 + $0x84] ss:$16 sps:$4 sm:$0xff]  }
0x11aa   :  { %4492 = vtanh.f32 %v2815_v23 }
0x11b1   :  { %v4487_v10 = vpop.eup %4486 }
0x11b2   :  { %v4489_v37 = vpop.eup %4488  ;;  %v2812_v43 = vmul.f32 0.5, %v4487_v10 }
0x11b3   :  { %v2821_v59 = vmul.f32 0.5, %v4489_v37  ;;  %v4491_v33 = vpop.eup %4490 }
0x11b4   :  { %v2813_v11 = vadd.f32 0.5, %v2812_v43  ;;  %v4493_v6 = vpop.eup %4492 }
0x11b5   :  { %v2822_v9 = vadd.f32 0.5, %v2821_v59  ;;  %v2817_v60 = vmul.f32 0.5, %v4493_v6 }
0x11b6   :  { %v2824_v57 = vmul.f32 %v4491_v33, %v2813_v11 }
0x11b7   :  { %v2823_v31 = vmul.f32 %v2822_v9, %v6155_v58  ;;  %v2818_v34 = vadd.f32 0.5, %v2817_v60  ;;  %v6214_v58 = vld [vmem:[#allocation3 + $0x24] ss:$16 sps:$4 sm:$0xff]  }
0x11b9   :  { %v6205_v62 = vadd.f32 %v2824_v57, %v2823_v31 }
0x11bb   :  { %4494 = vtanh.f32 %v6205_v62 }
0x11c5   :  { %v4495_v2 = vpop.eup %4494 }
0x11c6   :  { %v2827_v13 = vmul.f32 %v4495_v2, %v2818_v34 }
0x11c8   :  { %v2835_v17 = vpack.c.bf16 %v2827_v13, %v2827_v13 }
0x11ca   :  { %2869 = vmatmul.mubr.bf16.vlgmr.msra.gmra.mrb[116].mxu0 %v2835_v17  ;;  %2910 = vmatmul.mubr.bf16.vlgmr.msra.gmra.mrb[132].mxu1 %v2835_v17 }
0x11cb   :  { %2949 = vmatpush1.bf16.msra.mxu0 %v6208_v63  ;;  %2990 = vmatpush1.bf16.msra.mxu1 %v6211_v3 }
0x11cc   :  { %2950 = vmatprep.subr.bf16.mxu0 %v6214_v58  ;;  %2991 = vmatprep.subr.bf16.mxu1 %v6217_v20 }
0x11cd   :  { %2980 = vmatprep.mubr.bf16.mxu0 %v6808_v0  ;;  %3021 = vmatprep.mubr.bf16.mxu1 %v6808_v0 }
0x11cf   :  { %2951 = vmatpush1.bf16.msra.mxu0 %v6222_v21  ;;  %2992 = vmatpush1.bf16.msra.mxu1 %v6225_v22 }
0x11d0   :  { %2952 = vmatprep.subr.bf16.mxu0 %v6228_v24  ;;  %2993 = vmatprep.subr.bf16.mxu1 %v6231_v25 }
0x11d3   :  { %2953 = vmatpush1.bf16.msra.mxu0 %v6234_v26  ;;  %2994 = vmatpush1.bf16.msra.mxu1 %v6237_v27 }
0x11d4   :  { %2954 = vmatprep.subr.bf16.mxu0 %v6240_v28  ;;  %2995 = vmatprep.subr.bf16.mxu1 %v6243_v29 }
0x11d7   :  { %2955 = vmatpush1.bf16.msra.mxu0 %v6246_v30  ;;  %2996 = vmatpush1.bf16.msra.mxu1 %v5911_v41  ;;  %v6928_v41 = vld [vmem:[#allocation78_spill] sm:$0xff] }
0x11d8   :  { %2956 = vmatprep.subr.bf16.mxu0 %v6250_v32  ;;  %2997 = vmatprep.subr.bf16.mxu1 %v5915_v18  ;;  %v557_v18 = vadd.f32 %v6928_v41, %v5092_v38 }
0x11db   :  { %2957 = vmatpush1.bf16.msra.mxu0 %v5918_v1  ;;  %2998 = vmatpush1.bf16.msra.mxu1 %v5921_v44  ;;  %v6929_v1 = vld [vmem:[#allocation79_spill] sm:$0xff] }
0x11dc   :  { %2958 = vmatprep.subr.bf16.mxu0 %v5970_v8  ;;  %2999 = vmatprep.subr.bf16.mxu1 %v5973_v45  ;;  %v384_v44 = vadd.f32 %v6929_v1, %v5058_v61 }
0x11df   :  { %2959 = vmatpush1.bf16.msra.mxu0 %v5976_v46  ;;  %3000 = vmatpush1.bf16.msra.mxu1 %v5979_v47 }
0x11e0   :  { %2960 = vmatprep.subr.bf16.mxu0 %v5982_v49  ;;  %3001 = vmatprep.subr.bf16.mxu1 %v5985_v50 }
0x11e3   :  { %2961 = vmatpush1.bf16.msra.mxu0 %v5988_v51  ;;  %3002 = vmatpush1.bf16.msra.mxu1 %v5991_v52 }
0x11e4   :  { %2962 = vmatprep.subr.bf16.mxu0 %v5994_v53  ;;  %3003 = vmatprep.subr.bf16.mxu1 %v5997_v54 }
0x11e7   :  { %2963 = vmatpush1.bf16.msra.mxu0 %v6000_v55  ;;  %3004 = vmatpush1.bf16.msra.mxu1 %v6003_v56 }
0x11e8   :  { %3060 = vmatprep.subr.bf16.mxu0 %v6190_v5  ;;  %3101 = vmatprep.subr.bf16.mxu1 %v6193_v16 }
0x129d   :  { %v2870_v7 = vpop.f32.mrb[116].mxu0  ;;  %v2911_v19 = vpop.f32.mrb[132].mxu1 }
0x129e   :  { %v2918_v12 = vadd.f32 %v2870_v7, %v384_v44  ;;  %v2920_v36 = vadd.f32 %v2911_v19, %v557_v18  ;;  %v2872_v35 = vpop.f32.mrb[117].mxu0  ;;  %v2913_v4 = vpop.f32.mrb[133].mxu1  ;;  %v6301_v19 = vld [vmem:[#allocation3 + $0x8c] ss:$16 sps:$4 sm:$0xff]  }
0x129f   :  { %v2919_v23 = vadd.f32 %v2872_v35, %v386_v48  ;;  %v2921_v10 = vadd.f32 %v2913_v4, %v559_v14  ;;  %v2874_v37 = vpop.f32.mrb[118].mxu0  ;;  %v2915_v43 = vpop.f32.mrb[134].mxu1 }
0x12a0   :  { %v2922_v59 = vmul.f32 0.5, %v2918_v12  ;;  %v2875_v11 = vpop.f32.mrb[119].mxu0  ;;  %v2916_v33 = vpop.f32.mrb[135].mxu1  ;;  %v6304_v12 = vld [vmem:[#allocation3 + $0x80] ss:$16 sps:$4 sm:$0xff]  }
0x12a1   :  { %v2931_v9 = vmul.f32 0.5, %v2919_v23  ;;  %v2927_v57 = vmul.f32 0.5, %v2921_v10 }
0x12a2   :  { %4496 = vtanh.f32 %v2922_v59 }
0x12a3   :  { %4498 = vtanh.f32 %v2931_v9 }
0x12a4   :  { %4500 = vtanh.f32 %v2920_v36  ;;  %v6307_v36 = vld [vmem:[#allocation3 + $0x88] ss:$16 sps:$4 sm:$0xff]  }
0x12a5   :  { %4502 = vtanh.f32 %v2927_v57 }
0x12ac   :  { %v4497_v31 = vpop.eup %4496 }
0x12ad   :  { %v4499_v6 = vpop.eup %4498  ;;  %v2924_v60 = vmul.f32 0.5, %v4497_v31 }
0x12ae   :  { %v2933_v34 = vmul.f32 0.5, %v4499_v6  ;;  %v4501_v13 = vpop.eup %4500 }
0x12af   :  { %v2925_v2 = vadd.f32 0.5, %v2924_v60  ;;  %v4503_v44 = vpop.eup %4502 }
0x12b0   :  { %v2934_v17 = vadd.f32 0.5, %v2933_v34  ;;  %v2929_v42 = vmul.f32 0.5, %v4503_v44 }
0x12b1   :  { %v2936_v41 = vmul.f32 %v4501_v13, %v2925_v2 }
0x12b2   :  { %v2935_v18 = vmul.f32 %v2934_v17, %v6205_v62  ;;  %v2930_v14 = vadd.f32 0.5, %v2929_v42  ;;  %v6297_v62 = vld [vmem:[#allocation3 + $0x68] ss:$16 sps:$4 sm:$0xff]  }
0x12b4   :  { %v6279_v1 = vadd.f32 %v2936_v41, %v2935_v18 }
0x12b6   :  { %4504 = vtanh.f32 %v6279_v1 }
0x12c0   :  { %v4505_v15 = vpop.eup %4504 }
0x12c1   :  { %v2939_v48 = vmul.f32 %v4505_v15, %v2930_v14 }
0x12c3   :  { %v2947_v7 = vpack.c.bf16 %v2939_v48, %v2939_v48 }
0x12c5   :  { %2981 = vmatmul.mubr.bf16.vlgmr.msra.gmra.mrb[120].mxu0 %v2947_v7  ;;  %3022 = vmatmul.mubr.bf16.vlgmr.msra.gmra.mrb[136].mxu1 %v2947_v7 }
0x12c6   :  { %3061 = vmatpush1.bf16.msra.mxu0 %v6208_v63  ;;  %3102 = vmatpush1.bf16.msra.mxu1 %v6211_v3 }
0x12c7   :  { %3062 = vmatprep.subr.bf16.mxu0 %v6214_v58  ;;  %3103 = vmatprep.subr.bf16.mxu1 %v6217_v20 }
0x12c8   :  { %3092 = vmatprep.mubr.bf16.mxu0 %v6808_v0  ;;  %3133 = vmatprep.mubr.bf16.mxu1 %v6808_v0 }
0x12ca   :  { %3063 = vmatpush1.bf16.msra.mxu0 %v6222_v21  ;;  %3104 = vmatpush1.bf16.msra.mxu1 %v6225_v22 }
0x12cb   :  { %3064 = vmatprep.subr.bf16.mxu0 %v6228_v24  ;;  %3105 = vmatprep.subr.bf16.mxu1 %v6231_v25 }
0x12ce   :  { %3065 = vmatpush1.bf16.msra.mxu0 %v6234_v26  ;;  %3106 = vmatpush1.bf16.msra.mxu1 %v6237_v27 }
0x12cf   :  { %3066 = vmatprep.subr.bf16.mxu0 %v6240_v28  ;;  %3107 = vmatprep.subr.bf16.mxu1 %v6243_v29 }
0x12d2   :  { %3067 = vmatpush1.bf16.msra.mxu0 %v6246_v30  ;;  %3108 = vmatpush1.bf16.msra.mxu1 %v6297_v62 }
0x12d3   :  { %3068 = vmatprep.subr.bf16.mxu0 %v6250_v32  ;;  %3109 = vmatprep.subr.bf16.mxu1 %v6301_v19 }
0x12d6   :  { %3069 = vmatpush1.bf16.msra.mxu0 %v6304_v12  ;;  %3110 = vmatpush1.bf16.msra.mxu1 %v6307_v36 }
0x12d7   :  { %3070 = vmatprep.subr.bf16.mxu0 %v5970_v8  ;;  %3111 = vmatprep.subr.bf16.mxu1 %v5973_v45  ;;  %v6932_v8 = vld [vmem:[#allocation82_spill] sm:$0xff] }
0x12d8   :  { %v561_v45 = vadd.f32 %v6932_v8, %v5092_v38 }
0x12da   :  { %3071 = vmatpush1.bf16.msra.mxu0 %v5976_v46  ;;  %3112 = vmatpush1.bf16.msra.mxu1 %v5979_v47  ;;  %v6933_v46 = vld [vmem:[#allocation83_spill] sm:$0xff] }
0x12db   :  { %3072 = vmatprep.subr.bf16.mxu0 %v5982_v49  ;;  %3113 = vmatprep.subr.bf16.mxu1 %v5985_v50  ;;  %v388_v47 = vadd.f32 %v6933_v46, %v5058_v61  ;;  %v6934_v49 = vld [vmem:[#allocation84_spill] sm:$0xff] }
0x12dc   :  { %v563_v50 = vadd.f32 %v6934_v49, %v5095_v39  ;;  %v6362_v46 = vld [vmem:[#allocation3 + $0xa0] ss:$16 sps:$4 sm:$0xff]   ;;  %v6368_v49 = vld [vmem:[#allocation3 + $0xc4] ss:$16 sps:$4 sm:$0xff]  }
0x12de   :  { %3073 = vmatpush1.bf16.msra.mxu0 %v5988_v51  ;;  %3114 = vmatpush1.bf16.msra.mxu1 %v5991_v52  ;;  %v6935_v51 = vld [vmem:[#allocation85_spill] sm:$0xff] }
0x12df   :  { %3074 = vmatprep.subr.bf16.mxu0 %v5994_v53  ;;  %3115 = vmatprep.subr.bf16.mxu1 %v5997_v54  ;;  %v390_v52 = vadd.f32 %v6935_v51, %v5326_v40  ;;  %v6374_v51 = vld [vmem:[#allocation3 + $0xc0] ss:$16 sps:$4 sm:$0xff]  }
0x12e2   :  { %3075 = vmatpush1.bf16.msra.mxu0 %v6000_v55  ;;  %3116 = vmatpush1.bf16.msra.mxu1 %v6003_v56 }
0x12e3   :  { %3172 = vmatprep.subr.bf16.mxu0 %v6190_v5  ;;  %3213 = vmatprep.subr.bf16.mxu1 %v6193_v16 }
0x1398   :  { %v2982_v53 = vpop.f32.mrb[120].mxu0  ;;  %v3023_v54 = vpop.f32.mrb[136].mxu1 }
0x1399   :  { %v3030_v55 = vadd.f32 %v2982_v53, %v388_v47  ;;  %v3032_v56 = vadd.f32 %v3023_v54, %v561_v45  ;;  %v2984_v35 = vpop.f32.mrb[121].mxu0  ;;  %v3025_v4 = vpop.f32.mrb[137].mxu1  ;;  %v6359_v45 = vld [vmem:[#allocation3 + $0xac] ss:$16 sps:$4 sm:$0xff]   ;;  %v6365_v47 = vld [vmem:[#allocation3 + $0xa8] ss:$16 sps:$4 sm:$0xff]  }
0x139a   :  { %v3031_v23 = vadd.f32 %v2984_v35, %v390_v52  ;;  %v3033_v10 = vadd.f32 %v3025_v4, %v563_v50  ;;  %v2986_v37 = vpop.f32.mrb[122].mxu0  ;;  %v3027_v43 = vpop.f32.mrb[138].mxu1  ;;  %v6371_v50 = vld [vmem:[#allocation3 + $0xcc] ss:$16 sps:$4 sm:$0xff]   ;;  %v6377_v52 = vld [vmem:[#allocation3 + $0xc8] ss:$16 sps:$4 sm:$0xff]  }
0x139b   :  { %v3034_v59 = vmul.f32 0.5, %v3030_v55  ;;  %v2987_v11 = vpop.f32.mrb[123].mxu0  ;;  %v3028_v33 = vpop.f32.mrb[139].mxu1  ;;  %v6380_v53 = vld [vmem:[#allocation3 + $0xe4] ss:$16 sps:$4 sm:$0xff]  }
0x139c   :  { %v3043_v9 = vmul.f32 0.5, %v3031_v23  ;;  %v3039_v57 = vmul.f32 0.5, %v3033_v10  ;;  %v6383_v54 = vld [vmem:[#allocation3 + $0xec] ss:$16 sps:$4 sm:$0xff]   ;;  %v6386_v55 = vld [vmem:[#allocation3 + $0xe0] ss:$16 sps:$4 sm:$0xff]  }
0x139d   :  { %4506 = vtanh.f32 %v3034_v59  ;;  %v6936_v35 = vld [vmem:[#allocation86_spill] sm:$0xff]  ;;  %v6937_v23 = vld [vmem:[#allocation87_spill] sm:$0xff]  ;;  %v6938_v37 = vld [vmem:[#allocation88_spill] sm:$0xff] }
0x139e   :  { %4508 = vtanh.f32 %v3043_v9  ;;  %v567_v4 = vadd.f32 %v6936_v35, %v5092_v38  ;;  %v394_v10 = vadd.f32 %v6937_v23, %v5058_v61  ;;  %v569_v43 = vadd.f32 %v6938_v37, %v5095_v39  ;;  %v6939_v59 = vld [vmem:[#allocation89_spill] sm:$0xff] }
0x139f   :  { %4510 = vtanh.f32 %v3032_v56  ;;  %v6389_v56 = vld [vmem:[#allocation3 + $0xe8] ss:$16 sps:$4 sm:$0xff]   ;;  %v396_v11 = vadd.f32 %v6939_v59, %v5326_v40 }
0x13a0   :  { %4512 = vtanh.f32 %v3039_v57 }
0x13a7   :  { %v4507_v31 = vpop.eup %4506 }
0x13a8   :  { %v4509_v6 = vpop.eup %4508  ;;  %v3036_v60 = vmul.f32 0.5, %v4507_v31 }
0x13a9   :  { %v3045_v34 = vmul.f32 0.5, %v4509_v6  ;;  %v4511_v13 = vpop.eup %4510 }
0x13aa   :  { %v3037_v2 = vadd.f32 0.5, %v3036_v60  ;;  %v4513_v42 = vpop.eup %4512 }
0x13ab   :  { %v3046_v17 = vadd.f32 0.5, %v3045_v34  ;;  %v3041_v14 = vmul.f32 0.5, %v4513_v42 }
0x13ac   :  { %v3048_v41 = vmul.f32 %v4511_v13, %v3037_v2 }
0x13ad   :  { %v3047_v18 = vmul.f32 %v3046_v17, %v6279_v1  ;;  %v3042_v15 = vadd.f32 0.5, %v3041_v14  ;;  %v6356_v1 = vld [vmem:[#allocation3 + $0xa4] ss:$16 sps:$4 sm:$0xff]  }
0x13af   :  { %v6333_v44 = vadd.f32 %v3048_v41, %v3047_v18 }
0x13b1   :  { %4514 = vtanh.f32 %v6333_v44 }
0x13bb   :  { %v4515_v48 = vpop.eup %4514 }
0x13bc   :  { %v3051_v7 = vmul.f32 %v4515_v48, %v3042_v15 }
0x13be   :  { %v3059_v8 = vpack.c.bf16 %v3051_v7, %v3051_v7 }
0x13c0   :  { %3093 = vmatmul.mubr.bf16.vlgmr.msra.gmra.mrb[124].mxu0 %v3059_v8  ;;  %3134 = vmatmul.mubr.bf16.vlgmr.msra.gmra.mrb[140].mxu1 %v3059_v8 }
0x13c1   :  { %3173 = vmatpush1.bf16.msra.mxu0 %v6208_v63  ;;  %3214 = vmatpush1.bf16.msra.mxu1 %v6211_v3 }
0x13c2   :  { %3174 = vmatprep.subr.bf16.mxu0 %v6214_v58  ;;  %3215 = vmatprep.subr.bf16.mxu1 %v6217_v20 }
0x13c3   :  { %3204 = vmatprep.mubr.bf16.mxu0 %v6808_v0  ;;  %3245 = vmatprep.mubr.bf16.mxu1 %v6808_v0 }
0x13c5   :  { %3175 = vmatpush1.bf16.msra.mxu0 %v6222_v21  ;;  %3216 = vmatpush1.bf16.msra.mxu1 %v6225_v22 }
0x13c6   :  { %3176 = vmatprep.subr.bf16.mxu0 %v6228_v24  ;;  %3217 = vmatprep.subr.bf16.mxu1 %v6231_v25 }
0x13c9   :  { %3177 = vmatpush1.bf16.msra.mxu0 %v6234_v26  ;;  %3218 = vmatpush1.bf16.msra.mxu1 %v6237_v27 }
0x13ca   :  { %3178 = vmatprep.subr.bf16.mxu0 %v6240_v28  ;;  %3219 = vmatprep.subr.bf16.mxu1 %v6243_v29 }
0x13cd   :  { %3179 = vmatpush1.bf16.msra.mxu0 %v6246_v30  ;;  %3220 = vmatpush1.bf16.msra.mxu1 %v6297_v62 }
0x13ce   :  { %3180 = vmatprep.subr.bf16.mxu0 %v6250_v32  ;;  %3221 = vmatprep.subr.bf16.mxu1 %v6301_v19 }
0x13d1   :  { %3181 = vmatpush1.bf16.msra.mxu0 %v6304_v12  ;;  %3222 = vmatpush1.bf16.msra.mxu1 %v6307_v36 }
0x13d2   :  { %3182 = vmatprep.subr.bf16.mxu0 %v6356_v1  ;;  %3223 = vmatprep.subr.bf16.mxu1 %v6359_v45 }
0x13d5   :  { %3183 = vmatpush1.bf16.msra.mxu0 %v6362_v46  ;;  %3224 = vmatpush1.bf16.msra.mxu1 %v6365_v47 }
0x13d6   :  { %3184 = vmatprep.subr.bf16.mxu0 %v6368_v49  ;;  %3225 = vmatprep.subr.bf16.mxu1 %v6371_v50 }
0x13d9   :  { %3185 = vmatpush1.bf16.msra.mxu0 %v6374_v51  ;;  %3226 = vmatpush1.bf16.msra.mxu1 %v6377_v52 }
0x13da   :  { %3186 = vmatprep.subr.bf16.mxu0 %v6380_v53  ;;  %3227 = vmatprep.subr.bf16.mxu1 %v6383_v54 }
0x13dd   :  { %3187 = vmatpush1.bf16.msra.mxu0 %v6386_v55  ;;  %3228 = vmatpush1.bf16.msra.mxu1 %v6389_v56 }
0x13de   :  { %3284 = vmatprep.subr.bf16.mxu0 %v6190_v5  ;;  %3325 = vmatprep.subr.bf16.mxu1 %v6193_v16 }
0x1493   :  { %v3094_v33 = vpop.f32.mrb[124].mxu0  ;;  %v3135_v9 = vpop.f32.mrb[140].mxu1 }
0x1494   :  { %v3142_v57 = vadd.f32 %v3094_v33, %v394_v10  ;;  %v3144_v31 = vadd.f32 %v3135_v9, %v567_v4  ;;  %v3096_v6 = vpop.f32.mrb[125].mxu0  ;;  %v3137_v60 = vpop.f32.mrb[141].mxu1 }
0x1495   :  { %v3143_v34 = vadd.f32 %v3096_v6, %v396_v11  ;;  %v3145_v2 = vadd.f32 %v3137_v60, %v569_v43  ;;  %v3098_v13 = vpop.f32.mrb[126].mxu0  ;;  %v3139_v17 = vpop.f32.mrb[142].mxu1 }
0x1496   :  { %v3146_v41 = vmul.f32 0.5, %v3142_v57  ;;  %v3099_v18 = vpop.f32.mrb[127].mxu0  ;;  %v3140_v42 = vpop.f32.mrb[143].mxu1  ;;  %v6942_v13 = vld [vmem:[#allocation92_spill] sm:$0xff] }
0x1497   :  { %v3155_v14 = vmul.f32 0.5, %v3143_v34  ;;  %v3151_v15 = vmul.f32 0.5, %v3145_v2  ;;  %v6941_v34 = vld [vmem:[#allocation91_spill] sm:$0xff]  ;;  %v573_v17 = vadd.f32 %v6942_v13, %v5095_v39 }
0x1498   :  { %4516 = vtanh.f32 %v3146_v41  ;;  %v398_v2 = vadd.f32 %v6941_v34, %v5058_v61  ;;  %v6943_v41 = vld [vmem:[#allocation93_spill] sm:$0xff] }
0x1499   :  { %4518 = vtanh.f32 %v3155_v14  ;;  %v400_v18 = vadd.f32 %v6943_v41, %v5326_v40 }
0x149a   :  { %4520 = vtanh.f32 %v3144_v31 }
0x149b   :  { %4522 = vtanh.f32 %v3151_v15 }
0x14a2   :  { %v4517_v48 = vpop.eup %4516 }
0x14a3   :  { %v4519_v7 = vpop.eup %4518  ;;  %v3148_v8 = vmul.f32 0.5, %v4517_v48 }
0x14a4   :  { %v3157_v35 = vmul.f32 0.5, %v4519_v7  ;;  %v4521_v23 = vpop.eup %4520 }
0x14a5   :  { %v3149_v4 = vadd.f32 0.5, %v3148_v8  ;;  %v4523_v11 = vpop.eup %4522 }
0x14a6   :  { %v3158_v10 = vadd.f32 0.5, %v3157_v35  ;;  %v3153_v33 = vmul.f32 0.5, %v4523_v11 }
0x14a7   :  { %v3160_v37 = vmul.f32 %v4521_v23, %v3149_v4 }
0x14a8   :  { %v3159_v43 = vmul.f32 %v3158_v10, %v6333_v44  ;;  %v3154_v9 = vadd.f32 0.5, %v3153_v33  ;;  %v6940_v44 = vld [vmem:[#allocation90_spill] sm:$0xff] }
0x14a9   :  { %v571_v60 = vadd.f32 %v6940_v44, %v5092_v38 }
0x14aa   :  { %v6403_v59 = vadd.f32 %v3160_v37, %v3159_v43 }
0x14ac   :  { %4524 = vtanh.f32 %v6403_v59 }
0x14b6   :  { %v4525_v57 = vpop.eup %4524 }
0x14b7   :  { %v3163_v31 = vmul.f32 %v4525_v57, %v3154_v9 }
0x14b9   :  { %v3171_v6 = vpack.c.bf16 %v3163_v31, %v3163_v31 }
0x14bb   :  { %3205 = vmatmul.mubr.bf16.vlgmr.msra.gmra.mrb[128].mxu0 %v3171_v6  ;;  %3246 = vmatmul.mubr.bf16.vlgmr.msra.gmra.mrb[144].mxu1 %v3171_v6 }
0x14bc   :  { %3285 = vmatpush1.bf16.msra.mxu0 %v6208_v63  ;;  %3326 = vmatpush1.bf16.msra.mxu1 %v6211_v3 }
0x14bd   :  { %3286 = vmatprep.subr.bf16.mxu0 %v6214_v58  ;;  %3327 = vmatprep.subr.bf16.mxu1 %v6217_v20 }
0x14be   :  { %3316 = vmatprep.mubr.bf16.mxu0 %v6808_v0  ;;  %3357 = vmatprep.mubr.bf16.mxu1 %v6808_v0 }
0x14c0   :  { %3287 = vmatpush1.bf16.msra.mxu0 %v6222_v21  ;;  %3328 = vmatpush1.bf16.msra.mxu1 %v6225_v22 }
0x14c1   :  { %3288 = vmatprep.subr.bf16.mxu0 %v6228_v24  ;;  %3329 = vmatprep.subr.bf16.mxu1 %v6231_v25 }
0x14c4   :  { %3289 = vmatpush1.bf16.msra.mxu0 %v6234_v26  ;;  %3330 = vmatpush1.bf16.msra.mxu1 %v6237_v27 }
0x14c5   :  { %3290 = vmatprep.subr.bf16.mxu0 %v6240_v28  ;;  %3331 = vmatprep.subr.bf16.mxu1 %v6243_v29 }
0x14c8   :  { %3291 = vmatpush1.bf16.msra.mxu0 %v6246_v30  ;;  %3332 = vmatpush1.bf16.msra.mxu1 %v6297_v62 }
0x14c9   :  { %3292 = vmatprep.subr.bf16.mxu0 %v6250_v32  ;;  %3333 = vmatprep.subr.bf16.mxu1 %v6301_v19 }
0x14cc   :  { %3293 = vmatpush1.bf16.msra.mxu0 %v6304_v12  ;;  %3334 = vmatpush1.bf16.msra.mxu1 %v6307_v36 }
0x14cd   :  { %3294 = vmatprep.subr.bf16.mxu0 %v6356_v1  ;;  %3335 = vmatprep.subr.bf16.mxu1 %v6359_v45 }
0x14d0   :  { %3295 = vmatpush1.bf16.msra.mxu0 %v6362_v46  ;;  %3336 = vmatpush1.bf16.msra.mxu1 %v6365_v47 }
0x14d1   :  { %3296 = vmatprep.subr.bf16.mxu0 %v6368_v49  ;;  %3337 = vmatprep.subr.bf16.mxu1 %v6371_v50 }
0x14d4   :  { %3297 = vmatpush1.bf16.msra.mxu0 %v6374_v51  ;;  %3338 = vmatpush1.bf16.msra.mxu1 %v6377_v52 }
0x14d5   :  { %3298 = vmatprep.subr.bf16.mxu0 %v6380_v53  ;;  %3339 = vmatprep.subr.bf16.mxu1 %v6383_v54 }
0x14d8   :  { %3299 = vmatpush1.bf16.msra.mxu0 %v6386_v55  ;;  %3340 = vmatpush1.bf16.msra.mxu1 %v6389_v56 }
0x14d9   :  { %3396 = vmatprep.subr.bf16.mxu0 %v6190_v5  ;;  %3437 = vmatprep.subr.bf16.mxu1 %v6193_v16 }
0x158e   :  { %v3206_v42 = vpop.f32.mrb[128].mxu0  ;;  %v3247_v14 = vpop.f32.mrb[144].mxu1 }
0x158f   :  { %v3254_v15 = vadd.f32 %v3206_v42, %v398_v2  ;;  %v3256_v48 = vadd.f32 %v3247_v14, %v571_v60  ;;  %v3208_v7 = vpop.f32.mrb[129].mxu0  ;;  %v3249_v8 = vpop.f32.mrb[145].mxu1 }
0x1590   :  { %v3255_v35 = vadd.f32 %v3208_v7, %v400_v18  ;;  %v3257_v4 = vadd.f32 %v3249_v8, %v573_v17  ;;  %v3210_v23 = vpop.f32.mrb[130].mxu0  ;;  %v3251_v10 = vpop.f32.mrb[146].mxu1 }
0x1591   :  { %v3258_v37 = vmul.f32 0.5, %v3254_v15  ;;  %v3211_v43 = vpop.f32.mrb[131].mxu0  ;;  %v3252_v11 = vpop.f32.mrb[147].mxu1  ;;  %v6946_v23 = vld [vmem:[#allocation96_spill] sm:$0xff] }
0x1592   :  { %v3267_v33 = vmul.f32 0.5, %v3255_v35  ;;  %v3263_v9 = vmul.f32 0.5, %v3257_v4  ;;  %v6945_v35 = vld [vmem:[#allocation95_spill] sm:$0xff]  ;;  %v579_v10 = vadd.f32 %v6946_v23, %v5095_v39 }
0x1593   :  { %4526 = vtanh.f32 %v3258_v37  ;;  %v404_v4 = vadd.f32 %v6945_v35, %v5058_v61  ;;  %v6947_v37 = vld [vmem:[#allocation97_spill] sm:$0xff] }
0x1594   :  { %4528 = vtanh.f32 %v3267_v33  ;;  %v406_v43 = vadd.f32 %v6947_v37, %v5326_v40 }
0x1595   :  { %4530 = vtanh.f32 %v3256_v48 }
0x1596   :  { %4532 = vtanh.f32 %v3263_v9 }
0x159d   :  { %v4527_v57 = vpop.eup %4526 }
0x159e   :  { %v4529_v31 = vpop.eup %4528  ;;  %v3260_v6 = vmul.f32 0.5, %v4527_v57 }
0x159f   :  { %v3269_v44 = vmul.f32 0.5, %v4529_v31  ;;  %v4531_v34 = vpop.eup %4530 }
0x15a0   :  { %v3261_v60 = vadd.f32 0.5, %v3260_v6  ;;  %v4533_v18 = vpop.eup %4532 }
0x15a1   :  { %v3270_v2 = vadd.f32 0.5, %v3269_v44  ;;  %v3265_v42 = vmul.f32 0.5, %v4533_v18 }
0x15a2   :  { %v3272_v13 = vmul.f32 %v4531_v34, %v3261_v60 }
0x15a3   :  { %v3271_v17 = vmul.f32 %v3270_v2, %v6403_v59  ;;  %v3266_v14 = vadd.f32 0.5, %v3265_v42  ;;  %v6944_v59 = vld [vmem:[#allocation94_spill] sm:$0xff] }
0x15a4   :  { %v577_v8 = vadd.f32 %v6944_v59, %v5092_v38 }
0x15a5   :  { %v6449_v41 = vadd.f32 %v3272_v13, %v3271_v17 }
0x15a7   :  { %4534 = vtanh.f32 %v6449_v41 }
0x15b1   :  { %v4535_v15 = vpop.eup %4534 }
0x15b2   :  { %v3275_v48 = vmul.f32 %v4535_v15, %v3266_v14 }
0x15b4   :  { %v3283_v7 = vpack.c.bf16 %v3275_v48, %v3275_v48 }
0x15b6   :  { %3317 = vmatmul.mubr.bf16.vlgmr.msra.gmra.mrb[132].mxu0 %v3283_v7  ;;  %3358 = vmatmul.mubr.bf16.vlgmr.msra.gmra.mrb[148].mxu1 %v3283_v7 }
0x15b7   :  { %3397 = vmatpush1.bf16.msra.mxu0 %v6208_v63  ;;  %3438 = vmatpush1.bf16.msra.mxu1 %v6211_v3 }
0x15b8   :  { %3398 = vmatprep.subr.bf16.mxu0 %v6214_v58  ;;  %3439 = vmatprep.subr.bf16.mxu1 %v6217_v20 }
0x15b9   :  { %3428 = vmatprep.mubr.bf16.mxu0 %v6808_v0  ;;  %3469 = vmatprep.mubr.bf16.mxu1 %v6808_v0 }
0x15bb   :  { %3399 = vmatpush1.bf16.msra.mxu0 %v6222_v21  ;;  %3440 = vmatpush1.bf16.msra.mxu1 %v6225_v22 }
0x15bc   :  { %3400 = vmatprep.subr.bf16.mxu0 %v6228_v24  ;;  %3441 = vmatprep.subr.bf16.mxu1 %v6231_v25 }
0x15bf   :  { %3401 = vmatpush1.bf16.msra.mxu0 %v6234_v26  ;;  %3442 = vmatpush1.bf16.msra.mxu1 %v6237_v27 }
0x15c0   :  { %3402 = vmatprep.subr.bf16.mxu0 %v6240_v28  ;;  %3443 = vmatprep.subr.bf16.mxu1 %v6243_v29 }
0x15c3   :  { %3403 = vmatpush1.bf16.msra.mxu0 %v6246_v30  ;;  %3444 = vmatpush1.bf16.msra.mxu1 %v6297_v62 }
0x15c4   :  { %3404 = vmatprep.subr.bf16.mxu0 %v6250_v32  ;;  %3445 = vmatprep.subr.bf16.mxu1 %v6301_v19 }
0x15c7   :  { %3405 = vmatpush1.bf16.msra.mxu0 %v6304_v12  ;;  %3446 = vmatpush1.bf16.msra.mxu1 %v6307_v36 }
0x15c8   :  { %3406 = vmatprep.subr.bf16.mxu0 %v6356_v1  ;;  %3447 = vmatprep.subr.bf16.mxu1 %v6359_v45 }
0x15cb   :  { %3407 = vmatpush1.bf16.msra.mxu0 %v6362_v46  ;;  %3448 = vmatpush1.bf16.msra.mxu1 %v6365_v47 }
0x15cc   :  { %3408 = vmatprep.subr.bf16.mxu0 %v6368_v49  ;;  %3449 = vmatprep.subr.bf16.mxu1 %v6371_v50 }
0x15cf   :  { %3409 = vmatpush1.bf16.msra.mxu0 %v6374_v51  ;;  %3450 = vmatpush1.bf16.msra.mxu1 %v6377_v52 }
0x15d0   :  { %3410 = vmatprep.subr.bf16.mxu0 %v6380_v53  ;;  %3451 = vmatprep.subr.bf16.mxu1 %v6383_v54 }
0x15d3   :  { %3411 = vmatpush1.bf16.msra.mxu0 %v6386_v55  ;;  %3452 = vmatpush1.bf16.msra.mxu1 %v6389_v56 }
0x15d4   :  { %3508 = vmatprep.subr.bf16.mxu0 %v6190_v5  ;;  %3549 = vmatprep.subr.bf16.mxu1 %v6193_v16 }
0x1689   :  { %v3318_v11 = vpop.f32.mrb[132].mxu0  ;;  %v3359_v33 = vpop.f32.mrb[148].mxu1 }
0x168a   :  { %v3366_v9 = vadd.f32 %v3318_v11, %v404_v4  ;;  %v3368_v57 = vadd.f32 %v3359_v33, %v577_v8  ;;  %v3320_v31 = vpop.f32.mrb[133].mxu0  ;;  %v3361_v6 = vpop.f32.mrb[149].mxu1 }
0x168b   :  { %v3367_v44 = vadd.f32 %v3320_v31, %v406_v43  ;;  %v3369_v60 = vadd.f32 %v3361_v6, %v579_v10  ;;  %v3322_v34 = vpop.f32.mrb[134].mxu0  ;;  %v3363_v2 = vpop.f32.mrb[150].mxu1 }
0x168c   :  { %v3370_v13 = vmul.f32 0.5, %v3366_v9  ;;  %v3323_v17 = vpop.f32.mrb[135].mxu0  ;;  %v3364_v18 = vpop.f32.mrb[151].mxu1  ;;  %v6950_v34 = vld [vmem:[#allocation100_spill] sm:$0xff] }
0x168d   :  { %v3379_v42 = vmul.f32 0.5, %v3367_v44  ;;  %v3375_v14 = vmul.f32 0.5, %v3369_v60  ;;  %v6949_v44 = vld [vmem:[#allocation99_spill] sm:$0xff]  ;;  %v583_v2 = vadd.f32 %v6950_v34, %v5095_v39 }
0x168e   :  { %4536 = vtanh.f32 %v3370_v13  ;;  %v408_v60 = vadd.f32 %v6949_v44, %v5058_v61  ;;  %v6951_v13 = vld [vmem:[#allocation101_spill] sm:$0xff] }
0x168f   :  { %4538 = vtanh.f32 %v3379_v42  ;;  %v410_v17 = vadd.f32 %v6951_v13, %v5326_v40 }
0x1690   :  { %4540 = vtanh.f32 %v3368_v57 }
0x1691   :  { %4542 = vtanh.f32 %v3375_v14 }
0x1698   :  { %v4537_v15 = vpop.eup %4536 }
0x1699   :  { %v4539_v48 = vpop.eup %4538  ;;  %v3372_v7 = vmul.f32 0.5, %v4537_v15 }
0x169a   :  { %v3381_v59 = vmul.f32 0.5, %v4539_v48  ;;  %v4541_v35 = vpop.eup %4540 }
0x169b   :  { %v3373_v8 = vadd.f32 0.5, %v3372_v7  ;;  %v4543_v43 = vpop.eup %4542 }
0x169c   :  { %v3382_v4 = vadd.f32 0.5, %v3381_v59  ;;  %v3377_v11 = vmul.f32 0.5, %v4543_v43 }
0x169d   :  { %v3384_v23 = vmul.f32 %v4541_v35, %v3373_v8 }
0x169e   :  { %v3383_v10 = vmul.f32 %v3382_v4, %v6449_v41  ;;  %v3378_v33 = vadd.f32 0.5, %v3377_v11  ;;  %v6948_v41 = vld [vmem:[#allocation98_spill] sm:$0xff] }
0x169f   :  { %v581_v6 = vadd.f32 %v6948_v41, %v5092_v38 }
0x16a0   :  { %v6495_v37 = vadd.f32 %v3384_v23, %v3383_v10 }
0x16a2   :  { %4544 = vtanh.f32 %v6495_v37 }
0x16ac   :  { %v4545_v9 = vpop.eup %4544 }
0x16ad   :  { %v3387_v57 = vmul.f32 %v4545_v9, %v3378_v33 }
0x16af   :  { %v3395_v31 = vpack.c.bf16 %v3387_v57, %v3387_v57 }
0x16b1   :  { %3429 = vmatmul.mubr.bf16.vlgmr.msra.gmra.mrb[136].mxu0 %v3395_v31  ;;  %3470 = vmatmul.mubr.bf16.vlgmr.msra.gmra.mrb[152].mxu1 %v3395_v31 }
0x16b2   :  { %3509 = vmatpush1.bf16.msra.mxu0 %v6208_v63  ;;  %3550 = vmatpush1.bf16.msra.mxu1 %v6211_v3 }
0x16b3   :  { %3510 = vmatprep.subr.bf16.mxu0 %v6214_v58  ;;  %3551 = vmatprep.subr.bf16.mxu1 %v6217_v20 }
0x16b4   :  { %3540 = vmatprep.mubr.bf16.mxu0 %v6808_v0  ;;  %3581 = vmatprep.mubr.bf16.mxu1 %v6808_v0 }
0x16b6   :  { %3511 = vmatpush1.bf16.msra.mxu0 %v6222_v21  ;;  %3552 = vmatpush1.bf16.msra.mxu1 %v6225_v22 }
0x16b7   :  { %3512 = vmatprep.subr.bf16.mxu0 %v6228_v24  ;;  %3553 = vmatprep.subr.bf16.mxu1 %v6231_v25 }
0x16ba   :  { %3513 = vmatpush1.bf16.msra.mxu0 %v6234_v26  ;;  %3554 = vmatpush1.bf16.msra.mxu1 %v6237_v27 }
0x16bb   :  { %3514 = vmatprep.subr.bf16.mxu0 %v6240_v28  ;;  %3555 = vmatprep.subr.bf16.mxu1 %v6243_v29 }
0x16be   :  { %3515 = vmatpush1.bf16.msra.mxu0 %v6246_v30  ;;  %3556 = vmatpush1.bf16.msra.mxu1 %v6297_v62 }
0x16bf   :  { %3516 = vmatprep.subr.bf16.mxu0 %v6250_v32  ;;  %3557 = vmatprep.subr.bf16.mxu1 %v6301_v19 }
0x16c2   :  { %3517 = vmatpush1.bf16.msra.mxu0 %v6304_v12  ;;  %3558 = vmatpush1.bf16.msra.mxu1 %v6307_v36 }
0x16c3   :  { %3518 = vmatprep.subr.bf16.mxu0 %v6356_v1  ;;  %3559 = vmatprep.subr.bf16.mxu1 %v6359_v45 }
0x16c6   :  { %3519 = vmatpush1.bf16.msra.mxu0 %v6362_v46  ;;  %3560 = vmatpush1.bf16.msra.mxu1 %v6365_v47 }
0x16c7   :  { %3520 = vmatprep.subr.bf16.mxu0 %v6368_v49  ;;  %3561 = vmatprep.subr.bf16.mxu1 %v6371_v50 }
0x16ca   :  { %3521 = vmatpush1.bf16.msra.mxu0 %v6374_v51  ;;  %3562 = vmatpush1.bf16.msra.mxu1 %v6377_v52 }
0x16cb   :  { %3522 = vmatprep.subr.bf16.mxu0 %v6380_v53  ;;  %3563 = vmatprep.subr.bf16.mxu1 %v6383_v54 }
0x16ce   :  { %3523 = vmatpush1.bf16.msra.mxu0 %v6386_v55  ;;  %3564 = vmatpush1.bf16.msra.mxu1 %v6389_v56 }
0x16cf   :  { %3620 = vmatprep.subr.bf16.mxu0 %v6190_v5  ;;  %3661 = vmatprep.subr.bf16.mxu1 %v6193_v16 }
0x1784   :  { %v3430_v18 = vpop.f32.mrb[136].mxu0  ;;  %v3471_v42 = vpop.f32.mrb[152].mxu1 }
0x1785   :  { %v3478_v14 = vadd.f32 %v3430_v18, %v408_v60  ;;  %v3480_v15 = vadd.f32 %v3471_v42, %v581_v6  ;;  %v3432_v48 = vpop.f32.mrb[137].mxu0  ;;  %v3473_v5 = vpop.f32.mrb[153].mxu1 }
0x1786   :  { %v3479_v7 = vadd.f32 %v3432_v48, %v410_v17  ;;  %v3481_v16 = vadd.f32 %v3473_v5, %v583_v2  ;;  %v3434_v59 = vpop.f32.mrb[138].mxu0  ;;  %v3475_v8 = vpop.f32.mrb[154].mxu1 }
0x1787   :  { %v3482_v35 = vmul.f32 0.5, %v3478_v14  ;;  %v3435_v4 = vpop.f32.mrb[139].mxu0  ;;  %v3476_v23 = vpop.f32.mrb[155].mxu1 }
0x1788   :  { %v3491_v10 = vmul.f32 0.5, %v3479_v7  ;;  %v3487_v43 = vmul.f32 0.5, %v3481_v16 }
0x1789   :  { %4546 = vtanh.f32 %v3482_v35 }
0x178a   :  { %4548 = vtanh.f32 %v3491_v10 }
0x178b   :  { %4550 = vtanh.f32 %v3480_v15 }
0x178c   :  { %4552 = vtanh.f32 %v3487_v43 }
0x1793   :  { %v4547_v11 = vpop.eup %4546 }
0x1794   :  { %v4549_v33 = vpop.eup %4548  ;;  %v3484_v9 = vmul.f32 0.5, %v4547_v11 }
0x1795   :  { %v3493_v57 = vmul.f32 0.5, %v4549_v33  ;;  %v4551_v41 = vpop.eup %4550 }
0x1796   :  { %v3485_v31 = vadd.f32 0.5, %v3484_v9  ;;  %v4553_v2 = vpop.eup %4552 }
0x1797   :  { %v3494_v6 = vadd.f32 0.5, %v3493_v57  ;;  %v3489_v13 = vmul.f32 0.5, %v4553_v2 }
0x1798   :  { %v3496_v44 = vmul.f32 %v4551_v41, %v3485_v31 }
0x1799   :  { %v3495_v60 = vmul.f32 %v3494_v6, %v6495_v37  ;;  %v3490_v17 = vadd.f32 0.5, %v3489_v13 }
0x179b   :  { %v6541_v34 = vadd.f32 %v3496_v44, %v3495_v60 }
0x179d   :  { %4554 = vtanh.f32 %v6541_v34 }
0x17a7   :  { %v4555_v18 = vpop.eup %4554 }
0x17a8   :  { %v3499_v42 = vmul.f32 %v4555_v18, %v3490_v17 }
0x17aa   :  { %v3507_v14 = vpack.c.bf16 %v3499_v42, %v3499_v42 }
0x17ac   :  { %3541 = vmatmul.mubr.bf16.vlgmr.msra.gmra.mrb[140].mxu0 %v3507_v14  ;;  %3582 = vmatmul.mubr.bf16.vlgmr.msra.gmra.mrb[156].mxu1 %v3507_v14  ;;  %v6594_v14 = vld [vmem:[#allocation3] ss:$16 sps:$4 sm:$0xff]  }
0x17ad   :  { %3621 = vmatpush1.bf16.msra.mxu0 %v6208_v63  ;;  %3662 = vmatpush1.bf16.msra.mxu1 %v6211_v3  ;;  %v6576_v63 = vld [vmem:[#allocation3 + $0x4] ss:$16 sps:$4 sm:$0xff]   ;;  %v6579_v3 = vld [vmem:[#allocation3 + $0xc] ss:$16 sps:$4 sm:$0xff]  }
0x17ae   :  { %3622 = vmatprep.subr.bf16.mxu0 %v6214_v58  ;;  %3663 = vmatprep.subr.bf16.mxu1 %v6217_v20  ;;  %v6952_v58 = vld [vmem:[#allocation9_spill] sm:$0xff] }
0x17af   :  { %3652 = vmatprep.mubr.bf16.mxu0 %v6808_v0  ;;  %3693 = vmatprep.mubr.bf16.mxu1 %v6808_v0  ;;  %v414_v20 = vadd.f32 %v6952_v58, %v5058_v61  ;;  %v6597_v58 = vld [vmem:[#allocation3 + $0x8] ss:$16 sps:$4 sm:$0xff]  }
0x17b1   :  { %3623 = vmatpush1.bf16.msra.mxu0 %v6222_v21  ;;  %3664 = vmatpush1.bf16.msra.mxu1 %v6225_v22  ;;  %v6953_v21 = vld [vmem:[#allocation102_spill] sm:$0xff] }
0x17b2   :  { %3624 = vmatprep.subr.bf16.mxu0 %v6228_v24  ;;  %3665 = vmatprep.subr.bf16.mxu1 %v6231_v25  ;;  %v587_v22 = vadd.f32 %v6953_v21, %v5092_v38  ;;  %v6954_v24 = vld [vmem:[#allocation10_spill] sm:$0xff] }
0x17b3   :  { %v416_v25 = vadd.f32 %v6954_v24, %v5326_v40  ;;  %v6608_v21 = vld [vmem:[#allocation3 + $0x20] ss:$16 sps:$4 sm:$0xff]   ;;  %v6614_v24 = vld [vmem:[#allocation3 + $0x44] ss:$16 sps:$4 sm:$0xff]  }
0x17b5   :  { %3625 = vmatpush1.bf16.msra.mxu0 %v6234_v26  ;;  %3666 = vmatpush1.bf16.msra.mxu1 %v6237_v27  ;;  %v6955_v26 = vld [vmem:[#allocation103_spill] sm:$0xff] }
0x17b6   :  { %3626 = vmatprep.subr.bf16.mxu0 %v6240_v28  ;;  %3667 = vmatprep.subr.bf16.mxu1 %v6243_v29  ;;  %v589_v27 = vadd.f32 %v6955_v26, %v5095_v39  ;;  %v6620_v26 = vld [vmem:[#allocation3 + $0x40] ss:$16 sps:$4 sm:$0xff]  }
0x17b9   :  { %3627 = vmatpush1.bf16.msra.mxu0 %v6246_v30  ;;  %3668 = vmatpush1.bf16.msra.mxu1 %v6297_v62 }
0x17ba   :  { %3628 = vmatprep.subr.bf16.mxu0 %v6250_v32  ;;  %3669 = vmatprep.subr.bf16.mxu1 %v6301_v19 }
0x17bd   :  { %3629 = vmatpush1.bf16.msra.mxu0 %v6304_v12  ;;  %3670 = vmatpush1.bf16.msra.mxu1 %v6307_v36 }
0x17be   :  { %3630 = vmatprep.subr.bf16.mxu0 %v6356_v1  ;;  %3671 = vmatprep.subr.bf16.mxu1 %v6359_v45 }
0x17c1   :  { %3631 = vmatpush1.bf16.msra.mxu0 %v6362_v46  ;;  %3672 = vmatpush1.bf16.msra.mxu1 %v6365_v47 }
0x17c2   :  { %3632 = vmatprep.subr.bf16.mxu0 %v6368_v49  ;;  %3673 = vmatprep.subr.bf16.mxu1 %v6371_v50 }
0x17c5   :  { %3633 = vmatpush1.bf16.msra.mxu0 %v6374_v51  ;;  %3674 = vmatpush1.bf16.msra.mxu1 %v6377_v52 }
0x17c6   :  { %3634 = vmatprep.subr.bf16.mxu0 %v6380_v53  ;;  %3675 = vmatprep.subr.bf16.mxu1 %v6383_v54 }
0x17c9   :  { %3635 = vmatpush1.bf16.msra.mxu0 %v6386_v55  ;;  %3676 = vmatpush1.bf16.msra.mxu1 %v6389_v56 }
0x17ca   :  { %3732 = vmatprep.subr.bf16.mxu0 %v6576_v63  ;;  %3773 = vmatprep.subr.bf16.mxu1 %v6579_v3 }
0x187f   :  { %v3542_v28 = vpop.f32.mrb[140].mxu0  ;;  %v3583_v29 = vpop.f32.mrb[156].mxu1 }
0x1880   :  { %v3590_v30 = vadd.f32 %v3542_v28, %v414_v20  ;;  %v3592_v32 = vadd.f32 %v3583_v29, %v587_v22  ;;  %v3544_v37 = vpop.f32.mrb[141].mxu0  ;;  %v3585_v15 = vpop.f32.mrb[157].mxu1  ;;  %v6603_v20 = vld [vmem:[#allocation3 + $0x2c] ss:$16 sps:$4 sm:$0xff]   ;;  %v6611_v22 = vld [vmem:[#allocation3 + $0x28] ss:$16 sps:$4 sm:$0xff]  }
0x1881   :  { %v3591_v48 = vadd.f32 %v3544_v37, %v416_v25  ;;  %v3593_v5 = vadd.f32 %v3585_v15, %v589_v27  ;;  %v3546_v7 = vpop.f32.mrb[142].mxu0  ;;  %v3587_v16 = vpop.f32.mrb[158].mxu1  ;;  %v6617_v25 = vld [vmem:[#allocation3 + $0x4c] ss:$16 sps:$4 sm:$0xff]   ;;  %v6623_v27 = vld [vmem:[#allocation3 + $0x48] ss:$16 sps:$4 sm:$0xff]  }
0x1882   :  { %v3594_v59 = vmul.f32 0.5, %v3590_v30  ;;  %v3547_v8 = vpop.f32.mrb[143].mxu0  ;;  %v3588_v35 = vpop.f32.mrb[159].mxu1  ;;  %v6626_v28 = vld [vmem:[#allocation3 + $0x64] ss:$16 sps:$4 sm:$0xff]  }
0x1883   :  { %v3603_v4 = vmul.f32 0.5, %v3591_v48  ;;  %v3599_v23 = vmul.f32 0.5, %v3593_v5  ;;  %v6629_v29 = vld [vmem:[#allocation3 + $0x6c] ss:$16 sps:$4 sm:$0xff]   ;;  %v6632_v30 = vld [vmem:[#allocation3 + $0x60] ss:$16 sps:$4 sm:$0xff]  }
0x1884   :  { %4556 = vtanh.f32 %v3594_v59  ;;  %v6958_v37 = vld [vmem:[#allocation12_spill] sm:$0xff]  ;;  %v6959_v48 = vld [vmem:[#allocation105_spill] sm:$0xff] }
0x1885   :  { %4558 = vtanh.f32 %v3603_v4  ;;  %v420_v15 = vadd.f32 %v6958_v37, %v5326_v40  ;;  %v593_v5 = vadd.f32 %v6959_v48, %v5095_v39 }
0x1886   :  { %4560 = vtanh.f32 %v3592_v32  ;;  %v6636_v32 = vld [vmem:[#allocation3 + $0x84] ss:$16 sps:$4 sm:$0xff]  }
0x1887   :  { %4562 = vtanh.f32 %v3599_v23 }
0x188e   :  { %v4557_v10 = vpop.eup %4556 }
0x188f   :  { %v4559_v43 = vpop.eup %4558  ;;  %v3596_v11 = vmul.f32 0.5, %v4557_v10 }
0x1890   :  { %v3605_v33 = vmul.f32 0.5, %v4559_v43  ;;  %v4561_v57 = vpop.eup %4560 }
0x1891   :  { %v3597_v9 = vadd.f32 0.5, %v3596_v11  ;;  %v4563_v60 = vpop.eup %4562 }
0x1892   :  { %v3606_v31 = vadd.f32 0.5, %v3605_v33  ;;  %v3601_v2 = vmul.f32 0.5, %v4563_v60 }
0x1893   :  { %v3608_v41 = vmul.f32 %v4561_v57, %v3597_v9 }
0x1894   :  { %v3607_v6 = vmul.f32 %v3606_v31, %v6541_v34  ;;  %v3602_v13 = vadd.f32 0.5, %v3601_v2  ;;  %v6600_v34 = vld [vmem:[#allocation3 + $0x24] ss:$16 sps:$4 sm:$0xff]  }
0x1896   :  { %v6591_v44 = vadd.f32 %v3608_v41, %v3607_v6 }
0x1898   :  { %4564 = vtanh.f32 %v6591_v44 }
0x18a2   :  { %v4565_v17 = vpop.eup %4564 }
0x18a3   :  { %v3611_v18 = vmul.f32 %v4565_v17, %v3602_v13 }
0x18a5   :  { %v3619_v42 = vpack.c.bf16 %v3611_v18, %v3611_v18 }
0x18a7   :  { %3653 = vmatmul.mubr.bf16.vlgmr.msra.gmra.mrb[144].mxu0 %v3619_v42  ;;  %3694 = vmatmul.mubr.bf16.vlgmr.msra.gmra.mrb[160].mxu1 %v3619_v42 }
0x18a8   :  { %3733 = vmatpush1.bf16.msra.mxu0 %v6594_v14  ;;  %3774 = vmatpush1.bf16.msra.mxu1 %v6597_v58 }
0x18a9   :  { %3734 = vmatprep.subr.bf16.mxu0 %v6600_v34  ;;  %3775 = vmatprep.subr.bf16.mxu1 %v6603_v20 }
0x18aa   :  { %3764 = vmatprep.mubr.bf16.mxu0 %v6808_v0  ;;  %3805 = vmatprep.mubr.bf16.mxu1 %v6808_v0 }
0x18ac   :  { %3735 = vmatpush1.bf16.msra.mxu0 %v6608_v21  ;;  %3776 = vmatpush1.bf16.msra.mxu1 %v6611_v22 }
0x18ad   :  { %3736 = vmatprep.subr.bf16.mxu0 %v6614_v24  ;;  %3777 = vmatprep.subr.bf16.mxu1 %v6617_v25 }
0x18b0   :  { %3737 = vmatpush1.bf16.msra.mxu0 %v6620_v26  ;;  %3778 = vmatpush1.bf16.msra.mxu1 %v6623_v27 }
0x18b1   :  { %3738 = vmatprep.subr.bf16.mxu0 %v6626_v28  ;;  %3779 = vmatprep.subr.bf16.mxu1 %v6629_v29 }
0x18b4   :  { %3739 = vmatpush1.bf16.msra.mxu0 %v6632_v30  ;;  %3780 = vmatpush1.bf16.msra.mxu1 %v6297_v62  ;;  %v6956_v62 = vld [vmem:[#allocation11_spill] sm:$0xff] }
0x18b5   :  { %3740 = vmatprep.subr.bf16.mxu0 %v6636_v32  ;;  %3781 = vmatprep.subr.bf16.mxu1 %v6301_v19  ;;  %v418_v19 = vadd.f32 %v6956_v62, %v5058_v61 }
0x18b8   :  { %3741 = vmatpush1.bf16.msra.mxu0 %v6304_v12  ;;  %3782 = vmatpush1.bf16.msra.mxu1 %v6307_v36  ;;  %v6957_v12 = vld [vmem:[#allocation104_spill] sm:$0xff] }
0x18b9   :  { %3742 = vmatprep.subr.bf16.mxu0 %v6356_v1  ;;  %3783 = vmatprep.subr.bf16.mxu1 %v6359_v45  ;;  %v591_v36 = vadd.f32 %v6957_v12, %v5092_v38 }
0x18bc   :  { %3743 = vmatpush1.bf16.msra.mxu0 %v6362_v46  ;;  %3784 = vmatpush1.bf16.msra.mxu1 %v6365_v47 }
0x18bd   :  { %3744 = vmatprep.subr.bf16.mxu0 %v6368_v49  ;;  %3785 = vmatprep.subr.bf16.mxu1 %v6371_v50 }
0x18c0   :  { %3745 = vmatpush1.bf16.msra.mxu0 %v6374_v51  ;;  %3786 = vmatpush1.bf16.msra.mxu1 %v6377_v52 }
0x18c1   :  { %3746 = vmatprep.subr.bf16.mxu0 %v6380_v53  ;;  %3787 = vmatprep.subr.bf16.mxu1 %v6383_v54 }
0x18c4   :  { %3747 = vmatpush1.bf16.msra.mxu0 %v6386_v55  ;;  %3788 = vmatpush1.bf16.msra.mxu1 %v6389_v56 }
0x18c5   :  { %3844 = vmatprep.subr.bf16.mxu0 %v6576_v63  ;;  %3885 = vmatprep.subr.bf16.mxu1 %v6579_v3 }
0x197a   :  { %v3654_v7 = vpop.f32.mrb[144].mxu0  ;;  %v3695_v16 = vpop.f32.mrb[160].mxu1 }
0x197b   :  { %v3702_v59 = vadd.f32 %v3654_v7, %v418_v19  ;;  %v3704_v8 = vadd.f32 %v3695_v16, %v591_v36  ;;  %v3656_v35 = vpop.f32.mrb[145].mxu0  ;;  %v3697_v63 = vpop.f32.mrb[161].mxu1 }
0x197c   :  { %v3703_v4 = vadd.f32 %v3656_v35, %v420_v15  ;;  %v3705_v3 = vadd.f32 %v3697_v63, %v593_v5  ;;  %v3658_v23 = vpop.f32.mrb[146].mxu0  ;;  %v3699_v10 = vpop.f32.mrb[162].mxu1 }
0x197d   :  { %v3706_v43 = vmul.f32 0.5, %v3702_v59  ;;  %v3659_v11 = vpop.f32.mrb[147].mxu0  ;;  %v3700_v33 = vpop.f32.mrb[163].mxu1 }
0x197e   :  { %v3715_v9 = vmul.f32 0.5, %v3703_v4  ;;  %v3711_v57 = vmul.f32 0.5, %v3705_v3 }
0x197f   :  { %4566 = vtanh.f32 %v3706_v43 }
0x1980   :  { %4568 = vtanh.f32 %v3715_v9 }
0x1981   :  { %4570 = vtanh.f32 %v3704_v8 }
0x1982   :  { %4572 = vtanh.f32 %v3711_v57  ;;  %v4310_v57 = vld [vmem:[%s6760_s4] sm:$0xff]  }
0x1989   :  { %v4567_v31 = vpop.eup %4566 }
0x198a   :  { %v4569_v41 = vpop.eup %4568  ;;  %v3708_v6 = vmul.f32 0.5, %v4567_v31  ;;  %v4764_v31 = vmov 0.0  }
0x198b   :  { %v3717_v60 = vmul.f32 0.5, %v4569_v41  ;;  %v4571_v13 = vpop.eup %4570  ;;  %v4311_v41 = vld [vmem:[%s6760_s4 + $0x8] sm:$0xff]  }
0x198c   :  { %v3709_v2 = vadd.f32 0.5, %v3708_v6  ;;  %v4573_v19 = vpop.eup %4572  ;;  %v4312_v6 = vld [vmem:[%s6760_s4 + $0x10] sm:$0xff]  }
0x198d   :  { %v3718_v17 = vadd.f32 0.5, %v3717_v60  ;;  %v3713_v12 = vmul.f32 0.5, %v4573_v19  ;;  %v4313_v60 = vld [vmem:[%s6760_s4 + $0x18] sm:$0xff]   ;;  %v6965_v19 = vld [vmem:[#allocation108_spill] sm:$0xff] }
0x198e   :  { %v3720_v18 = vmul.f32 %v4571_v13, %v3709_v2  ;;  %v4314_v2 = vld [vmem:[%s6760_s4 + $0x20] sm:$0xff]   ;;  %v4315_v13 = vld [vmem:[%s6760_s4 + $0x28] sm:$0xff]  }
0x198f   :  { %v3719_v42 = vmul.f32 %v3718_v17, %v6591_v44  ;;  %v3714_v36 = vadd.f32 0.5, %v3713_v12  ;;  %v4708_v44 = vld [vmem:[#allocation3 + $0x68] ss:$16 sps:$4 sm:$0xff]   ;;  %v4316_v17 = vld [vmem:[%s6760_s4 + $0x30] sm:$0xff]   ;;  %v601_v12 = vadd.f32 %v6965_v19, %v5092_v38 }
0x1991   :  { %v6665_v62 = vadd.f32 %v3720_v18, %v3719_v42  ;;  %v4317_v18 = vld [vmem:[%s6760_s4 + $0x38] sm:$0xff]   ;;  %v6964_v42 = vld [vmem:[#allocation16_spill] sm:$0xff] }
0x1993   :  { %4574 = vtanh.f32 %v6665_v62 }
0x199d   :  { %v4575_v37 = vpop.eup %4574 }
0x199e   :  { %v3723_v15 = vmul.f32 %v4575_v37, %v3714_v36  ;;  %v6966_v36 = vld [vmem:[#allocation18_spill] sm:$0xff] }
0x199f   :  { %v430_v37 = vadd.f32 %v6966_v36, %v5326_v40 }
0x19a0   :  { %v3731_v48 = vpack.c.bf16 %v3723_v15, %v3723_v15  ;;  %v6967_v15 = vld [vmem:[#allocation109_spill] sm:$0xff] }
0x19a2   :  { %3765 = vmatmul.mubr.bf16.vlgmr.msra.gmra.mrb[148].mxu0 %v3731_v48  ;;  %3806 = vmatmul.mubr.bf16.vlgmr.msra.gmra.mrb[164].mxu1 %v3731_v48  ;;  %v603_v48 = vadd.f32 %v6967_v15, %v5095_v39 }
0x19a3   :  { %3845 = vmatpush1.bf16.msra.mxu0 %v6594_v14  ;;  %3886 = vmatpush1.bf16.msra.mxu1 %v6597_v58  ;;  %v4710_v14 = vld [vmem:[#allocation3 + $0x80] ss:$16 sps:$4 sm:$0xff]   ;;  %v4711_v58 = vld [vmem:[#allocation3 + $0x88] ss:$16 sps:$4 sm:$0xff]  }
0x19a4   :  { %3846 = vmatprep.subr.bf16.mxu0 %v6600_v34  ;;  %3887 = vmatprep.subr.bf16.mxu1 %v6603_v20 }
0x19a5   :  { %3876 = vmatprep.mubr.bf16.mxu0 %v6808_v0  ;;  %3917 = vmatprep.mubr.bf16.mxu1 %v6808_v0  ;;  %v4709_v0 = vld [vmem:[#allocation3 + $0x8c] ss:$16 sps:$4 sm:$0xff]  }
0x19a7   :  { %3847 = vmatpush1.bf16.msra.mxu0 %v6608_v21  ;;  %3888 = vmatpush1.bf16.msra.mxu1 %v6611_v22 }
0x19a8   :  { %3848 = vmatprep.subr.bf16.mxu0 %v6614_v24  ;;  %3889 = vmatprep.subr.bf16.mxu1 %v6617_v25 }
0x19ab   :  { %3849 = vmatpush1.bf16.msra.mxu0 %v6620_v26  ;;  %3890 = vmatpush1.bf16.msra.mxu1 %v6623_v27 }
0x19ac   :  { %3850 = vmatprep.subr.bf16.mxu0 %v6626_v28  ;;  %3891 = vmatprep.subr.bf16.mxu1 %v6629_v29 }
0x19af   :  { %3851 = vmatpush1.bf16.msra.mxu0 %v6632_v30  ;;  %3892 = vmatpush1.bf16.msra.mxu1 %v4708_v44 }
0x19b0   :  { %3852 = vmatprep.subr.bf16.mxu0 %v6636_v32  ;;  %3893 = vmatprep.subr.bf16.mxu1 %v4709_v0 }
0x19b3   :  { %3853 = vmatpush1.bf16.msra.mxu0 %v4710_v14  ;;  %3894 = vmatpush1.bf16.msra.mxu1 %v4711_v58 }
0x19b4   :  { %3854 = vmatprep.subr.bf16.mxu0 %v6356_v1  ;;  %3895 = vmatprep.subr.bf16.mxu1 %v6359_v45  ;;  %v6960_v1 = vld [vmem:[#allocation13_spill] sm:$0xff] }
0x19b5   :  { %v424_v45 = vadd.f32 %v6960_v1, %v5058_v61 }
0x19b7   :  { %3855 = vmatpush1.bf16.msra.mxu0 %v6362_v46  ;;  %3896 = vmatpush1.bf16.msra.mxu1 %v6365_v47  ;;  %v6961_v46 = vld [vmem:[#allocation106_spill] sm:$0xff] }
0x19b8   :  { %3856 = vmatprep.subr.bf16.mxu0 %v6368_v49  ;;  %3897 = vmatprep.subr.bf16.mxu1 %v6371_v50  ;;  %v597_v47 = vadd.f32 %v6961_v46, %v5092_v38  ;;  %v6962_v49 = vld [vmem:[#allocation14_spill] sm:$0xff] }
0x19b9   :  { %v426_v50 = vadd.f32 %v6962_v49, %v5326_v40 }
0x19bb   :  { %3857 = vmatpush1.bf16.msra.mxu0 %v6374_v51  ;;  %3898 = vmatpush1.bf16.msra.mxu1 %v6377_v52  ;;  %v6963_v51 = vld [vmem:[#allocation107_spill] sm:$0xff] }
0x19bc   :  { %3858 = vmatprep.subr.bf16.mxu0 %v6380_v53  ;;  %3899 = vmatprep.subr.bf16.mxu1 %v6383_v54  ;;  %v599_v52 = vadd.f32 %v6963_v51, %v5095_v39 }
0x19bf   :  { %3859 = vmatpush1.bf16.msra.mxu0 %v6386_v55  ;;  %3900 = vmatpush1.bf16.msra.mxu1 %v6389_v56 }
0x19c0   :  { %4205 = vmatprep.subr.bf16.mxu0 %v4764_v31 }
0x1a75   :  { %v3766_v34 = vpop.f32.mrb[148].mxu0  ;;  %v3807_v53 = vpop.f32.mrb[164].mxu1 }
0x1a76   :  { %v3814_v20 = vadd.f32 %v3766_v34, %v424_v45  ;;  %v3816_v54 = vadd.f32 %v3807_v53, %v597_v47  ;;  %v3768_v21 = vpop.f32.mrb[149].mxu0  ;;  %v3809_v55 = vpop.f32.mrb[165].mxu1 }
0x1a77   :  { %v3815_v22 = vadd.f32 %v3768_v21, %v426_v50  ;;  %v3817_v56 = vadd.f32 %v3809_v55, %v599_v52  ;;  %v3770_v24 = vpop.f32.mrb[150].mxu0  ;;  %v3811_v25 = vpop.f32.mrb[166].mxu1 }
0x1a78   :  { %v3818_v26 = vmul.f32 0.5, %v3814_v20  ;;  %v3771_v27 = vpop.f32.mrb[151].mxu0  ;;  %v3812_v28 = vpop.f32.mrb[167].mxu1 }
0x1a79   :  { %v3827_v29 = vmul.f32 0.5, %v3815_v22  ;;  %v3823_v30 = vmul.f32 0.5, %v3817_v56 }
0x1a7a   :  { %4576 = vtanh.f32 %v3818_v26 }
0x1a7b   :  { %4578 = vtanh.f32 %v3827_v29 }
0x1a7c   :  { %4580 = vtanh.f32 %v3816_v54 }
0x1a7d   :  { %4582 = vtanh.f32 %v3823_v30 }
0x1a84   :  { %v4577_v32 = vpop.eup %4576 }
0x1a85   :  { %v4579_v5 = vpop.eup %4578  ;;  %v3820_v7 = vmul.f32 0.5, %v4577_v32  ;;  %v4187_v32 = vld [vmem:[%s6761_s5] ss:$0 sm:$0xff] }
0x1a86   :  { %v3829_v16 = vmul.f32 0.5, %v4579_v5  ;;  %v4581_v8 = vpop.eup %4580 }
0x1a87   :  { %v3821_v59 = vadd.f32 0.5, %v3820_v7  ;;  %v4583_v23 = vpop.eup %4582 }
0x1a88   :  { %v3830_v35 = vadd.f32 0.5, %v3829_v16  ;;  %v3825_v10 = vmul.f32 0.5, %v4583_v23 }
0x1a89   :  { %v3832_v63 = vmul.f32 %v4581_v8, %v3821_v59 }
0x1a8a   :  { %v3831_v4 = vmul.f32 %v3830_v35, %v6665_v62  ;;  %v3826_v43 = vadd.f32 0.5, %v3825_v10  ;;  %v428_v62 = vadd.f32 %v6964_v42, %v5058_v61 }
0x1a8c   :  { %v6705_v3 = vadd.f32 %v3832_v63, %v3831_v4 }
0x1a8e   :  { %4584 = vtanh.f32 %v6705_v3 }
0x1a98   :  { %v4585_v11 = vpop.eup %4584 }
0x1a99   :  { %v3835_v33 = vmul.f32 %v4585_v11, %v3826_v43 }
0x1a9b   :  { %v3843_v9 = vpack.c.bf16 %v3835_v33, %v3835_v33 }
0x1a9d   :  { %3877 = vmatmul.mubr.bf16.vlgmr.msra.gmra.mrb[152].mxu0 %v3843_v9  ;;  %3918 = vmatmul.mubr.bf16.vlgmr.msra.gmra.mrb[168].mxu1 %v3843_v9 }
0x1a9e   :  { %4206 = vmatpush3.bf16.msra.mxu0 %v4310_v57  ;;  %4221 = vmatprep.mubr.msk.bf16.mxu0 %vm4765_vm2, %v4764_v31 }
0x1a9f   :  { %4207 = vmatprep.subr.bf16.mxu0 %v4764_v31 }
0x1aa2   :  { %4208 = vmatpush3.bf16.msra.mxu0 %v4311_v41 }
0x1aa3   :  { %4209 = vmatprep.subr.bf16.mxu0 %v4764_v31 }
0x1aa6   :  { %4210 = vmatpush3.bf16.msra.mxu0 %v4312_v6 }
0x1aa7   :  { %4211 = vmatprep.subr.bf16.mxu0 %v4764_v31 }
0x1aaa   :  { %4212 = vmatpush3.bf16.msra.mxu0 %v4313_v60 }
0x1aab   :  { %4213 = vmatprep.subr.bf16.mxu0 %v4764_v31 }
0x1aae   :  { %4214 = vmatpush3.bf16.msra.mxu0 %v4314_v2 }
0x1aaf   :  { %4215 = vmatprep.subr.bf16.mxu0 %v4764_v31 }
0x1ab2   :  { %4216 = vmatpush3.bf16.msra.mxu0 %v4315_v13 }
0x1ab3   :  { %4217 = vmatprep.subr.bf16.mxu0 %v4764_v31 }
0x1ab6   :  { %4218 = vmatpush3.bf16.msra.mxu0 %v4316_v17 }
0x1ab7   :  { %4219 = vmatprep.subr.bf16.mxu0 %v4764_v31 }
0x1aba   :  { %4220 = vmatpush3.bf16.msra.mxu0 %v4317_v18 }
0x1b70   :  { %v3878_v44 = vpop.f32.mrb[152].mxu0  ;;  %v3919_v0 = vpop.f32.mrb[168].mxu1 }
0x1b71   :  { %v3926_v14 = vadd.f32 %v3878_v44, %v428_v62  ;;  %v3928_v58 = vadd.f32 %v3919_v0, %v601_v12  ;;  %v3880_v1 = vpop.f32.mrb[153].mxu0  ;;  %v3921_v45 = vpop.f32.mrb[169].mxu1 }
0x1b72   :  { %v3927_v46 = vadd.f32 %v3880_v1, %v430_v37  ;;  %v3929_v47 = vadd.f32 %v3921_v45, %v603_v48  ;;  %v3882_v49 = vpop.f32.mrb[154].mxu0  ;;  %v3923_v50 = vpop.f32.mrb[170].mxu1 }
0x1b73   :  { %v3930_v61 = vmul.f32 0.5, %v3926_v14  ;;  %v3883_v51 = vpop.f32.mrb[155].mxu0  ;;  %v3924_v52 = vpop.f32.mrb[171].mxu1 }
0x1b74   :  { %v3939_v38 = vmul.f32 0.5, %v3927_v46  ;;  %v3935_v40 = vmul.f32 0.5, %v3929_v47 }
0x1b75   :  { %4586 = vtanh.f32 %v3930_v61 }
0x1b76   :  { %4588 = vtanh.f32 %v3939_v38 }
0x1b77   :  { %4590 = vtanh.f32 %v3928_v58 }
0x1b78   :  { %4592 = vtanh.f32 %v3935_v40 }
0x1b7f   :  { %v4587_v34 = vpop.eup %4586 }
0x1b80   :  { %v4589_v39 = vpop.eup %4588  ;;  %v3932_v53 = vmul.f32 0.5, %v4587_v34 }
0x1b81   :  { %v3941_v20 = vmul.f32 0.5, %v4589_v39  ;;  %v4591_v21 = vpop.eup %4590 }
0x1b82   :  { %v3933_v54 = vadd.f32 0.5, %v3932_v53  ;;  %v4593_v25 = vpop.eup %4592 }
0x1b83   :  { %v3942_v55 = vadd.f32 0.5, %v3941_v20  ;;  %v3937_v26 = vmul.f32 0.5, %v4593_v25 }
0x1b84   :  { %v3944_v22 = vmul.f32 %v4591_v21, %v3933_v54 }
0x1b85   :  { %v3943_v56 = vmul.f32 %v3942_v55, %v6705_v3  ;;  %v3938_v27 = vadd.f32 0.5, %v3937_v26 }
0x1b87   :  { %v3945_v24 = vadd.f32 %v3944_v22, %v3943_v56 }
0x1b89   :  { %4594 = vtanh.f32 %v3945_v24 }
0x1b93   :  { %v4595_v28 = vpop.eup %4594 }
0x1b94   :  { %v3947_v29 = vmul.f32 %v4595_v28, %v3938_v27 }
0x1b96   :  { %v3948_v30 = vpack.c.bf16 %v3947_v29, %v3947_v29 }
0x1b98   :  { %4222 = vmatmul.mubr.bf16.vlgmr.msra.gmra.mrb[156].mxu0 %v3948_v30 }
0x1c6b   :  { %v4054_v5 = vpop.f32.mrb[156].mxu0 }
0x1c6c   :  { %v4055_v7 = vadd.f32 %v4187_v32, %v4054_v5  ;;  %v4223_v16 = vpop.f32.mrb[157].mxu0 }
0x1c6d   :  { %v4057_v59 = vpop.f32.mrb[158].mxu0 }
0x1c6e   :  { %4060 = vst [vmem:[#allocation6] sm:$0xff] %v4055_v7  ;;  %v4224_v8 = vpop.f32.mrb[159].mxu0 }
0x1c6f   :  { %4745 = shalt.err (!%p4742_p12)
}
0x1c70   :  { %s4746_s5 = scalar_lea.hbm %s6762_s6, 128 }
0x1c71   :  { %p4747_p13 = scmp.ne.s32.totalorder %s6762_s6, %s4746_s5  ;;  %p4750_p0 = scmp.lt.u32.totalorder %s4746_s5, %s6762_s6 }
0x1c73   :  { %p4752_p1 = pnand %p4750_p0, %p4747_p13 }
0x1c75   :  { %4755 = shalt.err (!%p4752_p1)
}
0x1c76   :  { %4070 = dma.vmem_to_hbm [thread:$0]  %s4068_s20, 128, %s6762_s6, [#allocation5]  }
0x1c77   :  { %4758 = dma.done.wait [#allocation5], 128  }
0x1c78   :  { %4759 = vsyncadd [#allocation5], 4294967168 }
0x1c79   :  { %4074 = vsyncpa [#allocation4], 1 }
0x1c7a   :  { %4075 = vsyncpa [#allocation5], 1 }

</bundles_post_ra>
